<compile_context>
chip_gen: v7x
topology: tpu7x:2x2x1
jax: 0.10.0
libtpu: 0.0.40
codegen_flags: <defaults>
</compile_context>

<pallas_src>
import jax
import jax.numpy as jnp
from jax import lax
from jax.experimental import pallas as pl
from jax.experimental.pallas import tpu as pltpu

C1 = 32          # conv1 out channels (fixed by the module)
C2 = 64          # conv2 / conv3 channels (fixed by the module)
SLOPE = 0.01     # nn.LeakyReLU default negative_slope
PADW = 8         # left zero-pad columns in the scratch (8 => aligned sublane store)


def _leaky(x):
    return jnp.where(x > 0, x, SLOPE * x)


def _task_adaptor_kernel(x_ref, w1_ref, w2_ref, w3_ref, w4_ref, wsc_ref,
                         o_ref, xp1_ref, xp2_ref):
    """TaskAdaptor forward for one batch image (NHWC).

    x_ref   : VMEM (1, H, W, Cin)          f32 input
    w1_ref  : VMEM (3, 3, Cin, C1)         bf16 conv1 weight (HWIO)
    w2_ref  : VMEM (C1, C2)                bf16 conv2 1x1 weight (in, out)
    w3_ref  : VMEM (9, C2)                 f32 depthwise 3x3 weight, tap-major
    w4_ref  : VMEM (C2, Cout)              bf16 conv4 1x1 weight (in, out)
    wsc_ref : VMEM (Cin, Cout)             bf16 shortcut 1x1 weight (in, out)
    o_ref   : VMEM (1, H, W, Cout)         f32 output
    xp1_ref : VMEM (H+2, W+PADW+1, Cin)    f32 scratch: zero-padded input
    xp2_ref : VMEM (H+2, W+PADW+1, C2)     f32 scratch: zero-padded conv2 act
    """
    _, H, W, Cin = x_ref.shape
    Cout = w4_ref.shape[1]
    HW = H * W

    x = x_ref[0]                                        # (H, W, Cin) f32

    # ---- conv1: 3x3, Cin -> C1, pad 1, no bias; LeakyReLU -------------------
    # Pad inside the kernel: data sits at rows [1, H], cols [PADW, PADW+W) of a
    # zeroed scratch; the 9 conv taps read windows at col offsets PADW-1..PADW+1.
    xp1_ref[...] = jnp.zeros_like(xp1_ref)
    xp1_ref[1:H + 1, PADW:PADW + W, :] = x              # aligned interior store
    h1 = jnp.zeros((HW, C1), jnp.float32)
    for dy in range(3):
        for dx in range(3):
            patch = xp1_ref[dy:dy + H, PADW - 1 + dx:PADW - 1 + dx + W, :]
            patch = patch.reshape(HW, Cin).astype(jnp.bfloat16)
            h1 = h1 + jnp.dot(patch, w1_ref[dy, dx],
                              preferred_element_type=jnp.float32)
    a1 = _leaky(h1)                                     # (HW, C1) f32

    # ---- conv2: 1x1, C1 -> C2, no bias; LeakyReLU ---------------------------
    h2 = jnp.dot(a1.astype(jnp.bfloat16), w2_ref[...],
                 preferred_element_type=jnp.float32)
    a2 = _leaky(h2)                                     # (HW, C2) f32

    # ---- conv3: 3x3 depthwise (groups=C2), pad 1, no bias; LeakyReLU --------
    # Depthwise = per-channel taps -> pure VPU work, kept in f32 (no bf16
    # elementwise math; bf16 only feeds the MXU).
    xp2_ref[...] = jnp.zeros_like(xp2_ref)
    xp2_ref[1:H + 1, PADW:PADW + W, :] = a2.reshape(H, W, C2)
    w3 = w3_ref[...]                                    # (9, C2) f32
    h3 = jnp.zeros((H, W, C2), jnp.float32)
    for dy in range(3):
        for dx in range(3):
            tap = w3[3 * dy + dx].reshape(1, 1, C2)
            win = xp2_ref[dy:dy + H, PADW - 1 + dx:PADW - 1 + dx + W, :]
            h3 = h3 + win * tap
    a3 = _leaky(h3).reshape(HW, C2)                     # (HW, C2) f32

    # ---- conv4: 1x1, C2 -> Cout, no bias + 1x1 shortcut ---------------------
    out = jnp.dot(a3.astype(jnp.bfloat16), w4_ref[...],
                  preferred_element_type=jnp.float32)
    out = out + jnp.dot(x.reshape(HW, Cin).astype(jnp.bfloat16), wsc_ref[...],
                        preferred_element_type=jnp.float32)

    o_ref[0] = out.reshape(H, W, Cout)


def task_adaptor(x_nhwc, w1_hwio, w2, w3_dw, w4, wsc):
    """Fused TaskAdaptor forward.

    x_nhwc : (N, H, W, Cin) f32
    w1_hwio: (3, 3, Cin, C1)  conv1 weight (torch OIHW -> HWIO)
    w2     : (C1, C2)         conv2 1x1 weight (in, out)
    w3_dw  : (3, 3, C2)       depthwise conv3 weight (torch (C2,1,3,3) -> (3,3,C2))
    w4     : (C2, Cout)       conv4 1x1 weight (in, out)
    wsc    : (Cin, Cout) shortcut 1x1 weight, or None when in_size == out_size
    """
    N, H, W, Cin = x_nhwc.shape
    Cout = w4.shape[1]
    if wsc is None:                     # identity shortcut (in_size == out_size)
        wsc = jnp.eye(Cin, dtype=jnp.float32)

    w1b = w1_hwio.astype(jnp.bfloat16)
    w2b = w2.astype(jnp.bfloat16)
    w3f = w3_dw.reshape(9, C2).astype(jnp.float32)
    w4b = w4.astype(jnp.bfloat16)
    wscb = wsc.astype(jnp.bfloat16)

    flops = 2 * N * H * W * (9 * Cin * C1 + C1 * C2 + 9 * C2
                             + C2 * Cout + Cin * Cout)
    bytes_accessed = (x_nhwc.size * 4 + N * H * W * Cout * 4
                      + w1b.size * 2 + w2b.size * 2 + w3f.size * 4
                      + w4b.size * 2 + wscb.size * 2)

    grid_spec = pltpu.PrefetchScalarGridSpec(
        num_scalar_prefetch=0,
        grid=(N,),
        in_specs=[
            pl.BlockSpec((1, H, W, Cin), lambda n: (n, 0, 0, 0)),
            pl.BlockSpec((3, 3, Cin, C1), lambda n: (0, 0, 0, 0)),
            pl.BlockSpec((C1, C2), lambda n: (0, 0)),
            pl.BlockSpec((9, C2), lambda n: (0, 0)),
            pl.BlockSpec((C2, Cout), lambda n: (0, 0)),
            pl.BlockSpec((Cin, Cout), lambda n: (0, 0)),
        ],
        out_specs=pl.BlockSpec((1, H, W, Cout), lambda n: (n, 0, 0, 0)),
        scratch_shapes=[
            pltpu.VMEM((H + 2, W + PADW + 1, Cin), jnp.float32),
            pltpu.VMEM((H + 2, W + PADW + 1, C2), jnp.float32),
        ],
    )
    return pl.pallas_call(
        _task_adaptor_kernel,
        out_shape=jax.ShapeDtypeStruct((N, H, W, Cout), jnp.float32),
        grid_spec=grid_spec,
        compiler_params=pltpu.CompilerParams(
            dimension_semantics=("parallel",)),
        cost_estimate=pl.CostEstimate(
            flops=flops, transcendentals=0, bytes_accessed=bytes_accessed),
    )(x_nhwc, w1b, w2b, w3f, w4b, wscb)


# ---------------- pure-JAX reference (same math / same bf16 rounding) --------
def task_adaptor_ref(x_nhwc, w1_hwio, w2, w3_dw, w4, wsc):
    bf16, f32 = jnp.bfloat16, jnp.float32
    h1 = lax.conv_general_dilated(
        x_nhwc.astype(bf16), w1_hwio.astype(bf16), (1, 1), "SAME",
        dimension_numbers=("NHWC", "HWIO", "NHWC"),
        preferred_element_type=f32)
    a1 = _leaky(h1)
    h2 = jnp.einsum("nhwc,cd->nhwd", a1.astype(bf16), w2.astype(bf16),
                    preferred_element_type=f32)
    a2 = _leaky(h2)
    h3 = lax.conv_general_dilated(
        a2, w3_dw.reshape(3, 3, 1, C2), (1, 1), "SAME",
        dimension_numbers=("NHWC", "HWIO", "NHWC"),
        feature_group_count=C2, precision=lax.Precision.HIGHEST)
    a3 = _leaky(h3)
    out = jnp.einsum("nhwc,cd->nhwd", a3.astype(bf16), w4.astype(bf16),
                     preferred_element_type=f32)
    if wsc is None:
        sc = x_nhwc
    else:
        sc = jnp.einsum("nhwc,cd->nhwd", x_nhwc.astype(bf16), wsc.astype(bf16),
                        preferred_element_type=f32)
    return out + sc


if __name__ == "__main__":
    N, Cin, H, W = 2, 4, 16, 16
    Cout = 8                     # in_size != out_size -> conv shortcut exercised

    key = jax.random.PRNGKey(0)
    kx, k1, k2, k3, k4, k5 = jax.random.split(key, 6)
    x_nchw = jax.random.normal(kx, (N, Cin, H, W), jnp.float32)

    # torch Conv2d weights expressed directly in the kernel's layouts.
    w1 = jax.random.normal(k1, (3, 3, Cin, C1), jnp.float32) / (9 * Cin) ** 0.5
    w2 = jax.random.normal(k2, (C1, C2), jnp.float32) / C1 ** 0.5
    w3 = jax.random.normal(k3, (3, 3, C2), jnp.float32) / 3.0
    w4 = jax.random.normal(k4, (C2, Cout), jnp.float32) / C2 ** 0.5
    wsc = jax.random.normal(k5, (Cin, Cout), jnp.float32) / Cin ** 0.5

    x_nhwc = jnp.transpose(x_nchw, (0, 2, 3, 1))        # NCHW -> NHWC glue

    out = jax.block_until_ready(task_adaptor(x_nhwc, w1, w2, w3, w4, wsc))
    ref = jax.block_until_ready(task_adaptor_ref(x_nhwc, w1, w2, w3, w4, wsc))

    assert out.shape == (N, H, W, Cout)
    assert jnp.allclose(out, ref, rtol=3e-2, atol=3e-2), (
        float(jnp.max(jnp.abs(out - ref))))

    print("KERNEL_OK")
</pallas_src>

<mosaic_0001>
module attributes {stable_mosaic.version = 11 : i64} {
  func.func @_task_adaptor_kernel(%arg0: i32, %arg1: memref<1x16x16x4xf32, #tpu.memory_space<vmem>>, %arg2: memref<3x3x4x32xbf16, #tpu.memory_space<vmem>>, %arg3: memref<32x64xbf16, #tpu.memory_space<vmem>>, %arg4: memref<9x64xf32, #tpu.memory_space<vmem>>, %arg5: memref<64x8xbf16, #tpu.memory_space<vmem>>, %arg6: memref<4x8xbf16, #tpu.memory_space<vmem>>, %arg7: memref<1x16x16x8xf32, #tpu.memory_space<vmem>>, %arg8: memref<18x25x4xf32, #tpu.memory_space<vmem>>, %arg9: memref<18x25x64xf32, #tpu.memory_space<vmem>>) attributes {dimension_semantics = [#tpu.dimension_semantics<parallel>], iteration_bounds = array<i64: 2>, scalar_prefetch = 0 : i64, scratch_operands = 2 : i64, tpu.core_type = #tpu.core_type<tc>, window_params = [{transform_indices = @transform_0, window_bounds = array<i64: 1, 16, 16, 4>}, {pipeline_mode = #tpu.pipeline_mode<synchronous>, transform_indices = @transform_1, window_bounds = array<i64: 3, 3, 4, 32>}, {pipeline_mode = #tpu.pipeline_mode<synchronous>, transform_indices = @transform_2, window_bounds = array<i64: 32, 64>}, {pipeline_mode = #tpu.pipeline_mode<synchronous>, transform_indices = @transform_3, window_bounds = array<i64: 9, 64>}, {pipeline_mode = #tpu.pipeline_mode<synchronous>, transform_indices = @transform_4, window_bounds = array<i64: 64, 8>}, {pipeline_mode = #tpu.pipeline_mode<synchronous>, transform_indices = @transform_5, window_bounds = array<i64: 4, 8>}, {transform_indices = @transform_6, window_bounds = array<i64: 1, 16, 16, 8>}]} {
    %c0 = arith.constant 0 : index
    %c0_0 = arith.constant 0 : index
    %c0_1 = arith.constant 0 : index
    %c0_2 = arith.constant 0 : index
    %0 = vector.load %arg1[%c0, %c0_0, %c0_1, %c0_2] : memref<1x16x16x4xf32, #tpu.memory_space<vmem>>, vector<1x16x16x4xf32>
    %1 = vector.shape_cast %0 : vector<1x16x16x4xf32> to vector<16x16x4xf32>
    %cst = arith.constant 0.000000e+00 : f32
    %2 = vector.broadcast %cst : f32 to vector<18x25x4xf32>
    %c0_3 = arith.constant 0 : index
    %c0_4 = arith.constant 0 : index
    %c0_5 = arith.constant 0 : index
    %3 = vector.load %arg8[%c0_3, %c0_4, %c0_5] : memref<18x25x4xf32, #tpu.memory_space<vmem>>, vector<18x25x4xf32>
    tpu.vector_store %arg8[%c0_3, %c0_4, %c0_5], %2 {strides = array<i32>} : memref<18x25x4xf32, #tpu.memory_space<vmem>>, vector<18x25x4xf32>,
    %c1 = arith.constant 1 : index
    %c8 = arith.constant 8 : index
    %c0_6 = arith.constant 0 : index
    %4 = vector.load %arg8[%c1, %c8, %c0_6] : memref<18x25x4xf32, #tpu.memory_space<vmem>>, vector<16x16x4xf32>
    tpu.vector_store %arg8[%c1, %c8, %c0_6], %1 {strides = array<i32>} : memref<18x25x4xf32, #tpu.memory_space<vmem>>, vector<16x16x4xf32>,
    %cst_7 = arith.constant 0.000000e+00 : f32
    %5 = vector.broadcast %cst_7 : f32 to vector<256x32xf32>
    %c0_8 = arith.constant 0 : index
    %c7 = arith.constant 7 : index
    %c0_9 = arith.constant 0 : index
    %6 = vector.load %arg8[%c0_8, %c7, %c0_9] : memref<18x25x4xf32, #tpu.memory_space<vmem>>, vector<16x16x4xf32>
    %7 = vector.shape_cast %6 : vector<16x16x4xf32> to vector<256x4xf32>
    %8 = arith.truncf %7 : vector<256x4xf32> to vector<256x4xbf16>
    %c0_10 = arith.constant 0 : index
    %c0_11 = arith.constant 0 : index
    %c0_12 = arith.constant 0 : index
    %c0_13 = arith.constant 0 : index
    %9 = vector.load %arg2[%c0_10, %c0_11, %c0_12, %c0_13] : memref<3x3x4x32xbf16, #tpu.memory_space<vmem>>, vector<1x1x4x32xbf16>
    %10 = vector.shape_cast %9 : vector<1x1x4x32xbf16> to vector<4x32xbf16>
    %cst_14 = arith.constant dense<0.000000e+00> : vector<256x32xf32>
    %11 = tpu.matmul %8, %10, %cst_14 {dimension_numbers = #tpu.dot_dimension_numbers<[1], [0], [0], [1], [0, 0, 1, 1], [], []>} : vector<256x4xbf16>, vector<4x32xbf16>, vector<256x32xf32> -> vector<256x32xf32>
    %12 = arith.addf %5, %11 : vector<256x32xf32>
    %c0_15 = arith.constant 0 : index
    %c8_16 = arith.constant 8 : index
    %c0_17 = arith.constant 0 : index
    %13 = vector.load %arg8[%c0_15, %c8_16, %c0_17] : memref<18x25x4xf32, #tpu.memory_space<vmem>>, vector<16x16x4xf32>
    %14 = vector.shape_cast %13 : vector<16x16x4xf32> to vector<256x4xf32>
    %15 = arith.truncf %14 : vector<256x4xf32> to vector<256x4xbf16>
    %c0_18 = arith.constant 0 : index
    %c1_19 = arith.constant 1 : index
    %c0_20 = arith.constant 0 : index
    %c0_21 = arith.constant 0 : index
    %16 = vector.load %arg2[%c0_18, %c1_19, %c0_20, %c0_21] : memref<3x3x4x32xbf16, #tpu.memory_space<vmem>>, vector<1x1x4x32xbf16>
    %17 = vector.shape_cast %16 : vector<1x1x4x32xbf16> to vector<4x32xbf16>
    %cst_22 = arith.constant dense<0.000000e+00> : vector<256x32xf32>
    %18 = tpu.matmul %15, %17, %cst_22 {dimension_numbers = #tpu.dot_dimension_numbers<[1], [0], [0], [1], [0, 0, 1, 1], [], []>} : vector<256x4xbf16>, vector<4x32xbf16>, vector<256x32xf32> -> vector<256x32xf32>
    %19 = arith.addf %12, %18 : vector<256x32xf32>
    %c0_23 = arith.constant 0 : index
    %c9 = arith.constant 9 : index
    %c0_24 = arith.constant 0 : index
    %20 = vector.load %arg8[%c0_23, %c9, %c0_24] : memref<18x25x4xf32, #tpu.memory_space<vmem>>, vector<16x16x4xf32>
    %21 = vector.shape_cast %20 : vector<16x16x4xf32> to vector<256x4xf32>
    %22 = arith.truncf %21 : vector<256x4xf32> to vector<256x4xbf16>
    %c0_25 = arith.constant 0 : index
    %c2 = arith.constant 2 : index
    %c0_26 = arith.constant 0 : index
    %c0_27 = arith.constant 0 : index
    %23 = vector.load %arg2[%c0_25, %c2, %c0_26, %c0_27] : memref<3x3x4x32xbf16, #tpu.memory_space<vmem>>, vector<1x1x4x32xbf16>
    %24 = vector.shape_cast %23 : vector<1x1x4x32xbf16> to vector<4x32xbf16>
    %cst_28 = arith.constant dense<0.000000e+00> : vector<256x32xf32>
    %25 = tpu.matmul %22, %24, %cst_28 {dimension_numbers = #tpu.dot_dimension_numbers<[1], [0], [0], [1], [0, 0, 1, 1], [], []>} : vector<256x4xbf16>, vector<4x32xbf16>, vector<256x32xf32> -> vector<256x32xf32>
    %26 = arith.addf %19, %25 : vector<256x32xf32>
    %c1_29 = arith.constant 1 : index
    %c7_30 = arith.constant 7 : index
    %c0_31 = arith.constant 0 : index
    %27 = vector.load %arg8[%c1_29, %c7_30, %c0_31] : memref<18x25x4xf32, #tpu.memory_space<vmem>>, vector<16x16x4xf32>
    %28 = vector.shape_cast %27 : vector<16x16x4xf32> to vector<256x4xf32>
    %29 = arith.truncf %28 : vector<256x4xf32> to vector<256x4xbf16>
    %c1_32 = arith.constant 1 : index
    %c0_33 = arith.constant 0 : index
    %c0_34 = arith.constant 0 : index
    %c0_35 = arith.constant 0 : index
    %30 = vector.load %arg2[%c1_32, %c0_33, %c0_34, %c0_35] : memref<3x3x4x32xbf16, #tpu.memory_space<vmem>>, vector<1x1x4x32xbf16>
    %31 = vector.shape_cast %30 : vector<1x1x4x32xbf16> to vector<4x32xbf16>
    %cst_36 = arith.constant dense<0.000000e+00> : vector<256x32xf32>
    %32 = tpu.matmul %29, %31, %cst_36 {dimension_numbers = #tpu.dot_dimension_numbers<[1], [0], [0], [1], [0, 0, 1, 1], [], []>} : vector<256x4xbf16>, vector<4x32xbf16>, vector<256x32xf32> -> vector<256x32xf32>
    %33 = arith.addf %26, %32 : vector<256x32xf32>
    %c1_37 = arith.constant 1 : index
    %c8_38 = arith.constant 8 : index
    %c0_39 = arith.constant 0 : index
    %34 = vector.load %arg8[%c1_37, %c8_38, %c0_39] : memref<18x25x4xf32, #tpu.memory_space<vmem>>, vector<16x16x4xf32>
    %35 = vector.shape_cast %34 : vector<16x16x4xf32> to vector<256x4xf32>
    %36 = arith.truncf %35 : vector<256x4xf32> to vector<256x4xbf16>
    %c1_40 = arith.constant 1 : index
    %c1_41 = arith.constant 1 : index
    %c0_42 = arith.constant 0 : index
    %c0_43 = arith.constant 0 : index
    %37 = vector.load %arg2[%c1_40, %c1_41, %c0_42, %c0_43] : memref<3x3x4x32xbf16, #tpu.memory_space<vmem>>, vector<1x1x4x32xbf16>
    %38 = vector.shape_cast %37 : vector<1x1x4x32xbf16> to vector<4x32xbf16>
    %cst_44 = arith.constant dense<0.000000e+00> : vector<256x32xf32>
    %39 = tpu.matmul %36, %38, %cst_44 {dimension_numbers = #tpu.dot_dimension_numbers<[1], [0], [0], [1], [0, 0, 1, 1], [], []>} : vector<256x4xbf16>, vector<4x32xbf16>, vector<256x32xf32> -> vector<256x32xf32>
    %40 = arith.addf %33, %39 : vector<256x32xf32>
    %c1_45 = arith.constant 1 : index
    %c9_46 = arith.constant 9 : index
    %c0_47 = arith.constant 0 : index
    %41 = vector.load %arg8[%c1_45, %c9_46, %c0_47] : memref<18x25x4xf32, #tpu.memory_space<vmem>>, vector<16x16x4xf32>
    %42 = vector.shape_cast %41 : vector<16x16x4xf32> to vector<256x4xf32>
    %43 = arith.truncf %42 : vector<256x4xf32> to vector<256x4xbf16>
    %c1_48 = arith.constant 1 : index
    %c2_49 = arith.constant 2 : index
    %c0_50 = arith.constant 0 : index
    %c0_51 = arith.constant 0 : index
    %44 = vector.load %arg2[%c1_48, %c2_49, %c0_50, %c0_51] : memref<3x3x4x32xbf16, #tpu.memory_space<vmem>>, vector<1x1x4x32xbf16>
    %45 = vector.shape_cast %44 : vector<1x1x4x32xbf16> to vector<4x32xbf16>
    %cst_52 = arith.constant dense<0.000000e+00> : vector<256x32xf32>
    %46 = tpu.matmul %43, %45, %cst_52 {dimension_numbers = #tpu.dot_dimension_numbers<[1], [0], [0], [1], [0, 0, 1, 1], [], []>} : vector<256x4xbf16>, vector<4x32xbf16>, vector<256x32xf32> -> vector<256x32xf32>
    %47 = arith.addf %40, %46 : vector<256x32xf32>
    %c2_53 = arith.constant 2 : index
    %c7_54 = arith.constant 7 : index
    %c0_55 = arith.constant 0 : index
    %48 = vector.load %arg8[%c2_53, %c7_54, %c0_55] : memref<18x25x4xf32, #tpu.memory_space<vmem>>, vector<16x16x4xf32>
    %49 = vector.shape_cast %48 : vector<16x16x4xf32> to vector<256x4xf32>
    %50 = arith.truncf %49 : vector<256x4xf32> to vector<256x4xbf16>
    %c2_56 = arith.constant 2 : index
    %c0_57 = arith.constant 0 : index
    %c0_58 = arith.constant 0 : index
    %c0_59 = arith.constant 0 : index
    %51 = vector.load %arg2[%c2_56, %c0_57, %c0_58, %c0_59] : memref<3x3x4x32xbf16, #tpu.memory_space<vmem>>, vector<1x1x4x32xbf16>
    %52 = vector.shape_cast %51 : vector<1x1x4x32xbf16> to vector<4x32xbf16>
    %cst_60 = arith.constant dense<0.000000e+00> : vector<256x32xf32>
    %53 = tpu.matmul %50, %52, %cst_60 {dimension_numbers = #tpu.dot_dimension_numbers<[1], [0], [0], [1], [0, 0, 1, 1], [], []>} : vector<256x4xbf16>, vector<4x32xbf16>, vector<256x32xf32> -> vector<256x32xf32>
    %54 = arith.addf %47, %53 : vector<256x32xf32>
    %c2_61 = arith.constant 2 : index
    %c8_62 = arith.constant 8 : index
    %c0_63 = arith.constant 0 : index
    %55 = vector.load %arg8[%c2_61, %c8_62, %c0_63] : memref<18x25x4xf32, #tpu.memory_space<vmem>>, vector<16x16x4xf32>
    %56 = vector.shape_cast %55 : vector<16x16x4xf32> to vector<256x4xf32>
    %57 = arith.truncf %56 : vector<256x4xf32> to vector<256x4xbf16>
    %c2_64 = arith.constant 2 : index
    %c1_65 = arith.constant 1 : index
    %c0_66 = arith.constant 0 : index
    %c0_67 = arith.constant 0 : index
    %58 = vector.load %arg2[%c2_64, %c1_65, %c0_66, %c0_67] : memref<3x3x4x32xbf16, #tpu.memory_space<vmem>>, vector<1x1x4x32xbf16>
    %59 = vector.shape_cast %58 : vector<1x1x4x32xbf16> to vector<4x32xbf16>
    %cst_68 = arith.constant dense<0.000000e+00> : vector<256x32xf32>
    %60 = tpu.matmul %57, %59, %cst_68 {dimension_numbers = #tpu.dot_dimension_numbers<[1], [0], [0], [1], [0, 0, 1, 1], [], []>} : vector<256x4xbf16>, vector<4x32xbf16>, vector<256x32xf32> -> vector<256x32xf32>
    %61 = arith.addf %54, %60 : vector<256x32xf32>
    %c2_69 = arith.constant 2 : index
    %c9_70 = arith.constant 9 : index
    %c0_71 = arith.constant 0 : index
    %62 = vector.load %arg8[%c2_69, %c9_70, %c0_71] : memref<18x25x4xf32, #tpu.memory_space<vmem>>, vector<16x16x4xf32>
    %63 = vector.shape_cast %62 : vector<16x16x4xf32> to vector<256x4xf32>
    %64 = arith.truncf %63 : vector<256x4xf32> to vector<256x4xbf16>
    %c2_72 = arith.constant 2 : index
    %c2_73 = arith.constant 2 : index
    %c0_74 = arith.constant 0 : index
    %c0_75 = arith.constant 0 : index
    %65 = vector.load %arg2[%c2_72, %c2_73, %c0_74, %c0_75] : memref<3x3x4x32xbf16, #tpu.memory_space<vmem>>, vector<1x1x4x32xbf16>
    %66 = vector.shape_cast %65 : vector<1x1x4x32xbf16> to vector<4x32xbf16>
    %cst_76 = arith.constant dense<0.000000e+00> : vector<256x32xf32>
    %67 = tpu.matmul %64, %66, %cst_76 {dimension_numbers = #tpu.dot_dimension_numbers<[1], [0], [0], [1], [0, 0, 1, 1], [], []>} : vector<256x4xbf16>, vector<4x32xbf16>, vector<256x32xf32> -> vector<256x32xf32>
    %68 = arith.addf %61, %67 : vector<256x32xf32>
    %cst_77 = arith.constant 0.000000e+00 : f32
    %69 = vector.broadcast %cst_77 : f32 to vector<256x32xf32>
    %70 = arith.cmpf ogt, %68, %69 : vector<256x32xf32>
    %cst_78 = arith.constant 0.00999999977 : f32
    %71 = vector.broadcast %cst_78 : f32 to vector<256x32xf32>
    %72 = arith.mulf %71, %68 : vector<256x32xf32>
    %73 = arith.select %70, %68, %72 : vector<256x32xi1>, vector<256x32xf32>
    %74 = arith.truncf %73 : vector<256x32xf32> to vector<256x32xbf16>
    %c0_79 = arith.constant 0 : index
    %c0_80 = arith.constant 0 : index
    %75 = vector.load %arg3[%c0_79, %c0_80] : memref<32x64xbf16, #tpu.memory_space<vmem>>, vector<32x64xbf16>
    %cst_81 = arith.constant dense<0.000000e+00> : vector<256x64xf32>
    %76 = tpu.matmul %74, %75, %cst_81 {dimension_numbers = #tpu.dot_dimension_numbers<[1], [0], [0], [1], [0, 0, 1, 1], [], []>} : vector<256x32xbf16>, vector<32x64xbf16>, vector<256x64xf32> -> vector<256x64xf32>
    %cst_82 = arith.constant 0.000000e+00 : f32
    %77 = vector.broadcast %cst_82 : f32 to vector<256x64xf32>
    %78 = arith.cmpf ogt, %76, %77 : vector<256x64xf32>
    %cst_83 = arith.constant 0.00999999977 : f32
    %79 = vector.broadcast %cst_83 : f32 to vector<256x64xf32>
    %80 = arith.mulf %79, %76 : vector<256x64xf32>
    %81 = arith.select %78, %76, %80 : vector<256x64xi1>, vector<256x64xf32>
    %cst_84 = arith.constant 0.000000e+00 : f32
    %82 = vector.broadcast %cst_84 : f32 to vector<18x25x64xf32>
    %c0_85 = arith.constant 0 : index
    %c0_86 = arith.constant 0 : index
    %c0_87 = arith.constant 0 : index
    %83 = vector.load %arg9[%c0_85, %c0_86, %c0_87] : memref<18x25x64xf32, #tpu.memory_space<vmem>>, vector<18x25x64xf32>
    tpu.vector_store %arg9[%c0_85, %c0_86, %c0_87], %82 {strides = array<i32>} : memref<18x25x64xf32, #tpu.memory_space<vmem>>, vector<18x25x64xf32>,
    %84 = vector.shape_cast %81 : vector<256x64xf32> to vector<16x16x64xf32>
    %c1_88 = arith.constant 1 : index
    %c8_89 = arith.constant 8 : index
    %c0_90 = arith.constant 0 : index
    %85 = vector.load %arg9[%c1_88, %c8_89, %c0_90] : memref<18x25x64xf32, #tpu.memory_space<vmem>>, vector<16x16x64xf32>
    tpu.vector_store %arg9[%c1_88, %c8_89, %c0_90], %84 {strides = array<i32>} : memref<18x25x64xf32, #tpu.memory_space<vmem>>, vector<16x16x64xf32>,
    %c0_91 = arith.constant 0 : index
    %c0_92 = arith.constant 0 : index
    %86 = vector.load %arg4[%c0_91, %c0_92] : memref<9x64xf32, #tpu.memory_space<vmem>>, vector<9x64xf32>
    %cst_93 = arith.constant 0.000000e+00 : f32
    %87 = vector.broadcast %cst_93 : f32 to vector<16x16x64xf32>
    %88 = vector.extract_strided_slice %86 {offsets = [0, 0], sizes = [1, 64], strides = [1, 1]} : vector<9x64xf32> to vector<1x64xf32>
    %89 = vector.shape_cast %88 : vector<1x64xf32> to vector<64xf32>
    %90 = vector.shape_cast %89 : vector<64xf32> to vector<1x1x64xf32>
    %c0_94 = arith.constant 0 : index
    %c7_95 = arith.constant 7 : index
    %c0_96 = arith.constant 0 : index
    %91 = vector.load %arg9[%c0_94, %c7_95, %c0_96] : memref<18x25x64xf32, #tpu.memory_space<vmem>>, vector<16x16x64xf32>
    %92 = vector.broadcast %90 : vector<1x1x64xf32> to vector<16x16x64xf32>
    %93 = arith.mulf %91, %92 : vector<16x16x64xf32>
    %94 = arith.addf %87, %93 : vector<16x16x64xf32>
    %95 = vector.extract_strided_slice %86 {offsets = [1, 0], sizes = [1, 64], strides = [1, 1]} : vector<9x64xf32> to vector<1x64xf32>
    %96 = vector.shape_cast %95 : vector<1x64xf32> to vector<64xf32>
    %97 = vector.shape_cast %96 : vector<64xf32> to vector<1x1x64xf32>
    %c0_97 = arith.constant 0 : index
    %c8_98 = arith.constant 8 : index
    %c0_99 = arith.constant 0 : index
    %98 = vector.load %arg9[%c0_97, %c8_98, %c0_99] : memref<18x25x64xf32, #tpu.memory_space<vmem>>, vector<16x16x64xf32>
    %99 = vector.broadcast %97 : vector<1x1x64xf32> to vector<16x16x64xf32>
    %100 = arith.mulf %98, %99 : vector<16x16x64xf32>
    %101 = arith.addf %94, %100 : vector<16x16x64xf32>
    %102 = vector.extract_strided_slice %86 {offsets = [2, 0], sizes = [1, 64], strides = [1, 1]} : vector<9x64xf32> to vector<1x64xf32>
    %103 = vector.shape_cast %102 : vector<1x64xf32> to vector<64xf32>
    %104 = vector.shape_cast %103 : vector<64xf32> to vector<1x1x64xf32>
    %c0_100 = arith.constant 0 : index
    %c9_101 = arith.constant 9 : index
    %c0_102 = arith.constant 0 : index
    %105 = vector.load %arg9[%c0_100, %c9_101, %c0_102] : memref<18x25x64xf32, #tpu.memory_space<vmem>>, vector<16x16x64xf32>
    %106 = vector.broadcast %104 : vector<1x1x64xf32> to vector<16x16x64xf32>
    %107 = arith.mulf %105, %106 : vector<16x16x64xf32>
    %108 = arith.addf %101, %107 : vector<16x16x64xf32>
    %109 = vector.extract_strided_slice %86 {offsets = [3, 0], sizes = [1, 64], strides = [1, 1]} : vector<9x64xf32> to vector<1x64xf32>
    %110 = vector.shape_cast %109 : vector<1x64xf32> to vector<64xf32>
    %111 = vector.shape_cast %110 : vector<64xf32> to vector<1x1x64xf32>
    %c1_103 = arith.constant 1 : index
    %c7_104 = arith.constant 7 : index
    %c0_105 = arith.constant 0 : index
    %112 = vector.load %arg9[%c1_103, %c7_104, %c0_105] : memref<18x25x64xf32, #tpu.memory_space<vmem>>, vector<16x16x64xf32>
    %113 = vector.broadcast %111 : vector<1x1x64xf32> to vector<16x16x64xf32>
    %114 = arith.mulf %112, %113 : vector<16x16x64xf32>
    %115 = arith.addf %108, %114 : vector<16x16x64xf32>
    %116 = vector.extract_strided_slice %86 {offsets = [4, 0], sizes = [1, 64], strides = [1, 1]} : vector<9x64xf32> to vector<1x64xf32>
    %117 = vector.shape_cast %116 : vector<1x64xf32> to vector<64xf32>
    %118 = vector.shape_cast %117 : vector<64xf32> to vector<1x1x64xf32>
    %c1_106 = arith.constant 1 : index
    %c8_107 = arith.constant 8 : index
    %c0_108 = arith.constant 0 : index
    %119 = vector.load %arg9[%c1_106, %c8_107, %c0_108] : memref<18x25x64xf32, #tpu.memory_space<vmem>>, vector<16x16x64xf32>
    %120 = vector.broadcast %118 : vector<1x1x64xf32> to vector<16x16x64xf32>
    %121 = arith.mulf %119, %120 : vector<16x16x64xf32>
    %122 = arith.addf %115, %121 : vector<16x16x64xf32>
    %123 = vector.extract_strided_slice %86 {offsets = [5, 0], sizes = [1, 64], strides = [1, 1]} : vector<9x64xf32> to vector<1x64xf32>
    %124 = vector.shape_cast %123 : vector<1x64xf32> to vector<64xf32>
    %125 = vector.shape_cast %124 : vector<64xf32> to vector<1x1x64xf32>
    %c1_109 = arith.constant 1 : index
    %c9_110 = arith.constant 9 : index
    %c0_111 = arith.constant 0 : index
    %126 = vector.load %arg9[%c1_109, %c9_110, %c0_111] : memref<18x25x64xf32, #tpu.memory_space<vmem>>, vector<16x16x64xf32>
    %127 = vector.broadcast %125 : vector<1x1x64xf32> to vector<16x16x64xf32>
    %128 = arith.mulf %126, %127 : vector<16x16x64xf32>
    %129 = arith.addf %122, %128 : vector<16x16x64xf32>
    %130 = vector.extract_strided_slice %86 {offsets = [6, 0], sizes = [1, 64], strides = [1, 1]} : vector<9x64xf32> to vector<1x64xf32>
    %131 = vector.shape_cast %130 : vector<1x64xf32> to vector<64xf32>
    %132 = vector.shape_cast %131 : vector<64xf32> to vector<1x1x64xf32>
    %c2_112 = arith.constant 2 : index
    %c7_113 = arith.constant 7 : index
    %c0_114 = arith.constant 0 : index
    %133 = vector.load %arg9[%c2_112, %c7_113, %c0_114] : memref<18x25x64xf32, #tpu.memory_space<vmem>>, vector<16x16x64xf32>
    %134 = vector.broadcast %132 : vector<1x1x64xf32> to vector<16x16x64xf32>
    %135 = arith.mulf %133, %134 : vector<16x16x64xf32>
    %136 = arith.addf %129, %135 : vector<16x16x64xf32>
    %137 = vector.extract_strided_slice %86 {offsets = [7, 0], sizes = [1, 64], strides = [1, 1]} : vector<9x64xf32> to vector<1x64xf32>
    %138 = vector.shape_cast %137 : vector<1x64xf32> to vector<64xf32>
    %139 = vector.shape_cast %138 : vector<64xf32> to vector<1x1x64xf32>
    %c2_115 = arith.constant 2 : index
    %c8_116 = arith.constant 8 : index
    %c0_117 = arith.constant 0 : index
    %140 = vector.load %arg9[%c2_115, %c8_116, %c0_117] : memref<18x25x64xf32, #tpu.memory_space<vmem>>, vector<16x16x64xf32>
    %141 = vector.broadcast %139 : vector<1x1x64xf32> to vector<16x16x64xf32>
    %142 = arith.mulf %140, %141 : vector<16x16x64xf32>
    %143 = arith.addf %136, %142 : vector<16x16x64xf32>
    %144 = vector.extract_strided_slice %86 {offsets = [8, 0], sizes = [1, 64], strides = [1, 1]} : vector<9x64xf32> to vector<1x64xf32>
    %145 = vector.shape_cast %144 : vector<1x64xf32> to vector<64xf32>
    %146 = vector.shape_cast %145 : vector<64xf32> to vector<1x1x64xf32>
    %c2_118 = arith.constant 2 : index
    %c9_119 = arith.constant 9 : index
    %c0_120 = arith.constant 0 : index
    %147 = vector.load %arg9[%c2_118, %c9_119, %c0_120] : memref<18x25x64xf32, #tpu.memory_space<vmem>>, vector<16x16x64xf32>
    %148 = vector.broadcast %146 : vector<1x1x64xf32> to vector<16x16x64xf32>
    %149 = arith.mulf %147, %148 : vector<16x16x64xf32>
    %150 = arith.addf %143, %149 : vector<16x16x64xf32>
    %cst_121 = arith.constant 0.000000e+00 : f32
    %151 = vector.broadcast %cst_121 : f32 to vector<16x16x64xf32>
    %152 = arith.cmpf ogt, %150, %151 : vector<16x16x64xf32>
    %cst_122 = arith.constant 0.00999999977 : f32
    %153 = vector.broadcast %cst_122 : f32 to vector<16x16x64xf32>
    %154 = arith.mulf %153, %150 : vector<16x16x64xf32>
    %155 = arith.select %152, %150, %154 : vector<16x16x64xi1>, vector<16x16x64xf32>
    %156 = vector.shape_cast %155 : vector<16x16x64xf32> to vector<256x64xf32>
    %157 = arith.truncf %156 : vector<256x64xf32> to vector<256x64xbf16>
    %c0_123 = arith.constant 0 : index
    %c0_124 = arith.constant 0 : index
    %158 = vector.load %arg5[%c0_123, %c0_124] : memref<64x8xbf16, #tpu.memory_space<vmem>>, vector<64x8xbf16>
    %cst_125 = arith.constant dense<0.000000e+00> : vector<256x8xf32>
    %159 = tpu.matmul %157, %158, %cst_125 {dimension_numbers = #tpu.dot_dimension_numbers<[1], [0], [0], [1], [0, 0, 1, 1], [], []>} : vector<256x64xbf16>, vector<64x8xbf16>, vector<256x8xf32> -> vector<256x8xf32>
    %160 = vector.shape_cast %1 : vector<16x16x4xf32> to vector<256x4xf32>
    %161 = arith.truncf %160 : vector<256x4xf32> to vector<256x4xbf16>
    %c0_126 = arith.constant 0 : index
    %c0_127 = arith.constant 0 : index
    %162 = vector.load %arg6[%c0_126, %c0_127] : memref<4x8xbf16, #tpu.memory_space<vmem>>, vector<4x8xbf16>
    %cst_128 = arith.constant dense<0.000000e+00> : vector<256x8xf32>
    %163 = tpu.matmul %161, %162, %cst_128 {dimension_numbers = #tpu.dot_dimension_numbers<[1], [0], [0], [1], [0, 0, 1, 1], [], []>} : vector<256x4xbf16>, vector<4x8xbf16>, vector<256x8xf32> -> vector<256x8xf32>
    %164 = arith.addf %159, %163 : vector<256x8xf32>
    %165 = vector.shape_cast %164 : vector<256x8xf32> to vector<16x16x8xf32>
    %c0_129 = arith.constant 0 : index
    %c0_130 = arith.constant 0 : index
    %c0_131 = arith.constant 0 : index
    %c0_132 = arith.constant 0 : index
    %166 = vector.load %arg7[%c0_129, %c0_130, %c0_131, %c0_132] : memref<1x16x16x8xf32, #tpu.memory_space<vmem>>, vector<1x16x16x8xf32>
    %167 = vector.shape_cast %166 : vector<1x16x16x8xf32> to vector<16x16x8xf32>
    %168 = vector.shape_cast %165 : vector<16x16x8xf32> to vector<1x16x16x8xf32>
    tpu.vector_store %arg7[%c0_129, %c0_130, %c0_131, %c0_132], %168 {strides = array<i32>} : memref<1x16x16x8xf32, #tpu.memory_space<vmem>>, vector<1x16x16x8xf32>,
    return
  }
  func.func @transform_0(%arg0: i32) -> (i32, i32, i32, i32) {
    %c0_i32 = arith.constant 0 : i32
    %c0_i32_0 = arith.constant 0 : i32
    %c0_i32_1 = arith.constant 0 : i32
    %c0_i32_2 = arith.constant 0 : i32
    return %arg0, %c0_i32, %c0_i32_0, %c0_i32_1 : i32, i32, i32, i32
  }
  func.func @transform_1(%arg0: i32) -> (i32, i32, i32, i32) {
    %c0_i32 = arith.constant 0 : i32
    %c0_i32_0 = arith.constant 0 : i32
    %c0_i32_1 = arith.constant 0 : i32
    %c0_i32_2 = arith.constant 0 : i32
    %c0_i32_3 = arith.constant 0 : i32
    return %c0_i32, %c0_i32_0, %c0_i32_1, %c0_i32_2 : i32, i32, i32, i32
  }
  func.func @transform_2(%arg0: i32) -> (i32, i32) {
    %c0_i32 = arith.constant 0 : i32
    %c0_i32_0 = arith.constant 0 : i32
    %c0_i32_1 = arith.constant 0 : i32
    return %c0_i32, %c0_i32_0 : i32, i32
  }
  func.func @transform_3(%arg0: i32) -> (i32, i32) {
    %c0_i32 = arith.constant 0 : i32
    %c0_i32_0 = arith.constant 0 : i32
    %c0_i32_1 = arith.constant 0 : i32
    return %c0_i32, %c0_i32_0 : i32, i32
  }
  func.func @transform_4(%arg0: i32) -> (i32, i32) {
    %c0_i32 = arith.constant 0 : i32
    %c0_i32_0 = arith.constant 0 : i32
    %c0_i32_1 = arith.constant 0 : i32
    return %c0_i32, %c0_i32_0 : i32, i32
  }
  func.func @transform_5(%arg0: i32) -> (i32, i32) {
    %c0_i32 = arith.constant 0 : i32
    %c0_i32_0 = arith.constant 0 : i32
    %c0_i32_1 = arith.constant 0 : i32
    return %c0_i32, %c0_i32_0 : i32, i32
  }
  func.func @transform_6(%arg0: i32) -> (i32, i32, i32, i32) {
    %c0_i32 = arith.constant 0 : i32
    %c0_i32_0 = arith.constant 0 : i32
    %c0_i32_1 = arith.constant 0 : i32
    %c0_i32_2 = arith.constant 0 : i32
    return %arg0, %c0_i32, %c0_i32_0, %c0_i32_1 : i32, i32, i32, i32
  }
}

</mosaic_0001>

<bundles_post_ra>
// kernel: tpu_custom_call.1
= control target key start
LH: loop header
LB: loop body
LE: loop exit
PB: predicated region body
PF: predicated region fallthrough
CT: control target
= control target key end

     0   :  { %s6291_s21 = smov 0   ;;  %s8196_s0 = inlined_call_operand.vmem [shape: f32[2,16,16,4], index: 0, kind: input, shape index: {}]   ;;  %s8197_s1 = inlined_call_operand.vmem [shape: bf16[3,3,4,32], index: 1, kind: input, shape index: {}]   ;;  %s8198_s2 = inlined_call_operand.vmem [shape: bf16[32,64], index: 2, kind: input, shape index: {}]   ;;  %s8199_s3 = inlined_call_operand.vmem [shape: f32[9,64], index: 3, kind: input, shape index: {}]   ;;  %s8200_s4 = inlined_call_operand.vmem [shape: bf16[64,8], index: 4, kind: input, shape index: {}]   ;;  %s8201_s5 = inlined_call_operand.vmem [shape: bf16[4,8], index: 5, kind: input, shape index: {}]   ;;  %s8202_s6 = inlined_call_operand.vmem [shape: f32[2,16,16,8], index: 6, kind: output, shape index: {}]  }
   0x1 LB: > { %s5089_s22 = sadd.s32 4294967295, %s6253_s21   ;;  %p5093_p0 = scmp.ge.s32.totalorder %s6253_s21, 1  ;;  %s6253_s21 = sphi %s6291_s21, %s16_s21  }
   0x2   : > { %p212_p1 = scmp.lt.s32.totalorder %s6253_s21, 3 }
   0x4   : > { %p213_p2 = pnand %p5093_p0, %p212_p1 }
   0x6   : > { %216 = sbr.rel (%p213_p2) target bundleno = 1227 (0x4cb), region = 44 }
   0xd   : > { %vm539_vm0 = vcmask 1041408   ;;  %v5148_v0 = vld [vmem:[%s8197_s1 + $0x6] sm:$0x3]  ;;  %p6304_p3 = scmp.lt.s32.totalorder %s5089_s22, 1  ;;  %vm285_vm1 = vcmask 31744   ;;  %v8203_v2 = vmov 0.0  }
   0xe   : > { %6224 = vmatprep.subr.msk.bf16.mxu0 %vm539_vm0, %v5148_v0  ;;  %v1309_v1 = vsel %vm539_vm0, %v5148_v0, 0  ;;  %291 = vst.msk [vmem:[#allocation2 + $0x20] sm:$0xff] %vm285_vm1, %v8203_v2  ;;  %292 = vst.msk [vmem:[#allocation2 + $0x28] sm:$0xff] %vm285_vm1, %v8203_v2  ;;  %v6421_v3 = vld [vmem:[%s8197_s1 + $0x8] sm:$0x3]  ;;  %vm289_vm2 = vcmask 24576  }
   0xf   : > { %293 = vst.msk [vmem:[#allocation2 + $0x30] sm:$0xff] %vm285_vm1, %v8203_v2  ;;  %286 = vst.msk [vmem:[#allocation2] sm:$0xff] %vm285_vm1, %v8203_v2  ;;  %v5098_v4 = vld [vmem:[%s8197_s1 + $0x2] sm:$0x3]  ;;  %5620 = vmatpush3.bf16.msra.mxu0 %v1309_v1  ;;  %s8268_s22 = smov (!%p6304_p3, %s5089_s22), 1  ;;  %v1603_v38 = vsel %vm539_vm0, %v6421_v3, 0 }
  0x10   : > { %287 = vst.msk [vmem:[#allocation2 + $0x8] sm:$0xff] %vm285_vm1, %v8203_v2  ;;  %288 = vst.msk [vmem:[#allocation2 + $0x10] sm:$0xff] %vm285_vm1, %v8203_v2  ;;  %6221 = vmatprep.subr.msk.bf16.mxu1 %vm539_vm0, %v5098_v4  ;;  %v541_v5 = vsel %vm539_vm0, %v5098_v4, 0  ;;  %6225 = vmatprep.subr.msk.bf16.mxu0 %vm539_vm0, %v6421_v3  ;;  %s5307_s30 = sshll.u32 %s8268_s22, 8  ;;  %v6613_v40 = vld [vmem:[%s8197_s1 + $0xa] sm:$0x3] }
  0x11   : > { %295 = vst.msk [vmem:[#allocation2 + $0x40] sm:$0xff] %vm285_vm1, %v8203_v2  ;;  %296 = vst.msk [vmem:[#allocation2 + $0x48] sm:$0xff] %vm285_vm1, %v8203_v2  ;;  %5518 = vmatpush3.bf16.msra.mxu1 %v541_v5  ;;  %s6442_s9 = scalar_lea.vmem %s8196_s0, %s5307_s30  ;;  %vm3103_vm7 = vcmask 261120   ;;  %s8127_s25 = scalar_lea.vmem %s8202_s6, %s5307_s30 }
  0x12   : > { %297 = vst.msk [vmem:[#allocation2 + $0x50] sm:$0xff] %vm285_vm1, %v8203_v2  ;;  %299 = vst.msk [vmem:[#allocation2 + $0x60] sm:$0xff] %vm285_vm1, %v8203_v2  ;;  %v6445_v6 = vld [vmem:[%s6442_s9] sm:$0xff]  ;;  %v6448_v7 = vld [vmem:[%s6442_s9 + $0x8] sm:$0xff] }
  0x13   : > { %300 = vst.msk [vmem:[#allocation2 + $0x68] sm:$0xff] %vm285_vm1, %v8203_v2  ;;  %301 = vst.msk [vmem:[#allocation2 + $0x70] sm:$0xff] %vm285_vm1, %v8203_v2  ;;  %v6451_v8 = vld [vmem:[%s6442_s9 + $0x10] sm:$0xff]  ;;  %v6458_v9 = vld [vmem:[%s6442_s9 + $0x18] sm:$0xff] }
  0x14   : > { %303 = vst.msk [vmem:[#allocation2 + $0x80] sm:$0xff] %vm285_vm1, %v8203_v2  ;;  %304 = vst.msk [vmem:[#allocation2 + $0x88] sm:$0xff] %vm285_vm1, %v8203_v2  ;;  %v6463_v10 = vld [vmem:[%s6442_s9 + $0x20] sm:$0xff]  ;;  %v6466_v11 = vld [vmem:[%s6442_s9 + $0x28] sm:$0xff] }
  0x15   : > { %305 = vst.msk [vmem:[#allocation2 + $0x90] sm:$0xff] %vm285_vm1, %v8203_v2  ;;  %307 = vst.msk [vmem:[#allocation2 + $0xa0] sm:$0xff] %vm285_vm1, %v8203_v2  ;;  %v6511_v12 = vld [vmem:[%s6442_s9 + $0x30] sm:$0xff]  ;;  %v6514_v13 = vld [vmem:[%s6442_s9 + $0x38] sm:$0xff] }
  0x16   : > { %308 = vst.msk [vmem:[#allocation2 + $0xa8] sm:$0xff] %vm285_vm1, %v8203_v2  ;;  %309 = vst.msk [vmem:[#allocation2 + $0xb0] sm:$0xff] %vm285_vm1, %v8203_v2  ;;  %v6517_v14 = vld [vmem:[%s6442_s9 + $0x40] sm:$0xff]  ;;  %v6524_v15 = vld [vmem:[%s6442_s9 + $0x48] sm:$0xff] }
  0x17   : > { %311 = vst.msk [vmem:[#allocation2 + $0xc0] sm:$0xff] %vm285_vm1, %v8203_v2  ;;  %312 = vst.msk [vmem:[#allocation2 + $0xc8] sm:$0xff] %vm285_vm1, %v8203_v2  ;;  %v6529_v16 = vld [vmem:[%s6442_s9 + $0x50] sm:$0xff]  ;;  %v6532_v17 = vld [vmem:[%s6442_s9 + $0x58] sm:$0xff] }
  0x18   : > { %313 = vst.msk [vmem:[#allocation2 + $0xd0] sm:$0xff] %vm285_vm1, %v8203_v2  ;;  %315 = vst.msk [vmem:[#allocation2 + $0xe0] sm:$0xff] %vm285_vm1, %v8203_v2  ;;  %v6541_v18 = vld [vmem:[%s6442_s9 + $0x60] sm:$0xff]  ;;  %v6544_v19 = vld [vmem:[%s6442_s9 + $0x68] sm:$0xff] }
  0x19   : > { %316 = vst.msk [vmem:[#allocation2 + $0xe8] sm:$0xff] %vm285_vm1, %v8203_v2  ;;  %317 = vst.msk [vmem:[#allocation2 + $0xf0] sm:$0xff] %vm285_vm1, %v8203_v2  ;;  %v6547_v20 = vld [vmem:[%s6442_s9 + $0x70] sm:$0xff]  ;;  %v6554_v21 = vld [vmem:[%s6442_s9 + $0x78] sm:$0xff] }
  0x1a   : > { %319 = vst.msk [vmem:[#allocation2 + $0x100] sm:$0xff] %vm285_vm1, %v8203_v2  ;;  %320 = vst.msk [vmem:[#allocation2 + $0x108] sm:$0xff] %vm285_vm1, %v8203_v2  ;;  %v6559_v22 = vld [vmem:[%s6442_s9 + $0x80] sm:$0xff]  ;;  %v6562_v23 = vld [vmem:[%s6442_s9 + $0x88] sm:$0xff] }
  0x1b   : > { %321 = vst.msk [vmem:[#allocation2 + $0x110] sm:$0xff] %vm285_vm1, %v8203_v2  ;;  %323 = vst.msk [vmem:[#allocation2 + $0x120] sm:$0xff] %vm285_vm1, %v8203_v2  ;;  %v6571_v24 = vld [vmem:[%s6442_s9 + $0x90] sm:$0xff]  ;;  %v6574_v25 = vld [vmem:[%s6442_s9 + $0x98] sm:$0xff] }
  0x1c   : > { %324 = vst.msk [vmem:[#allocation2 + $0x128] sm:$0xff] %vm285_vm1, %v8203_v2  ;;  %325 = vst.msk [vmem:[#allocation2 + $0x130] sm:$0xff] %vm285_vm1, %v8203_v2  ;;  %v6577_v26 = vld [vmem:[%s6442_s9 + $0xa0] sm:$0xff]  ;;  %v6584_v27 = vld [vmem:[%s6442_s9 + $0xa8] sm:$0xff] }
  0x1d   : > { %327 = vst.msk [vmem:[#allocation2 + $0x140] sm:$0xff] %vm285_vm1, %v8203_v2  ;;  %328 = vst.msk [vmem:[#allocation2 + $0x148] sm:$0xff] %vm285_vm1, %v8203_v2  ;;  %v6589_v28 = vld [vmem:[%s6442_s9 + $0xb0] sm:$0xff]  ;;  %v6592_v29 = vld [vmem:[%s6442_s9 + $0xb8] sm:$0xff] }
  0x1e   : > { %329 = vst.msk [vmem:[#allocation2 + $0x150] sm:$0xff] %vm285_vm1, %v8203_v2  ;;  %331 = vst.msk [vmem:[#allocation2 + $0x160] sm:$0xff] %vm285_vm1, %v8203_v2  ;;  %v6624_v46 = vld [vmem:[%s6442_s9 + $0xc0] sm:$0xff]  ;;  %v6627_v47 = vld [vmem:[%s6442_s9 + $0xc8] sm:$0xff] }
  0x1f   : > { %332 = vst.msk [vmem:[#allocation2 + $0x168] sm:$0xff] %vm285_vm1, %v8203_v2  ;;  %333 = vst.msk [vmem:[#allocation2 + $0x170] sm:$0xff] %vm285_vm1, %v8203_v2  ;;  %v6630_v48 = vld [vmem:[%s6442_s9 + $0xd0] sm:$0xff]  ;;  %v6639_v50 = vld [vmem:[%s6442_s9 + $0xd8] sm:$0xff] }
  0x20   : > { %335 = vst.msk [vmem:[#allocation2 + $0x180] sm:$0xff] %vm285_vm1, %v8203_v2  ;;  %336 = vst.msk [vmem:[#allocation2 + $0x188] sm:$0xff] %vm285_vm1, %v8203_v2  ;;  %v6644_v51 = vld [vmem:[%s6442_s9 + $0xe0] sm:$0xff]  ;;  %v6647_v52 = vld [vmem:[%s6442_s9 + $0xe8] sm:$0xff] }
  0x21   : > { %337 = vst.msk [vmem:[#allocation2 + $0x190] sm:$0xff] %vm285_vm1, %v8203_v2  ;;  %339 = vst.msk [vmem:[#allocation2 + $0x1a0] sm:$0xff] %vm285_vm1, %v8203_v2  ;;  %v6656_v53 = vld [vmem:[%s6442_s9 + $0xf0] sm:$0xff]  ;;  %v6659_v54 = vld [vmem:[%s6442_s9 + $0xf8] sm:$0xff] }
  0x22   : > { %340 = vst.msk [vmem:[#allocation2 + $0x1a8] sm:$0xff] %vm285_vm1, %v8203_v2  ;;  %341 = vst.msk [vmem:[#allocation2 + $0x1b0] sm:$0xff] %vm285_vm1, %v8203_v2  ;;  %v441_v55 = vld [vmem:[#allocation2 + $0x8] sm:$0xff]  ;;  %v442_v56 = vld [vmem:[#allocation2 + $0x10] sm:$0xff] }
  0x23   : > { %343 = vst.msk [vmem:[#allocation2 + $0x1c0] sm:$0xff] %vm285_vm1, %v8203_v2  ;;  %344 = vst.msk [vmem:[#allocation2 + $0x1c8] sm:$0xff] %vm285_vm1, %v8203_v2  ;;  %v473_v59 = vpack.c.bf16 %v442_v56, %v441_v55 }
  0x24   : > { %345 = vst.msk [vmem:[#allocation2 + $0x1d0] sm:$0xff] %vm285_vm1, %v8203_v2  ;;  %347 = vst.msk [vmem:[#allocation2 + $0x1e0] sm:$0xff] %vm285_vm1, %v8203_v2 }
  0x25   : > { %348 = vst.msk [vmem:[#allocation2 + $0x1e8] sm:$0xff] %vm285_vm1, %v8203_v2  ;;  %349 = vst.msk [vmem:[#allocation2 + $0x1f0] sm:$0xff] %vm285_vm1, %v8203_v2  ;;  %5519 = vmatprep.mubr.msk.bf16.mxu1 %vm285_vm1, %v473_v59 }
  0x26   : > { %351 = vst.msk [vmem:[#allocation2 + $0x200] sm:$0xff] %vm285_vm1, %v8203_v2  ;;  %352 = vst.msk [vmem:[#allocation2 + $0x208] sm:$0xff] %vm285_vm1, %v8203_v2 }
  0x27   : > { %353 = vst.msk [vmem:[#allocation2 + $0x210] sm:$0xff] %vm285_vm1, %v8203_v2  ;;  %355 = vst.msk [vmem:[#allocation2 + $0x220] sm:$0xff] %vm285_vm1, %v8203_v2 }
  0x28   : > { %356 = vst.msk [vmem:[#allocation2 + $0x228] sm:$0xff] %vm285_vm1, %v8203_v2  ;;  %357 = vst.msk [vmem:[#allocation2 + $0x230] sm:$0xff] %vm285_vm1, %v8203_v2 }
  0x29   : > { %360 = vst.msk [vmem:[#allocation2 + $0x28] sm:$0xff] %vm285_vm1, %v6445_v6  ;;  %361 = vst.msk [vmem:[#allocation2 + $0x30] sm:$0xff] %vm285_vm1, %v6448_v7 }
  0x2a   : > { %362 = vst.msk [vmem:[#allocation2 + $0x48] sm:$0xff] %vm285_vm1, %v6451_v8  ;;  %363 = vst.msk [vmem:[#allocation2 + $0x50] sm:$0xff] %vm285_vm1, %v6458_v9 }
  0x2b   : > { %294 = vst.msk [vmem:[#allocation2 + $0x38] sm:$0x1] %vm289_vm2, %v8203_v2  ;;  %290 = vst.msk [vmem:[#allocation2 + $0x18] sm:$0x1] %vm289_vm2, %v8203_v2 }
  0x2c   : > { %298 = vst.msk [vmem:[#allocation2 + $0x58] sm:$0x1] %vm289_vm2, %v8203_v2  ;;  %302 = vst.msk [vmem:[#allocation2 + $0x78] sm:$0x1] %vm289_vm2, %v8203_v2 }
  0x2d   : > { %306 = vst.msk [vmem:[#allocation2 + $0x98] sm:$0x1] %vm289_vm2, %v8203_v2  ;;  %310 = vst.msk [vmem:[#allocation2 + $0xb8] sm:$0x1] %vm289_vm2, %v8203_v2 }
  0x2e   : > { %314 = vst.msk [vmem:[#allocation2 + $0xd8] sm:$0x1] %vm289_vm2, %v8203_v2  ;;  %318 = vst.msk [vmem:[#allocation2 + $0xf8] sm:$0x1] %vm289_vm2, %v8203_v2 }
  0x2f   : > { %322 = vst.msk [vmem:[#allocation2 + $0x118] sm:$0x1] %vm289_vm2, %v8203_v2  ;;  %326 = vst.msk [vmem:[#allocation2 + $0x138] sm:$0x1] %vm289_vm2, %v8203_v2 }
  0x30   : > { %330 = vst.msk [vmem:[#allocation2 + $0x158] sm:$0x1] %vm289_vm2, %v8203_v2  ;;  %334 = vst.msk [vmem:[#allocation2 + $0x178] sm:$0x1] %vm289_vm2, %v8203_v2  ;;  %v1210_v30 = vld [vmem:[#allocation2 + $0x27] sm:$0xff]  ;;  %v1211_v31 = vld [vmem:[#allocation2 + $0x2f] sm:$0xff] }
  0x31   : > { %338 = vst.msk [vmem:[#allocation2 + $0x198] sm:$0x1] %vm289_vm2, %v8203_v2  ;;  %342 = vst.msk [vmem:[#allocation2 + $0x1b8] sm:$0x1] %vm289_vm2, %v8203_v2  ;;  %v1212_v32 = vld [vmem:[#allocation2 + $0x47] sm:$0xff]  ;;  %v6600_v33 = vpack.c.bf16 %v1211_v31, %v1210_v30  ;;  %v1213_v34 = vld [vmem:[#allocation2 + $0x4f] sm:$0xff] }
  0x32   : > { %346 = vst.msk [vmem:[#allocation2 + $0x1d8] sm:$0x1] %vm289_vm2, %v8203_v2  ;;  %350 = vst.msk [vmem:[#allocation2 + $0x1f8] sm:$0x1] %vm289_vm2, %v8203_v2  ;;  %v6602_v37 = vpack.c.bf16 %v1213_v34, %v1212_v32  ;;  %v443_v57 = vld [vmem:[#allocation2 + $0x28] sm:$0xff]  ;;  %v444_v58 = vld [vmem:[#allocation2 + $0x30] sm:$0xff] }
  0x33   : > { %354 = vst.msk [vmem:[#allocation2 + $0x218] sm:$0x1] %vm289_vm2, %v8203_v2  ;;  %358 = vst.msk [vmem:[#allocation2 + $0x238] sm:$0x1] %vm289_vm2, %v8203_v2  ;;  %5621 = vmatprep.mubr.msk.bf16.mxu0 %vm285_vm1, %v6600_v33  ;;  %v6667_v60 = vpack.c.bf16 %v444_v58, %v443_v57  ;;  %v1506_v61 = vld [vmem:[#allocation2 + $0x48] sm:$0xff]  ;;  %v1507_v62 = vld [vmem:[#allocation2 + $0x50] sm:$0xff] }
  0x34   : > { %364 = vst.msk [vmem:[#allocation2 + $0x68] sm:$0xff] %vm285_vm1, %v6463_v10  ;;  %365 = vst.msk [vmem:[#allocation2 + $0x70] sm:$0xff] %vm285_vm1, %v6466_v11  ;;  %5622 = vmatmul.mubr.msk.bf16.vlgmr.msra.gmra.mrb[0].mxu0 %vm285_vm1, %v6602_v37  ;;  %v6672_v4 = vpack.c.bf16 %v1507_v62, %v1506_v61  ;;  %v440_v58 = vld [vmem:[%s8197_s1] sm:$0x3] }
  0x35   : > { %366 = vst.msk [vmem:[#allocation2 + $0x88] sm:$0xff] %vm285_vm1, %v6511_v12  ;;  %367 = vst.msk [vmem:[#allocation2 + $0x90] sm:$0xff] %vm285_vm1, %v6514_v13  ;;  %5654 = vmatpush3.bf16.msra.mxu0 %v1603_v38  ;;  %5520 = vmatmul.mubr.msk.bf16.vlgmr.msra.gmra.mrb[0].mxu1 %vm285_vm1, %v6667_v60  ;;  %v753_v61 = vsel %vm539_vm0, %v440_v58, 0 }
  0x36   : > { %368 = vst.msk [vmem:[#allocation2 + $0xa8] sm:$0xff] %vm285_vm1, %v6517_v14  ;;  %369 = vst.msk [vmem:[#allocation2 + $0xb0] sm:$0xff] %vm285_vm1, %v6524_v15  ;;  %6226 = vmatprep.subr.msk.bf16.mxu0 %vm539_vm0, %v6613_v40  ;;  %5523 = vmatprep.mubr.msk.bf16.mxu1 %vm285_vm1, %v6672_v4 }
  0x37   : > { %370 = vst.msk [vmem:[#allocation2 + $0xc8] sm:$0xff] %vm285_vm1, %v6529_v16  ;;  %371 = vst.msk [vmem:[#allocation2 + $0xd0] sm:$0xff] %vm285_vm1, %v6532_v17  ;;  %6222 = vmatprep.subr.msk.bf16.mxu1 %vm539_vm0, %v440_v58 }
  0x38   : > { %8226 = vst [vmem:[#allocation4_spill] sm:$0xff] %v6541_v18  ;;  %8227 = vst [vmem:[#allocation5_spill] sm:$0xff] %v6544_v19  ;;  %5552 = vmatpush3.bf16.msra.mxu1 %v753_v61 }
  0x39   : > { %8228 = vst [vmem:[#allocation6_spill] sm:$0xff] %v6547_v20  ;;  %372 = vst.msk [vmem:[#allocation2 + $0xe8] sm:$0xff] %vm285_vm1, %v6541_v18 }
  0x3a   : > { %373 = vst.msk [vmem:[#allocation2 + $0xf0] sm:$0xff] %vm285_vm1, %v6544_v19  ;;  %8229 = vst [vmem:[#allocation7_spill] sm:$0xff] %v6554_v21 }
  0x3b   : > { %374 = vst.msk [vmem:[#allocation2 + $0x108] sm:$0xff] %vm285_vm1, %v6547_v20  ;;  %8230 = vst [vmem:[#allocation8_spill] sm:$0xff] %v6559_v22  ;;  %v1214_v35 = vld [vmem:[#allocation2 + $0x67] sm:$0xff]  ;;  %v1215_v36 = vld [vmem:[#allocation2 + $0x6f] sm:$0xff] }
  0x3c   : > { %8231 = vst [vmem:[#allocation9_spill] sm:$0xff] %v6562_v23  ;;  %375 = vst.msk [vmem:[#allocation2 + $0x110] sm:$0xff] %vm285_vm1, %v6554_v21  ;;  %v6606_v39 = vpack.c.bf16 %v1215_v36, %v1214_v35  ;;  %v1216_v41 = vld [vmem:[#allocation2 + $0x87] sm:$0xff]  ;;  %v1217_v42 = vld [vmem:[#allocation2 + $0x8f] sm:$0xff] }
  0x3d   : > { %376 = vst.msk [vmem:[#allocation2 + $0x128] sm:$0xff] %vm285_vm1, %v6559_v22  ;;  %377 = vst.msk [vmem:[#allocation2 + $0x130] sm:$0xff] %vm285_vm1, %v6562_v23  ;;  %v1218_v43 = vld [vmem:[#allocation2 + $0xa7] sm:$0xff]  ;;  %v1219_v44 = vld [vmem:[#allocation2 + $0xaf] sm:$0xff]  ;;  %v6621_v45 = vpack.c.bf16 %v1217_v42, %v1216_v41 }
  0x3e   : > { %8232 = vst [vmem:[#allocation10_spill] sm:$0xff] %v6571_v24  ;;  %8233 = vst [vmem:[#allocation11_spill] sm:$0xff] %v6574_v25  ;;  %5625 = vmatprep.mubr.msk.bf16.mxu0 %vm285_vm1, %v6606_v39  ;;  %v6632_v49 = vpack.c.bf16 %v1219_v44, %v1218_v43  ;;  %v1220_v63 = vld [vmem:[#allocation2 + $0xc7] sm:$0xff]  ;;  %v1221_v0 = vld [vmem:[#allocation2 + $0xcf] sm:$0xff] }
  0x3f   : > { %8234 = vst [vmem:[#allocation12_spill] sm:$0xff] %v6577_v26  ;;  %378 = vst.msk [vmem:[#allocation2 + $0x148] sm:$0xff] %vm285_vm1, %v6571_v24  ;;  %5626 = vmatmul.mubr.msk.bf16.gmra.mrb[4].mxu0 %vm285_vm1, %v6621_v45  ;;  %v6676_v5 = vpack.c.bf16 %v1221_v0, %v1220_v63  ;;  %v447_v30 = vld [vmem:[#allocation2 + $0x68] sm:$0xff]  ;;  %v448_v31 = vld [vmem:[#allocation2 + $0x70] sm:$0xff] }
  0x40   : > { %379 = vst.msk [vmem:[#allocation2 + $0x150] sm:$0xff] %vm285_vm1, %v6574_v25  ;;  %8235 = vst [vmem:[#allocation13_spill] sm:$0xff] %v6584_v27  ;;  %5629 = vmatprep.mubr.msk.bf16.mxu0 %vm285_vm1, %v6632_v49  ;;  %v1222_v1 = vld [vmem:[#allocation2 + $0xe7] sm:$0xff]  ;;  %v6682_v34 = vpack.c.bf16 %v448_v31, %v447_v30  ;;  %v1511_v36 = vld [vmem:[#allocation2 + $0x90] sm:$0xff] }
  0x41   : > { %380 = vst.msk [vmem:[#allocation2 + $0x168] sm:$0xff] %vm285_vm1, %v6577_v26  ;;  %8236 = vst [vmem:[#allocation14_spill] sm:$0xff] %v6589_v28  ;;  %v1223_v3 = vld [vmem:[#allocation2 + $0xef] sm:$0xff] }
  0x42   : > { %8237 = vst [vmem:[#allocation15_spill] sm:$0xff] %v6592_v29  ;;  %381 = vst.msk [vmem:[#allocation2 + $0x170] sm:$0xff] %vm285_vm1, %v6584_v27  ;;  %v6680_v32 = vpack.c.bf16 %v1223_v3, %v1222_v1  ;;  %v1510_v35 = vld [vmem:[#allocation2 + $0x88] sm:$0xff]  ;;  %5524 = vmatmul.mubr.msk.bf16.gmra.mrb[4].mxu1 %vm285_vm1, %v6682_v34  ;;  %v452_v57 = vld [vmem:[#allocation2 + $0xb0] sm:$0xff] }
  0x43   : > { %382 = vst.msk [vmem:[#allocation2 + $0x188] sm:$0xff] %vm285_vm1, %v6589_v28  ;;  %383 = vst.msk [vmem:[#allocation2 + $0x190] sm:$0xff] %vm285_vm1, %v6592_v29  ;;  %v1224_v38 = vld [vmem:[#allocation2 + $0x107] sm:$0xff]  ;;  %v1225_v41 = vld [vmem:[#allocation2 + $0x10f] sm:$0xff]  ;;  %v6688_v44 = vpack.c.bf16 %v1511_v36, %v1510_v35 }
  0x44   : > { %8238 = vst [vmem:[#allocation16_spill] sm:$0xff] %v6624_v46  ;;  %8239 = vst [vmem:[#allocation17_spill] sm:$0xff] %v6627_v47  ;;  %v1226_v42 = vld [vmem:[#allocation2 + $0x127] sm:$0xff]  ;;  %v1227_v43 = vld [vmem:[#allocation2 + $0x12f] sm:$0xff]  ;;  %v6692_v55 = vpack.c.bf16 %v1225_v41, %v1224_v38 }
  0x45   : > { %8240 = vst [vmem:[#allocation18_spill] sm:$0xff] %v6630_v48  ;;  %384 = vst.msk [vmem:[#allocation2 + $0x1a8] sm:$0xff] %vm285_vm1, %v6624_v46  ;;  %5527 = vmatprep.mubr.msk.bf16.mxu1 %vm285_vm1, %v6688_v44  ;;  %v451_v56 = vld [vmem:[#allocation2 + $0xa8] sm:$0xff]  ;;  %v6699_v59 = vpack.c.bf16 %v1227_v43, %v1226_v42  ;;  %v1515_v0 = vld [vmem:[#allocation2 + $0xd0] sm:$0xff] }
  0x46   : > { %385 = vst.msk [vmem:[#allocation2 + $0x1b0] sm:$0xff] %vm285_vm1, %v6627_v47  ;;  %8241 = vst [vmem:[#allocation19_spill] sm:$0xff] %v6639_v50  ;;  %v6703_v62 = vpack.c.bf16 %v452_v57, %v451_v56  ;;  %v1514_v63 = vld [vmem:[#allocation2 + $0xc8] sm:$0xff]  ;;  %v456_v41 = vld [vmem:[#allocation2 + $0xf0] sm:$0xff]  ;;  %v1897_v47 = vsel %vm539_vm0, %v6613_v40, 0 }
  0x47   : > { %386 = vst.msk [vmem:[#allocation2 + $0x1c8] sm:$0xff] %vm285_vm1, %v6630_v48  ;;  %8242 = vst [vmem:[#allocation20_spill] sm:$0xff] %v6644_v51  ;;  %5630 = vmatmul.mubr.msk.bf16.gmra.mrb[8].mxu0 %vm285_vm1, %v6676_v5  ;;  %v1228_v1 = vld [vmem:[#allocation2 + $0x147] sm:$0xff]  ;;  %v1229_v3 = vld [vmem:[#allocation2 + $0x14f] sm:$0xff]  ;;  %v6709_v35 = vpack.c.bf16 %v1515_v0, %v1514_v63 }
  0x48   : > { %8243 = vst [vmem:[#allocation21_spill] sm:$0xff] %v6647_v52  ;;  %387 = vst.msk [vmem:[#allocation2 + $0x1d0] sm:$0xff] %vm285_vm1, %v6639_v50  ;;  %5633 = vmatprep.mubr.msk.bf16.mxu0 %vm285_vm1, %v6680_v32  ;;  %v1230_v30 = vld [vmem:[#allocation2 + $0x167] sm:$0xff]  ;;  %v6713_v36 = vpack.c.bf16 %v1229_v3, %v1228_v1  ;;  %v1519_v57 = vld [vmem:[#allocation2 + $0x110] sm:$0xff] }
  0x49   : > { %388 = vst.msk [vmem:[#allocation2 + $0x1e8] sm:$0xff] %vm285_vm1, %v6644_v51  ;;  %389 = vst.msk [vmem:[#allocation2 + $0x1f0] sm:$0xff] %vm285_vm1, %v6647_v52  ;;  %v1231_v31 = vld [vmem:[#allocation2 + $0x16f] sm:$0xff] }
  0x4a   : > { %8244 = vst [vmem:[#allocation22_spill] sm:$0xff] %v6656_v53  ;;  %8245 = vst [vmem:[#allocation23_spill] sm:$0xff] %v6659_v54  ;;  %5528 = vmatmul.mubr.msk.bf16.gmra.mrb[8].mxu1 %vm285_vm1, %v6703_v62  ;;  %v455_v38 = vld [vmem:[#allocation2 + $0xe8] sm:$0xff]  ;;  %v6717_v42 = vpack.c.bf16 %v1231_v31, %v1230_v30  ;;  %v460_v31 = vld [vmem:[#allocation2 + $0x130] sm:$0xff] }
  0x4b   : > { %390 = vst.msk [vmem:[#allocation2 + $0x208] sm:$0xff] %vm285_vm1, %v6656_v53  ;;  %391 = vst.msk [vmem:[#allocation2 + $0x210] sm:$0xff] %vm285_vm1, %v6659_v54  ;;  %5531 = vmatprep.mubr.msk.bf16.mxu1 %vm285_vm1, %v6709_v35  ;;  %v6719_v43 = vpack.c.bf16 %v456_v41, %v455_v38  ;;  %v1518_v56 = vld [vmem:[#allocation2 + $0x108] sm:$0xff]  ;;  %v1523_v54 = vld [vmem:[#allocation2 + $0x150] sm:$0xff] }
  0x4c   : > { %v1232_v58 = vld [vmem:[#allocation2 + $0x187] sm:$0xff]  ;;  %v1233_v61 = vld [vmem:[#allocation2 + $0x18f] sm:$0xff]  ;;  %v6725_v1 = vpack.c.bf16 %v1519_v57, %v1518_v56 }
  0x4d   : > { %v1234_v63 = vld [vmem:[#allocation2 + $0x1a7] sm:$0xff]  ;;  %v1235_v0 = vld [vmem:[#allocation2 + $0x1af] sm:$0xff]  ;;  %v6729_v3 = vpack.c.bf16 %v1233_v61, %v1232_v58 }
  0x4e   : > { %v459_v30 = vld [vmem:[#allocation2 + $0x128] sm:$0xff]  ;;  %v6733_v38 = vpack.c.bf16 %v1235_v0, %v1234_v63  ;;  %v1527_v50 = vld [vmem:[#allocation2 + $0x190] sm:$0xff] }
  0x4f   : > { %5634 = vmatmul.mubr.msk.bf16.gmra.mrb[12].mxu0 %vm285_vm1, %v6692_v55  ;;  %v6735_v41 = vpack.c.bf16 %v460_v31, %v459_v30  ;;  %v1522_v2 = vld [vmem:[#allocation2 + $0x148] sm:$0xff]  ;;  %v464_v30 = vld [vmem:[#allocation2 + $0x170] sm:$0xff] }
  0x50   : > { %5637 = vmatprep.mubr.msk.bf16.mxu0 %vm285_vm1, %v6699_v59  ;;  %v1236_v56 = vld [vmem:[#allocation2 + $0x1c7] sm:$0xff]  ;;  %v1237_v57 = vld [vmem:[#allocation2 + $0x1cf] sm:$0xff]  ;;  %v6741_v53 = vpack.c.bf16 %v1523_v54, %v1522_v2 }
  0x51   : > { %v1238_v58 = vld [vmem:[#allocation2 + $0x1e7] sm:$0xff]  ;;  %v1239_v61 = vld [vmem:[#allocation2 + $0x1ef] sm:$0xff]  ;;  %v6745_v63 = vpack.c.bf16 %v1237_v57, %v1236_v56 }
  0x52   : > { %5532 = vmatmul.mubr.msk.bf16.gmra.mrb[12].mxu1 %vm285_vm1, %v6719_v43  ;;  %v463_v0 = vld [vmem:[#allocation2 + $0x168] sm:$0xff]  ;;  %v6749_v31 = vpack.c.bf16 %v1239_v61, %v1238_v58  ;;  %v468_v61 = vld [vmem:[#allocation2 + $0x1b0] sm:$0xff] }
  0x53   : > { %5535 = vmatprep.mubr.msk.bf16.mxu1 %vm285_vm1, %v6725_v1  ;;  %v6751_v52 = vpack.c.bf16 %v464_v30, %v463_v0  ;;  %v1526_v51 = vld [vmem:[#allocation2 + $0x188] sm:$0xff]  ;;  %v1531_v48 = vld [vmem:[#allocation2 + $0x1d0] sm:$0xff] }
  0x54   : > { %v1240_v2 = vld [vmem:[#allocation2 + $0x207] sm:$0xff]  ;;  %v1241_v54 = vld [vmem:[#allocation2 + $0x20f] sm:$0xff]  ;;  %v6757_v56 = vpack.c.bf16 %v1527_v50, %v1526_v51  ;;  %v5131_v50 = vld [vmem:[%s8197_s1 + $0x4] sm:$0x3] }
  0x55   : > { %v6761_v57 = vpack.c.bf16 %v1241_v54, %v1240_v2  ;;  %v467_v58 = vld [vmem:[#allocation2 + $0x1a8] sm:$0xff]  ;;  %6223 = vmatprep.subr.msk.bf16.mxu1 %vm539_vm0, %v5131_v50  ;;  %v472_v54 = vld [vmem:[#allocation2 + $0x1f0] sm:$0xff]  ;;  %v1015_v40 = vsel %vm539_vm0, %v5131_v50, 0 }
  0x56   : > { %v6765_v0 = vpack.c.bf16 %v468_v61, %v467_v58  ;;  %v1530_v30 = vld [vmem:[#allocation2 + $0x1c8] sm:$0xff]  ;;  %v1799_v50 = vld [vmem:[#allocation2 + $0x31] sm:$0xff] }
  0x57   : > { %5638 = vmatmul.mubr.msk.bf16.gmra.mrb[16].mxu0 %vm285_vm1, %v6713_v36  ;;  %v6775_v51 = vpack.c.bf16 %v1531_v48, %v1530_v30  ;;  %v471_v2 = vld [vmem:[#allocation2 + $0x1e8] sm:$0xff]  ;;  %v1811_v25 = vld [vmem:[#allocation2 + $0xf1] sm:$0xff] }
  0x58   : > { %5641 = vmatprep.mubr.msk.bf16.mxu0 %vm285_vm1, %v6717_v42  ;;  %v392_v58 = vld [vmem:[#allocation2 + $0x7] sm:$0xff]  ;;  %v393_v61 = vld [vmem:[#allocation2 + $0xf] sm:$0xff]  ;;  %v6783_v46 = vpack.c.bf16 %v472_v54, %v471_v2 }
  0x59   : > { %v5199_v48 = vld [vmem:[%s8197_s1 + $0xc] sm:$0x3]  ;;  %v6862_v28 = vld [vmem:[%s8197_s1 + $0xe] sm:$0x3]  ;;  %v1819_v23 = vld [vmem:[#allocation2 + $0x171] sm:$0xff] }
  0x5a   : > { %5536 = vmatmul.mubr.msk.bf16.gmra.mrb[16].mxu1 %vm285_vm1, %v6735_v41  ;;  %v1798_v30 = vld [vmem:[#allocation2 + $0x29] sm:$0xff]  ;;  %v1823_v21 = vld [vmem:[#allocation2 + $0x1b1] sm:$0xff] }
  0x5b   : > { %5539 = vmatprep.mubr.msk.bf16.mxu1 %vm285_vm1, %v6741_v53  ;;  %v1830_v54 = vpack.c.bf16 %v1799_v50, %v1798_v30  ;;  %v917_v30 = vld [vmem:[#allocation2 + $0x11] sm:$0xff]  ;;  %v2192_v50 = vsel %vm539_vm0, %v5199_v48, 0  ;;  %v1822_v22 = vld [vmem:[#allocation2 + $0x1a9] sm:$0xff] }
  0x5c   : > { %v1826_v20 = vld [vmem:[#allocation2 + $0x1e9] sm:$0xff]  ;;  %v1827_v19 = vld [vmem:[#allocation2 + $0x1f1] sm:$0xff] }
  0x5f   : > { %5642 = vmatmul.mubr.msk.bf16.gmra.mrb[20].mxu0 %vm285_vm1, %v6729_v3 }
  0x60   : > { %5645 = vmatprep.mubr.msk.bf16.mxu0 %vm285_vm1, %v6733_v38 }
  0x62   : > { %5540 = vmatmul.mubr.msk.bf16.gmra.mrb[20].mxu1 %vm285_vm1, %v6751_v52 }
  0x63   : > { %5543 = vmatprep.mubr.msk.bf16.mxu1 %vm285_vm1, %v6757_v56 }
  0x67   : > { %5646 = vmatmul.mubr.msk.bf16.gmra.mrb[24].mxu0 %vm285_vm1, %v6745_v63 }
  0x68   : > { %5649 = vmatprep.mubr.msk.bf16.mxu0 %vm285_vm1, %v6749_v31 }
  0x6a   : > { %5544 = vmatmul.mubr.msk.bf16.gmra.mrb[24].mxu1 %vm285_vm1, %v6765_v0 }
  0x6b   : > { %5547 = vmatprep.mubr.msk.bf16.mxu1 %vm285_vm1, %v6775_v51 }
  0x6f   : > { %5650 = vmatmul.mubr.msk.bf16.gmra.mrb[28].mxu0 %vm285_vm1, %v6761_v57 }
  0x70   : > { %5655 = vmatprep.mubr.msk.bf16.mxu0 %vm285_vm1, %v6667_v60  ;;  %v424_v60 = vpack.c.bf16 %v393_v61, %v392_v58  ;;  %v1800_v58 = vld [vmem:[#allocation2 + $0x49] sm:$0xff]  ;;  %v1801_v61 = vld [vmem:[#allocation2 + $0x51] sm:$0xff] }
  0x71   : > { %v6852_v29 = vpack.c.bf16 %v1801_v61, %v1800_v58  ;;  %v1804_v58 = vld [vmem:[#allocation2 + $0x89] sm:$0xff]  ;;  %v1805_v61 = vld [vmem:[#allocation2 + $0x91] sm:$0xff] }
  0x72   : > { %5548 = vmatmul.mubr.msk.bf16.gmra.mrb[28].mxu1 %vm285_vm1, %v6783_v46 }
  0x73   : > { %5553 = vmatprep.mubr.msk.bf16.mxu1 %vm285_vm1, %v424_v60  ;;  %v1802_v60 = vld [vmem:[#allocation2 + $0x69] sm:$0xff] }
  0x77   : > { %5656 = vmatmul.mubr.msk.bf16.vlgmr.msra.gmra.mrb[0].mxu0 %vm285_vm1, %v6672_v4 }
  0x78   : > { %5688 = vmatpush3.bf16.msra.mxu0 %v1897_v47  ;;  %5659 = vmatprep.mubr.msk.bf16.mxu0 %vm285_vm1, %v6682_v34  ;;  %v1535_v47 = vld [vmem:[#allocation2 + $0x210] sm:$0xff] }
  0x79   : > { %6227 = vmatprep.subr.msk.bf16.mxu0 %vm539_vm0, %v5199_v48  ;;  %v6872_v48 = vpack.c.bf16 %v1805_v61, %v1804_v58  ;;  %v1812_v58 = vld [vmem:[#allocation2 + $0x109] sm:$0xff]  ;;  %v1813_v61 = vld [vmem:[#allocation2 + $0x111] sm:$0xff] }
  0x7a   : > { %5554 = vmatmul.mubr.msk.bf16.vlgmr.msra.gmra.mrb[0].mxu1 %vm285_vm1, %v6600_v33  ;;  %v1534_v33 = vld [vmem:[#allocation2 + $0x208] sm:$0xff] }
  0x7b   : > { %5557 = vmatprep.mubr.msk.bf16.mxu1 %vm285_vm1, %v6602_v37  ;;  %5586 = vmatpush3.bf16.msra.mxu1 %v1015_v40  ;;  %v6843_v2 = vpack.c.bf16 %v1535_v47, %v1534_v33  ;;  %v1803_v40 = vld [vmem:[#allocation2 + $0x71] sm:$0xff]  ;;  %v916_v47 = vld [vmem:[#allocation2 + $0x9] sm:$0xff] }
  0x7c   : > { %v6856_v33 = vpack.c.bf16 %v1803_v40, %v1802_v60  ;;  %v948_v27 = vpack.c.bf16 %v917_v30, %v916_v47  ;;  %v1806_v60 = vld [vmem:[#allocation2 + $0xa9] sm:$0xff]  ;;  %v1807_v40 = vld [vmem:[#allocation2 + $0xb1] sm:$0xff] }
  0x7d   : > { %v6875_v26 = vpack.c.bf16 %v1807_v40, %v1806_v60  ;;  %v1808_v47 = vld [vmem:[#allocation2 + $0xc9] sm:$0xff]  ;;  %v1809_v30 = vld [vmem:[#allocation2 + $0xd1] sm:$0xff] }
  0x7e   : > { %v6882_v24 = vpack.c.bf16 %v1809_v30, %v1808_v47  ;;  %v1814_v60 = vld [vmem:[#allocation2 + $0x129] sm:$0xff]  ;;  %v1815_v40 = vld [vmem:[#allocation2 + $0x131] sm:$0xff] }
  0x7f   : > { %5660 = vmatmul.mubr.msk.bf16.gmra.mrb[4].mxu0 %vm285_vm1, %v6688_v44  ;;  %v1816_v47 = vld [vmem:[#allocation2 + $0x149] sm:$0xff]  ;;  %v1817_v30 = vld [vmem:[#allocation2 + $0x151] sm:$0xff] }
  0x80   : > { %5663 = vmatprep.mubr.msk.bf16.mxu0 %vm285_vm1, %v6703_v62 }
  0x82   : > { %5558 = vmatmul.mubr.msk.bf16.gmra.mrb[4].mxu1 %vm285_vm1, %v6606_v39 }
  0x83   : > { %5561 = vmatprep.mubr.msk.bf16.mxu1 %vm285_vm1, %v6621_v45 }
  0x87   : > { %5664 = vmatmul.mubr.msk.bf16.gmra.mrb[8].mxu0 %vm285_vm1, %v6709_v35 }
  0x88   : > { %5667 = vmatprep.mubr.msk.bf16.mxu0 %vm285_vm1, %v6719_v43 }
  0x8a   : > { %5562 = vmatmul.mubr.msk.bf16.gmra.mrb[8].mxu1 %vm285_vm1, %v6632_v49 }
  0x8b   : > { %5565 = vmatprep.mubr.msk.bf16.mxu1 %vm285_vm1, %v6676_v5 }
  0x8f   : > { %5668 = vmatmul.mubr.msk.bf16.gmra.mrb[12].mxu0 %vm285_vm1, %v6725_v1 }
  0x90   : > { %5671 = vmatprep.mubr.msk.bf16.mxu0 %vm285_vm1, %v6735_v41 }
  0x92   : > { %5566 = vmatmul.mubr.msk.bf16.gmra.mrb[12].mxu1 %vm285_vm1, %v6680_v32 }
  0x93   : > { %5569 = vmatprep.mubr.msk.bf16.mxu1 %vm285_vm1, %v6692_v55 }
  0x97   : > { %5672 = vmatmul.mubr.msk.bf16.gmra.mrb[16].mxu0 %vm285_vm1, %v6741_v53 }
  0x98   : > { %5675 = vmatprep.mubr.msk.bf16.mxu0 %vm285_vm1, %v6751_v52 }
  0x9a   : > { %5570 = vmatmul.mubr.msk.bf16.gmra.mrb[16].mxu1 %vm285_vm1, %v6699_v59 }
  0x9b   : > { %5573 = vmatprep.mubr.msk.bf16.mxu1 %vm285_vm1, %v6713_v36 }
  0x9f   : > { %5676 = vmatmul.mubr.msk.bf16.gmra.mrb[20].mxu0 %vm285_vm1, %v6757_v56 }
  0xa0   : > { %5679 = vmatprep.mubr.msk.bf16.mxu0 %vm285_vm1, %v6765_v0 }
  0xa2   : > { %5574 = vmatmul.mubr.msk.bf16.gmra.mrb[20].mxu1 %vm285_vm1, %v6717_v42 }
  0xa3   : > { %5577 = vmatprep.mubr.msk.bf16.mxu1 %vm285_vm1, %v6729_v3 }
  0xa7   : > { %5680 = vmatmul.mubr.msk.bf16.gmra.mrb[24].mxu0 %vm285_vm1, %v6775_v51 }
  0xa8   : > { %5683 = vmatprep.mubr.msk.bf16.mxu0 %vm285_vm1, %v6783_v46 }
  0xaa   : > { %5578 = vmatmul.mubr.msk.bf16.gmra.mrb[24].mxu1 %vm285_vm1, %v6733_v38 }
  0xab   : > { %5581 = vmatprep.mubr.msk.bf16.mxu1 %vm285_vm1, %v6745_v63 }
  0xaf   : > { %5684 = vmatmul.mubr.msk.bf16.gmra.mrb[28].mxu0 %vm285_vm1, %v6843_v2 }
  0xb0   : > { %5689 = vmatprep.mubr.msk.bf16.mxu0 %vm285_vm1, %v1830_v54 }
  0xb2   : > { %5582 = vmatmul.mubr.msk.bf16.gmra.mrb[28].mxu1 %vm285_vm1, %v6749_v31 }
  0xb3   : > { %5587 = vmatprep.mubr.msk.bf16.mxu1 %vm285_vm1, %v948_v27 }
  0xb7   : > { %5690 = vmatmul.mubr.msk.bf16.vlgmr.msra.gmra.mrb[0].mxu0 %vm285_vm1, %v6852_v29 }
  0xb8   : > { %5722 = vmatpush3.bf16.msra.mxu0 %v2192_v50  ;;  %5693 = vmatprep.mubr.msk.bf16.mxu0 %vm285_vm1, %v6856_v33  ;;  %v1810_v50 = vld [vmem:[#allocation2 + $0xe9] sm:$0xff] }
  0xb9   : > { %6228 = vmatprep.subr.msk.bf16.mxu0 %vm539_vm0, %v6862_v28  ;;  %v6886_v27 = vpack.c.bf16 %v1811_v25, %v1810_v50  ;;  %v6898_v25 = vpack.c.bf16 %v1815_v40, %v1814_v60  ;;  %v1818_v50 = vld [vmem:[#allocation2 + $0x169] sm:$0xff]  ;;  %v1821_v40 = vld [vmem:[#allocation2 + $0x191] sm:$0xff] }
  0xba   : > { %5588 = vmatmul.mubr.msk.bf16.vlgmr.msra.gmra.mrb[0].mxu1 %vm285_vm1, %v1830_v54  ;;  %v6894_v54 = vpack.c.bf16 %v1813_v61, %v1812_v58  ;;  %v6906_v58 = vpack.c.bf16 %v1817_v30, %v1816_v47  ;;  %v6910_v61 = vpack.c.bf16 %v1819_v23, %v1818_v50  ;;  %v1820_v60 = vld [vmem:[#allocation2 + $0x189] sm:$0xff]  ;;  %v6922_v23 = vpack.c.bf16 %v1823_v21, %v1822_v22  ;;  %v1825_v50 = vld [vmem:[#allocation2 + $0x1d1] sm:$0xff] }
  0xbb   : > { %5591 = vmatprep.mubr.msk.bf16.mxu1 %vm285_vm1, %v6852_v29  ;;  %v6918_v47 = vpack.c.bf16 %v1821_v40, %v1820_v60  ;;  %v1824_v30 = vld [vmem:[#allocation2 + $0x1c9] sm:$0xff]  ;;  %v6934_v21 = vpack.c.bf16 %v1827_v19, %v1826_v20  ;;  %v1829_v40 = vld [vmem:[#allocation2 + $0x211] sm:$0xff]  ;;  %v2486_v19 = vsel %vm539_vm0, %v6862_v28, 0 }
  0xbc   : > { %v6930_v60 = vpack.c.bf16 %v1825_v50, %v1824_v30  ;;  %v1828_v22 = vld [vmem:[#allocation2 + $0x209] sm:$0xff]  ;;  %v4555_v30 = vld [vmem:[%s8201_s5] sm:$0x3] }
  0xbd   : > { %v6942_v18 = vpack.c.bf16 %v1829_v40, %v1828_v22  ;;  %v5233_v20 = vld [vmem:[%s8197_s1 + $0x10] sm:$0x3]  ;;  %v2123_v28 = vld [vmem:[#allocation2 + $0x227] sm:$0xff] }
  0xbf   : > { %5694 = vmatmul.mubr.msk.bf16.gmra.mrb[4].mxu0 %vm285_vm1, %v6872_v48 }
  0xc0   : > { %5697 = vmatprep.mubr.msk.bf16.mxu0 %vm285_vm1, %v6875_v26 }
  0xc2   : > { %5592 = vmatmul.mubr.msk.bf16.gmra.mrb[4].mxu1 %vm285_vm1, %v6856_v33 }
  0xc3   : > { %5595 = vmatprep.mubr.msk.bf16.mxu1 %vm285_vm1, %v6872_v48 }
  0xc7   : > { %5698 = vmatmul.mubr.msk.bf16.gmra.mrb[8].mxu0 %vm285_vm1, %v6882_v24 }
  0xc8   : > { %5701 = vmatprep.mubr.msk.bf16.mxu0 %vm285_vm1, %v6886_v27 }
  0xca   : > { %5596 = vmatmul.mubr.msk.bf16.gmra.mrb[8].mxu1 %vm285_vm1, %v6875_v26 }
  0xcb   : > { %5599 = vmatprep.mubr.msk.bf16.mxu1 %vm285_vm1, %v6882_v24 }
  0xcf   : > { %5702 = vmatmul.mubr.msk.bf16.gmra.mrb[12].mxu0 %vm285_vm1, %v6894_v54 }
  0xd0   : > { %5705 = vmatprep.mubr.msk.bf16.mxu0 %vm285_vm1, %v6898_v25 }
  0xd2   : > { %5600 = vmatmul.mubr.msk.bf16.gmra.mrb[12].mxu1 %vm285_vm1, %v6886_v27 }
  0xd3   : > { %5603 = vmatprep.mubr.msk.bf16.mxu1 %vm285_vm1, %v6894_v54 }
  0xd7   : > { %5706 = vmatmul.mubr.msk.bf16.gmra.mrb[16].mxu0 %vm285_vm1, %v6906_v58 }
  0xd8   : > { %5709 = vmatprep.mubr.msk.bf16.mxu0 %vm285_vm1, %v6910_v61 }
  0xda   : > { %5604 = vmatmul.mubr.msk.bf16.gmra.mrb[16].mxu1 %vm285_vm1, %v6898_v25 }
  0xdb   : > { %5607 = vmatprep.mubr.msk.bf16.mxu1 %vm285_vm1, %v6906_v58 }
  0xdf   : > { %5710 = vmatmul.mubr.msk.bf16.gmra.mrb[20].mxu0 %vm285_vm1, %v6918_v47 }
  0xe0   : > { %5713 = vmatprep.mubr.msk.bf16.mxu0 %vm285_vm1, %v6922_v23 }
  0xe2   : > { %5608 = vmatmul.mubr.msk.bf16.gmra.mrb[20].mxu1 %vm285_vm1, %v6910_v61 }
  0xe3   : > { %5611 = vmatprep.mubr.msk.bf16.mxu1 %vm285_vm1, %v6918_v47 }
  0xe7   : > { %5714 = vmatmul.mubr.msk.bf16.gmra.mrb[24].mxu0 %vm285_vm1, %v6930_v60 }
  0xe8   : > { %5717 = vmatprep.mubr.msk.bf16.mxu0 %vm285_vm1, %v6934_v21 }
  0xea   : > { %5612 = vmatmul.mubr.msk.bf16.gmra.mrb[24].mxu1 %vm285_vm1, %v6922_v23 }
  0xeb   : > { %5615 = vmatprep.mubr.msk.bf16.mxu1 %vm285_vm1, %v6930_v60 }
  0xef   : > { %5718 = vmatmul.mubr.msk.bf16.gmra.mrb[28].mxu0 %vm285_vm1, %v6942_v18 }
  0xf0   : > { %5723 = vmatprep.mubr.msk.bf16.mxu0 %vm285_vm1, %v6602_v37  ;;  %v2124_v37 = vld [vmem:[#allocation2 + $0x22f] sm:$0xff] }
  0xf2   : > { %5616 = vmatmul.mubr.msk.bf16.gmra.mrb[28].mxu1 %vm285_vm1, %v6934_v21 }
  0xf7   : > { %5724 = vmatmul.mubr.msk.bf16.vlgmr.msra.gmra.mrb[0].mxu0 %vm285_vm1, %v6606_v39  ;;  %v2140_v39 = vpack.c.bf16 %v2124_v37, %v2123_v28 }
  0xf8   : > { %5756 = vmatpush3.bf16.msra.mxu0 %v2486_v19  ;;  %5727 = vmatprep.mubr.msk.bf16.mxu0 %vm285_vm1, %v6621_v45  ;;  %v2780_v45 = vsel %vm539_vm0, %v5233_v20, 0 }
  0xf9   : > { %6229 = vmatprep.subr.msk.bf16.mxu0 %vm539_vm0, %v5233_v20 }
  0xff   : > { %5728 = vmatmul.mubr.msk.bf16.gmra.mrb[4].mxu0 %vm285_vm1, %v6632_v49  ;;  %v6240_v49 = vld [vmem:[%s8198_s2] sm:$0xff]  }
 0x100   : > { %5731 = vmatprep.mubr.msk.bf16.mxu0 %vm285_vm1, %v6676_v5  ;;  %5823 = vmatprep.subr.bf16.mxu1 %v6240_v49  ;;  %v2418_v5 = vld [vmem:[#allocation2 + $0x230] sm:$0xff] }
 0x101   : > { %5824 = vmatpush3.bf16.msra.mxu1 %v6240_v49 }
 0x107   : > { %5732 = vmatmul.mubr.msk.bf16.gmra.mrb[8].mxu0 %vm285_vm1, %v6680_v32 }
 0x108   : > { %5735 = vmatprep.mubr.msk.bf16.mxu0 %vm285_vm1, %v6692_v55 }
 0x10f   : > { %5736 = vmatmul.mubr.msk.bf16.gmra.mrb[12].mxu0 %vm285_vm1, %v6699_v59 }
 0x110   : > { %5739 = vmatprep.mubr.msk.bf16.mxu0 %vm285_vm1, %v6713_v36  ;;  %v2711_v36 = vld [vmem:[#allocation2 + $0x229] sm:$0xff] }
 0x117   : > { %5740 = vmatmul.mubr.msk.bf16.gmra.mrb[16].mxu0 %vm285_vm1, %v6717_v42  ;;  %v2712_v42 = vld [vmem:[#allocation2 + $0x231] sm:$0xff] }
 0x118   : > { %5743 = vmatprep.mubr.msk.bf16.mxu0 %vm285_vm1, %v6729_v3 }
 0x11f   : > { %5744 = vmatmul.mubr.msk.bf16.gmra.mrb[20].mxu0 %vm285_vm1, %v6733_v38 }
 0x120   : > { %5747 = vmatprep.mubr.msk.bf16.mxu0 %vm285_vm1, %v6745_v63 }
 0x127   : > { %5748 = vmatmul.mubr.msk.bf16.gmra.mrb[24].mxu0 %vm285_vm1, %v6749_v31 }
 0x128   : > { %5751 = vmatprep.mubr.msk.bf16.mxu0 %vm285_vm1, %v6761_v57 }
 0x12f   : > { %5752 = vmatmul.mubr.msk.bf16.gmra.mrb[28].mxu0 %vm285_vm1, %v2140_v39 }
 0x130   : > { %5757 = vmatprep.mubr.msk.bf16.mxu0 %vm285_vm1, %v6672_v4  ;;  %v6241_v4 = vld [vmem:[%s8198_s2 + $0x8] sm:$0xff]  }
 0x131   : > { %5825 = vmatprep.subr.bf16.mxu1 %v6241_v4 }
 0x132   : > { %5826 = vmatpush3.bf16.msra.mxu1 %v6241_v4 }
 0x133   : > { %6230 = vmatprep.subr.msk.bf16.mxu1 %vm539_vm0, %v4555_v30 }
 0x137   : > { %5758 = vmatmul.mubr.msk.bf16.vlgmr.msra.gmra.mrb[0].mxu0 %vm285_vm1, %v6682_v34 }
 0x138   : > { %5790 = vmatpush3.bf16.msra.mxu0 %v2780_v45  ;;  %5761 = vmatprep.mubr.msk.bf16.mxu0 %vm285_vm1, %v6688_v44 }
 0x13f   : > { %5762 = vmatmul.mubr.msk.bf16.gmra.mrb[4].mxu0 %vm285_vm1, %v6703_v62 }
 0x140   : > { %5765 = vmatprep.mubr.msk.bf16.mxu0 %vm285_vm1, %v6709_v35 }
 0x147   : > { %5766 = vmatmul.mubr.msk.bf16.gmra.mrb[8].mxu0 %vm285_vm1, %v6719_v43 }
 0x148   : > { %5769 = vmatprep.mubr.msk.bf16.mxu0 %vm285_vm1, %v6725_v1  ;;  %v2728_v1 = vpack.c.bf16 %v2712_v42, %v2711_v36 }
 0x14f   : > { %5770 = vmatmul.mubr.msk.bf16.gmra.mrb[12].mxu0 %vm285_vm1, %v6735_v41 }
 0x150   : > { %5773 = vmatprep.mubr.msk.bf16.mxu0 %vm285_vm1, %v6741_v53  ;;  %v2417_v53 = vld [vmem:[#allocation2 + $0x228] sm:$0xff] }
 0x151   : > { %v2434_v32 = vpack.c.bf16 %v2418_v5, %v2417_v53 }
 0x157   : > { %5774 = vmatmul.mubr.msk.bf16.gmra.mrb[16].mxu0 %vm285_vm1, %v6751_v52 }
 0x158   : > { %5777 = vmatprep.mubr.msk.bf16.mxu0 %vm285_vm1, %v6757_v56 }
 0x15f   : > { %5778 = vmatmul.mubr.msk.bf16.gmra.mrb[20].mxu0 %vm285_vm1, %v6765_v0 }
 0x160   : > { %5781 = vmatprep.mubr.msk.bf16.mxu0 %vm285_vm1, %v6775_v51 }
 0x167   : > { %5782 = vmatmul.mubr.msk.bf16.gmra.mrb[24].mxu0 %vm285_vm1, %v6783_v46 }
 0x168   : > { %5785 = vmatprep.mubr.msk.bf16.mxu0 %vm285_vm1, %v6843_v2 }
 0x16f   : > { %5786 = vmatmul.mubr.msk.bf16.gmra.mrb[28].mxu0 %vm285_vm1, %v2434_v32 }
 0x170   : > { %5791 = vmatprep.mubr.msk.bf16.mxu0 %vm285_vm1, %v6852_v29 }
 0x177   : > { %5792 = vmatmul.mubr.msk.bf16.vlgmr.msra.gmra.mrb[0].mxu0 %vm285_vm1, %v6856_v33 }
 0x178   : > { %5795 = vmatprep.mubr.msk.bf16.mxu0 %vm285_vm1, %v6872_v48 }
 0x17f   : > { %5796 = vmatmul.mubr.msk.bf16.gmra.mrb[4].mxu0 %vm285_vm1, %v6875_v26 }
 0x180   : > { %5799 = vmatprep.mubr.msk.bf16.mxu0 %vm285_vm1, %v6882_v24 }
 0x187   : > { %5800 = vmatmul.mubr.msk.bf16.gmra.mrb[8].mxu0 %vm285_vm1, %v6886_v27 }
 0x188   : > { %5803 = vmatprep.mubr.msk.bf16.mxu0 %vm285_vm1, %v6894_v54 }
 0x18d   : > { %v5589_v29 = vpop.f32.mrb[0].mxu1 }
 0x18e   : > { %v1051_v46 = vpop.f32.mrb[1].mxu1 }
 0x18f   : > { %5804 = vmatmul.mubr.msk.bf16.gmra.mrb[12].mxu0 %vm285_vm1, %v6898_v25  ;;  %v5590_v26 = vpop.f32.mrb[2].mxu1 }
 0x190   : > { %5807 = vmatprep.mubr.msk.bf16.mxu0 %vm285_vm1, %v6906_v58  ;;  %v1054_v24 = vpop.f32.mrb[3].mxu1 }
 0x195   : > { %v5593_v52 = vpop.f32.mrb[4].mxu1 }
 0x196   : > { %v7051_v34 = vpop.f32.mrb[5].mxu1 }
 0x197   : > { %5808 = vmatmul.mubr.msk.bf16.gmra.mrb[16].mxu0 %vm285_vm1, %v6910_v61  ;;  %v7055_v44 = vpop.f32.mrb[6].mxu1 }
 0x198   : > { %5811 = vmatprep.mubr.msk.bf16.mxu0 %vm285_vm1, %v6918_v47  ;;  %v7059_v55 = vpop.f32.mrb[7].mxu1 }
 0x19d   : > { %v7061_v59 = vpop.f32.mrb[8].mxu1 }
 0x19e   : > { %v7063_v62 = vpop.f32.mrb[9].mxu1 }
 0x19f   : > { %5812 = vmatmul.mubr.msk.bf16.gmra.mrb[20].mxu0 %vm285_vm1, %v6922_v23  ;;  %v7067_v35 = vpop.f32.mrb[10].mxu1 }
 0x1a0   : > { %5815 = vmatprep.mubr.msk.bf16.mxu0 %vm285_vm1, %v6930_v60  ;;  %v7071_v43 = vpop.f32.mrb[11].mxu1 }
 0x1a5   : > { %v7073_v3 = vpop.f32.mrb[12].mxu1 }
 0x1a6   : > { %v7075_v38 = vpop.f32.mrb[13].mxu1 }
 0x1a7   : > { %5816 = vmatmul.mubr.msk.bf16.gmra.mrb[24].mxu0 %vm285_vm1, %v6934_v21  ;;  %v7078_v41 = vpop.f32.mrb[14].mxu1 }
 0x1a8   : > { %5819 = vmatprep.mubr.msk.bf16.mxu0 %vm285_vm1, %v6942_v18  ;;  %v7080_v63 = vpop.f32.mrb[15].mxu1 }
 0x1ad   : > { %v7082_v31 = vpop.f32.mrb[16].mxu1 }
 0x1ae   : > { %v7084_v56 = vpop.f32.mrb[17].mxu1 }
 0x1af   : > { %5820 = vmatmul.mubr.msk.bf16.gmra.mrb[28].mxu0 %vm285_vm1, %v2728_v1  ;;  %v7086_v18 = vpop.f32.mrb[18].mxu1 }
 0x1b0   : > { %v7088_v57 = vpop.f32.mrb[19].mxu1 }
 0x1b5   : > { %v7090_v0 = vpop.f32.mrb[20].mxu1 }
 0x1b6   : > { %v7092_v51 = vpop.f32.mrb[21].mxu1 }
 0x1b7   : > { %v7094_v2 = vpop.f32.mrb[22].mxu1 }
 0x1b8   : > { %v7096_v33 = vpop.f32.mrb[23].mxu1 }
 0x1bd   : > { %v7098_v48 = vpop.f32.mrb[24].mxu1 }
 0x1be   : > { %v7100_v27 = vpop.f32.mrb[25].mxu1 }
 0x1bf   : > { %v7102_v54 = vpop.f32.mrb[26].mxu1 }
 0x1c0   : > { %v7104_v25 = vpop.f32.mrb[27].mxu1 }
 0x1c5   : > { %v7106_v58 = vpop.f32.mrb[28].mxu1 }
 0x1c6   : > { %v7108_v61 = vpop.f32.mrb[29].mxu1 }
 0x1c7   : > { %v7110_v47 = vpop.f32.mrb[30].mxu1 }
 0x1c8   : > { %v7112_v23 = vpop.f32.mrb[31].mxu1 }
 0x24a   : > { %v5793_v50 = vpop.f32.mrb[0].mxu0 }
 0x24b   : > { %v5933_v60 = vadd.f32 %v5793_v50, %v5589_v29  ;;  %v2816_v21 = vpop.f32.mrb[1].mxu0 }
 0x24c   : > { %v5934_v22 = vadd.f32 %v2816_v21, %v1051_v46  ;;  %v5794_v40 = vpop.f32.mrb[2].mxu0  ;;  %v7123_v21 = vld [vmem:[%s8200_s4] sm:$0xff]  }
 0x24d   : > { %v3009_v19 = vmul.f32 0.01, %v5933_v60  ;;  %v5935_v20 = vadd.f32 %v5794_v40, %v5590_v26  ;;  %v2819_v28 = vpop.f32.mrb[3].mxu0  ;;  %vm2977_vm3 = vcmp.gt.f32.partialorder %v5933_v60, 0.0 }
 0x24e   : > { %v3007_v37 = vmul.f32 0.01, %v5934_v22  ;;  %v5936_v39 = vadd.f32 %v2819_v28, %v1054_v24  ;;  %vm2975_vm4 = vcmp.gt.f32.partialorder %v5934_v22, 0.0  ;;  %v4605_v24 = vsel %vm539_vm0, %v4555_v30, 0 }
 0x24f   : > { %vm2978_vm5 = vcmp.gt.f32.partialorder %v5935_v20, 0.0  ;;  %v3010_v45 = vmul.f32 0.01, %v5935_v20  ;;  %v3041_v4 = vsel %vm2977_vm3, %v5933_v60, %v3009_v19 }
 0x250   : > { %vm2976_vm6 = vcmp.gt.f32.partialorder %v5936_v39, 0.0  ;;  %v3008_v49 = vmul.f32 0.01, %v5936_v39  ;;  %v3039_v5 = vsel %vm2975_vm4, %v5934_v22, %v3007_v37 }
 0x251   : > { %v3042_v53 = vsel %vm2978_vm5, %v5935_v20, %v3010_v45 }
 0x252   : > { %v3072_v32 = vpack.c.bf16 %v3042_v53, %v3041_v4  ;;  %v3040_v36 = vsel %vm2976_vm6, %v5936_v39, %v3008_v49  ;;  %v5797_v29 = vpop.f32.mrb[4].mxu0 }
 0x253   : > { %v3071_v46 = vpack.c.bf16 %v3040_v36, %v3039_v5  ;;  %v5937_v42 = vadd.f32 %v5797_v29, %v5593_v52  ;;  %v2832_v1 = vpop.f32.mrb[5].mxu0 }
 0x254   : > { %v5938_v26 = vadd.f32 %v2832_v1, %v7051_v34  ;;  %v5798_v50 = vpop.f32.mrb[6].mxu0 }
 0x255   : > { %v3013_v60 = vmul.f32 0.01, %v5937_v42  ;;  %v5939_v22 = vadd.f32 %v5798_v50, %v7055_v44  ;;  %v2835_v40 = vpop.f32.mrb[7].mxu0  ;;  %5827 = vmatprep.mubr.msk.bf16.mxu1 %vm3103_vm7, %v3071_v46  ;;  %vm2981_vm8 = vcmp.gt.f32.partialorder %v5937_v42, 0.0 }
 0x256   : > { %v3011_v19 = vmul.f32 0.01, %v5938_v26  ;;  %v5940_v52 = vadd.f32 %v2835_v40, %v7059_v55  ;;  %5828 = vmatmul.mubr.msk.bf16.vlgmr.msra.gmra.mrb[32].mxu1 %vm3103_vm7, %v3072_v32  ;;  %vm2979_vm9 = vcmp.gt.f32.partialorder %v5938_v26, 0.0 }
 0x257   : > { %vm2982_vm10 = vcmp.gt.f32.partialorder %v5939_v22, 0.0  ;;  %v3014_v34 = vmul.f32 0.01, %v5939_v22  ;;  %5860 = vmatpush3.bf16.msra.mxu1 %v4605_v24  ;;  %v3045_v20 = vsel %vm2981_vm8, %v5937_v42, %v3013_v60 }
 0x258   : > { %vm2980_vm11 = vcmp.gt.f32.partialorder %v5940_v52, 0.0  ;;  %v3012_v30 = vmul.f32 0.01, %v5940_v52  ;;  %5893 = vmatprep.subr.bf16.mxu1 %v7123_v21  ;;  %v3043_v44 = vsel %vm2979_vm9, %v5938_v26, %v3011_v19 }
 0x259   : > { %v3046_v28 = vsel %vm2982_vm10, %v5939_v22, %v3014_v34 }
 0x25a   : > { %v3074_v37 = vpack.c.bf16 %v3046_v28, %v3045_v20  ;;  %v3044_v39 = vsel %vm2980_vm11, %v5940_v52, %v3012_v30  ;;  %v5801_v45 = vpop.f32.mrb[8].mxu0 }
 0x25b   : > { %v3073_v49 = vpack.c.bf16 %v3044_v39, %v3043_v44  ;;  %v5941_v4 = vadd.f32 %v5801_v45, %v7061_v59  ;;  %v2848_v55 = vpop.f32.mrb[9].mxu0 }
 0x25c   : > { %v5942_v53 = vadd.f32 %v2848_v55, %v7063_v62  ;;  %v5802_v5 = vpop.f32.mrb[10].mxu0 }
 0x25d   : > { %v3017_v32 = vmul.f32 0.01, %v5941_v4  ;;  %v5943_v36 = vadd.f32 %v5802_v5, %v7067_v35  ;;  %v2851_v29 = vpop.f32.mrb[11].mxu0  ;;  %5831 = vmatprep.mubr.msk.bf16.mxu1 %vm3103_vm7, %v3073_v49  ;;  %vm2985_vm12 = vcmp.gt.f32.partialorder %v5941_v4, 0.0 }
 0x25e   : > { %v3015_v46 = vmul.f32 0.01, %v5942_v53  ;;  %v5944_v42 = vadd.f32 %v2851_v29, %v7071_v43  ;;  %5832 = vmatmul.mubr.msk.bf16.gmra.mrb[36].mxu1 %vm3103_vm7, %v3074_v37  ;;  %vm2983_vm13 = vcmp.gt.f32.partialorder %v5942_v53, 0.0 }
 0x25f   : > { %vm2986_vm14 = vcmp.gt.f32.partialorder %v5943_v36, 0.0  ;;  %v3018_v1 = vmul.f32 0.01, %v5943_v36  ;;  %v3049_v26 = vsel %vm2985_vm12, %v5941_v4, %v3017_v32 }
 0x260   : > { %vm2984_vm15 = vcmp.gt.f32.partialorder %v5944_v42, 0.0  ;;  %v3016_v59 = vmul.f32 0.01, %v5944_v42  ;;  %v3047_v50 = vsel %vm2983_vm13, %v5942_v53, %v3015_v46 }
 0x261   : > { %v3050_v62 = vsel %vm2986_vm14, %v5943_v36, %v3018_v1 }
 0x262   : > { %v3076_v24 = vpack.c.bf16 %v3050_v62, %v3049_v26  ;;  %v3048_v60 = vsel %vm2984_vm15, %v5944_v42, %v3016_v59  ;;  %v5805_v35 = vpop.f32.mrb[12].mxu0 }
 0x263   : > { %v3075_v22 = vpack.c.bf16 %v3048_v60, %v3047_v50  ;;  %v5945_v40 = vadd.f32 %v5805_v35, %v7073_v3  ;;  %v2864_v19 = vpop.f32.mrb[13].mxu0 }
 0x264   : > { %v5946_v52 = vadd.f32 %v2864_v19, %v7075_v38  ;;  %v5806_v43 = vpop.f32.mrb[14].mxu0 }
 0x265   : > { %v3021_v34 = vmul.f32 0.01, %v5945_v40  ;;  %v5947_v30 = vadd.f32 %v5806_v43, %v7078_v41  ;;  %v2867_v20 = vpop.f32.mrb[15].mxu0  ;;  %5835 = vmatprep.mubr.msk.bf16.mxu1 %vm3103_vm7, %v3075_v22  ;;  %vm2989_vm0 = vcmp.gt.f32.partialorder %v5945_v40, 0.0 }
 0x266   : > { %v3019_v28 = vmul.f32 0.01, %v5946_v52  ;;  %v5948_v44 = vadd.f32 %v2867_v20, %v7080_v63  ;;  %5836 = vmatmul.mubr.msk.bf16.gmra.mrb[40].mxu1 %vm3103_vm7, %v3076_v24  ;;  %vm2987_vm2 = vcmp.gt.f32.partialorder %v5946_v52, 0.0 }
 0x267   : > { %vm2990_vm3 = vcmp.gt.f32.partialorder %v5947_v30, 0.0  ;;  %v3022_v37 = vmul.f32 0.01, %v5947_v30  ;;  %v3053_v39 = vsel %vm2989_vm0, %v5945_v40, %v3021_v34 }
 0x268   : > { %vm2988_vm4 = vcmp.gt.f32.partialorder %v5948_v44, 0.0  ;;  %v3020_v3 = vmul.f32 0.01, %v5948_v44  ;;  %v3051_v45 = vsel %vm2987_vm2, %v5946_v52, %v3019_v28 }
 0x269   : > { %v3054_v38 = vsel %vm2990_vm3, %v5947_v30, %v3022_v37 }
 0x26a   : > { %v3078_v49 = vpack.c.bf16 %v3054_v38, %v3053_v39  ;;  %v3052_v4 = vsel %vm2988_vm4, %v5948_v44, %v3020_v3  ;;  %v5809_v41 = vpop.f32.mrb[16].mxu0 }
 0x26b   : > { %v3077_v55 = vpack.c.bf16 %v3052_v4, %v3051_v45  ;;  %v5949_v53 = vadd.f32 %v5809_v41, %v7082_v31  ;;  %v2880_v5 = vpop.f32.mrb[17].mxu0 }
 0x26c   : > { %v5950_v32 = vadd.f32 %v2880_v5, %v7084_v56  ;;  %v5810_v63 = vpop.f32.mrb[18].mxu0 }
 0x26d   : > { %v3025_v36 = vmul.f32 0.01, %v5949_v53  ;;  %v5951_v29 = vadd.f32 %v5810_v63, %v7086_v18  ;;  %v2883_v46 = vpop.f32.mrb[19].mxu0  ;;  %5839 = vmatprep.mubr.msk.bf16.mxu1 %vm3103_vm7, %v3077_v55  ;;  %vm2993_vm5 = vcmp.gt.f32.partialorder %v5949_v53, 0.0 }
 0x26e   : > { %v3023_v42 = vmul.f32 0.01, %v5950_v32  ;;  %v5952_v1 = vadd.f32 %v2883_v46, %v7088_v57  ;;  %5840 = vmatmul.mubr.msk.bf16.gmra.mrb[44].mxu1 %vm3103_vm7, %v3078_v49  ;;  %vm2991_vm6 = vcmp.gt.f32.partialorder %v5950_v32, 0.0 }
 0x26f   : > { %vm2994_vm8 = vcmp.gt.f32.partialorder %v5951_v29, 0.0  ;;  %v3026_v59 = vmul.f32 0.01, %v5951_v29  ;;  %v3057_v26 = vsel %vm2993_vm5, %v5949_v53, %v3025_v36 }
 0x270   : > { %vm2992_vm9 = vcmp.gt.f32.partialorder %v5952_v1, 0.0  ;;  %v3024_v31 = vmul.f32 0.01, %v5952_v1  ;;  %v3055_v62 = vsel %vm2991_vm6, %v5950_v32, %v3023_v42 }
 0x271   : > { %v3058_v56 = vsel %vm2994_vm8, %v5951_v29, %v3026_v59  ;;  %vm3413_vm8 = vcmask 516096  }
 0x272   : > { %v3080_v50 = vpack.c.bf16 %v3058_v56, %v3057_v26  ;;  %v3056_v24 = vsel %vm2992_vm9, %v5952_v1, %v3024_v31  ;;  %v5813_v18 = vpop.f32.mrb[20].mxu0 }
 0x273   : > { %v3079_v60 = vpack.c.bf16 %v3056_v24, %v3055_v62  ;;  %v5953_v35 = vadd.f32 %v5813_v18, %v7090_v0  ;;  %v2896_v22 = vpop.f32.mrb[21].mxu0 }
 0x274   : > { %v5954_v40 = vadd.f32 %v2896_v22, %v7092_v51  ;;  %v5814_v57 = vpop.f32.mrb[22].mxu0 }
 0x275   : > { %v3029_v19 = vmul.f32 0.01, %v5953_v35  ;;  %v5955_v52 = vadd.f32 %v5814_v57, %v7094_v2  ;;  %v2899_v43 = vpop.f32.mrb[23].mxu0  ;;  %5843 = vmatprep.mubr.msk.bf16.mxu1 %vm3103_vm7, %v3079_v60  ;;  %vm2997_vm10 = vcmp.gt.f32.partialorder %v5953_v35, 0.0  ;;  %v4539_v57 = vpack.c.bf16 %v6448_v7, %v6445_v6 }
 0x276   : > { %v3027_v34 = vmul.f32 0.01, %v5954_v40  ;;  %v5956_v30 = vadd.f32 %v2899_v43, %v7096_v33  ;;  %5844 = vmatmul.mubr.msk.bf16.gmra.mrb[48].mxu1 %vm3103_vm7, %v3080_v50  ;;  %vm2995_vm11 = vcmp.gt.f32.partialorder %v5954_v40, 0.0  ;;  %v4542_v6 = vpack.c.bf16 %v6514_v13, %v6511_v12  ;;  %v8248_v12 = vld [vmem:[#allocation6_spill] sm:$0xff]  ;;  %v8249_v13 = vld [vmem:[#allocation7_spill] sm:$0xff] }
 0x277   : > { %vm2998_vm12 = vcmp.gt.f32.partialorder %v5955_v52, 0.0  ;;  %v3030_v20 = vmul.f32 0.01, %v5955_v52  ;;  %v3061_v28 = vsel %vm2997_vm10, %v5953_v35, %v3029_v19  ;;  %v4541_v19 = vpack.c.bf16 %v6466_v11, %v6463_v10  ;;  %v8247_v10 = vld [vmem:[#allocation5_spill] sm:$0xff]  ;;  %v8253_v43 = vld [vmem:[#allocation10_spill] sm:$0xff] }
 0x278   : > { %vm2996_vm13 = vcmp.gt.f32.partialorder %v5956_v30, 0.0  ;;  %v3028_v0 = vmul.f32 0.01, %v5956_v30  ;;  %v3059_v44 = vsel %vm2995_vm11, %v5954_v40, %v3027_v34  ;;  %v4543_v7 = vpack.c.bf16 %v6524_v15, %v6517_v14  ;;  %v8251_v15 = vld [vmem:[#allocation8_spill] sm:$0xff]  ;;  %v8254_v34 = vld [vmem:[#allocation11_spill] sm:$0xff] }
 0x279   : > { %v3062_v51 = vsel %vm2998_vm12, %v5955_v52, %v3030_v20  ;;  %v6243_v52 = vld [vmem:[%s8200_s4 + $0x8] sm:$0xff]   ;;  %v8250_v14 = vmov 0.0   ;;  %v8255_v20 = vld [vmem:[#allocation12_spill] sm:$0xff] }
 0x27a   : > { %v3082_v37 = vpack.c.bf16 %v3062_v51, %v3061_v28  ;;  %v3060_v3 = vsel %vm2996_vm13, %v5956_v30, %v3028_v0  ;;  %v5817_v2 = vpop.f32.mrb[24].mxu0  ;;  %3418 = vst.msk [vmem:[#allocation3 + $0x38] sm:$0x1] %vm3413_vm8, %v8250_v14  ;;  %3414 = vst.msk [vmem:[#allocation3 + $0x18] sm:$0x1] %vm3413_vm8, %v8250_v14  ;;  %v4548_v30 = vpack.c.bf16 %v8254_v34, %v8253_v43  ;;  %v8256_v0 = vld [vmem:[#allocation13_spill] sm:$0xff] }
 0x27b   : > { %v3081_v39 = vpack.c.bf16 %v3060_v3, %v3059_v44  ;;  %v5957_v38 = vadd.f32 %v5817_v2, %v7098_v48  ;;  %v2912_v45 = vpop.f32.mrb[25].mxu0  ;;  %3422 = vst.msk [vmem:[#allocation3 + $0x58] sm:$0x1] %vm3413_vm8, %v8250_v14  ;;  %3426 = vst.msk [vmem:[#allocation3 + $0x78] sm:$0x1] %vm3413_vm8, %v8250_v14  ;;  %v4549_v28 = vpack.c.bf16 %v8256_v0, %v8255_v20  ;;  %v6244_v51 = vld [vmem:[%s8200_s4 + $0x10] sm:$0xff]  }
 0x27c   : > { %v5958_v49 = vadd.f32 %v2912_v45, %v7100_v27  ;;  %v5818_v33 = vpop.f32.mrb[26].mxu0  ;;  %3430 = vst.msk [vmem:[#allocation3 + $0x98] sm:$0x1] %vm3413_vm8, %v8250_v14  ;;  %3434 = vst.msk [vmem:[#allocation3 + $0xb8] sm:$0x1] %vm3413_vm8, %v8250_v14  ;;  %v8257_v44 = vld [vmem:[#allocation14_spill] sm:$0xff] }
 0x27d   : > { %v3033_v4 = vmul.f32 0.01, %v5957_v38  ;;  %v5959_v41 = vadd.f32 %v5818_v33, %v7102_v54  ;;  %v2915_v55 = vpop.f32.mrb[27].mxu0  ;;  %5847 = vmatprep.mubr.msk.bf16.mxu1 %vm3103_vm7, %v3081_v39  ;;  %vm3001_vm14 = vcmp.gt.f32.partialorder %v5957_v38, 0.0  ;;  %3438 = vst.msk [vmem:[#allocation3 + $0xd8] sm:$0x1] %vm3413_vm8, %v8250_v14 }
 0x27e   : > { %v3031_v53 = vmul.f32 0.01, %v5958_v49  ;;  %v5960_v5 = vadd.f32 %v2915_v55, %v7104_v25  ;;  %5848 = vmatmul.mubr.msk.bf16.gmra.mrb[52].mxu1 %vm3103_vm7, %v3082_v37  ;;  %vm2999_vm15 = vcmp.gt.f32.partialorder %v5958_v49, 0.0  ;;  %3442 = vst.msk [vmem:[#allocation3 + $0xf8] sm:$0x1] %vm3413_vm8, %v8250_v14  ;;  %v8258_v37 = vld [vmem:[#allocation15_spill] sm:$0xff] }
 0x27f   : > { %vm3002_vm0 = vcmp.gt.f32.partialorder %v5959_v41, 0.0  ;;  %v3034_v32 = vmul.f32 0.01, %v5959_v41  ;;  %v3065_v63 = vsel %vm3001_vm14, %v5957_v38, %v3033_v4  ;;  %3446 = vst.msk [vmem:[#allocation3 + $0x118] sm:$0x1] %vm3413_vm8, %v8250_v14  ;;  %v4550_v3 = vpack.c.bf16 %v8258_v37, %v8257_v44  ;;  %v8259_v2 = vld [vmem:[#allocation16_spill] sm:$0xff] }
 0x280   : > { %vm3000_vm2 = vcmp.gt.f32.partialorder %v5960_v5, 0.0  ;;  %v3032_v48 = vmul.f32 0.01, %v5960_v5  ;;  %v3063_v36 = vsel %vm2999_vm15, %v5958_v49, %v3031_v53  ;;  %3450 = vst.msk [vmem:[#allocation3 + $0x138] sm:$0x1] %vm3413_vm8, %v8250_v14  ;;  %v8260_v39 = vld [vmem:[#allocation17_spill] sm:$0xff] }
 0x281   : > { %v3066_v27 = vsel %vm3002_vm0, %v5959_v41, %v3034_v32  ;;  %3454 = vst.msk [vmem:[#allocation3 + $0x158] sm:$0x1] %vm3413_vm8, %v8250_v14  ;;  %3458 = vst.msk [vmem:[#allocation3 + $0x178] sm:$0x1] %vm3413_vm8, %v8250_v14  ;;  %v4551_v38 = vpack.c.bf16 %v8260_v39, %v8259_v2  ;;  %v6245_v45 = vld [vmem:[%s8200_s4 + $0x18] sm:$0xff]   ;;  %v8261_v49 = vld [vmem:[#allocation18_spill] sm:$0xff] }
 0x282   : > { %v3084_v29 = vpack.c.bf16 %v3066_v27, %v3065_v63  ;;  %v3064_v46 = vsel %vm3000_vm2, %v5960_v5, %v3032_v48  ;;  %v5821_v54 = vpop.f32.mrb[28].mxu0  ;;  %3462 = vst.msk [vmem:[#allocation3 + $0x198] sm:$0x1] %vm3413_vm8, %v8250_v14  ;;  %3466 = vst.msk [vmem:[#allocation3 + $0x1b8] sm:$0x1] %vm3413_vm8, %v8250_v14  ;;  %v8262_v33 = vld [vmem:[#allocation19_spill] sm:$0xff]  ;;  %v3550_v63 = vlaneseq }
 0x283   : > { %v3083_v42 = vpack.c.bf16 %v3064_v46, %v3063_v36  ;;  %v5961_v1 = vadd.f32 %v5821_v54, %v7106_v58  ;;  %v2928_v59 = vpop.f32.mrb[29].mxu0  ;;  %3470 = vst.msk [vmem:[#allocation3 + $0x1d8] sm:$0x1] %vm3413_vm8, %v8250_v14  ;;  %3474 = vst.msk [vmem:[#allocation3 + $0x1f8] sm:$0x1] %vm3413_vm8, %v8250_v14  ;;  %v4552_v4 = vpack.c.bf16 %v8262_v33, %v8261_v49  ;;  %v8263_v41 = vld [vmem:[#allocation20_spill] sm:$0xff] }
 0x284   : > { %v5962_v31 = vadd.f32 %v2928_v59, %v7108_v61  ;;  %v5822_v25 = vpop.f32.mrb[30].mxu0  ;;  %3478 = vst.msk [vmem:[#allocation3 + $0x218] sm:$0x1] %vm3413_vm8, %v8250_v14  ;;  %3482 = vst.msk [vmem:[#allocation3 + $0x238] sm:$0x1] %vm3413_vm8, %v8250_v14  ;;  %v8264_v55 = vld [vmem:[#allocation21_spill] sm:$0xff] }
 0x285   : > { %v3037_v26 = vmul.f32 0.01, %v5961_v1  ;;  %v5963_v56 = vadd.f32 %v5822_v25, %v7110_v47  ;;  %v2931_v62 = vpop.f32.mrb[31].mxu0  ;;  %5851 = vmatprep.mubr.msk.bf16.mxu1 %vm3103_vm7, %v3083_v42  ;;  %vm3005_vm3 = vcmp.gt.f32.partialorder %v5961_v1, 0.0  ;;  %v4553_v53 = vpack.c.bf16 %v8264_v55, %v8263_v41  ;;  %v8265_v5 = vld [vmem:[#allocation22_spill] sm:$0xff]  ;;  %v8266_v32 = vld [vmem:[#allocation23_spill] sm:$0xff] }
 0x286   : > { %v3035_v50 = vmul.f32 0.01, %v5962_v31  ;;  %v5964_v24 = vadd.f32 %v2931_v62, %v7112_v23  ;;  %5852 = vmatmul.mubr.msk.bf16.gmra.mrb[56].mxu1 %vm3103_vm7, %v3084_v29  ;;  %vm3003_vm4 = vcmp.gt.f32.partialorder %v5962_v31, 0.0  ;;  %v4540_v23 = vpack.c.bf16 %v6458_v9, %v6451_v8  ;;  %v8246_v9 = vld [vmem:[#allocation4_spill] sm:$0xff] }
 0x287   : > { %vm3006_vm5 = vcmp.gt.f32.partialorder %v5963_v56, 0.0  ;;  %v3038_v18 = vmul.f32 0.01, %v5963_v56  ;;  %v3069_v60 = vsel %vm3005_vm3, %v5961_v1, %v3037_v26  ;;  %v4544_v8 = vpack.c.bf16 %v6532_v17, %v6529_v16  ;;  %v8252_v16 = vld [vmem:[#allocation9_spill] sm:$0xff]  ;;  %v3516_v46 = vld [vmem:[%s8199_s3] sm:$0xff] }
 0x288   : > { %vm3004_vm6 = vcmp.gt.f32.partialorder %v5964_v24, 0.0  ;;  %v3036_v58 = vmul.f32 0.01, %v5964_v24  ;;  %v3067_v35 = vsel %vm3003_vm4, %v5962_v31, %v3035_v50  ;;  %v4545_v11 = vpack.c.bf16 %v8247_v10, %v8246_v9 }
 0x289   : > { %v3070_v61 = vsel %vm3006_vm5, %v5963_v56, %v3038_v18  ;;  %v4547_v17 = vpack.c.bf16 %v8252_v16, %v8251_v15  ;;  %v4554_v48 = vpack.c.bf16 %v8266_v32, %v8265_v5  ;;  %v3551_v27 = vshrl.u32 %v3550_v63, 7 }
 0x28a   : > { %v3086_v22 = vpack.c.bf16 %v3070_v61, %v3069_v60  ;;  %v3068_v40 = vsel %vm3004_vm6, %v5964_v24, %v3036_v58 }
 0x28b   : > { %v3085_v47 = vpack.c.bf16 %v3068_v40, %v3067_v35  ;;  %v3552_v36 = vsub.s32 0, %v3551_v27  ;;  %v3652_v29 = vsub.s32 1, %v3551_v27  ;;  %v3752_v31 = vsub.s32 2, %v3551_v27 }
 0x28c   : > { %v3852_v62 = vsub.s32 3, %v3551_v27  ;;  %v3952_v10 = vsub.s32 4, %v3551_v27 }
 0x28d   : > { %5855 = vmatprep.mubr.msk.bf16.mxu1 %vm3103_vm7, %v3085_v47  ;;  %v7373_v54 = vrot.slane %v3516_v46, %v3552_v36  ;;  %v7375_v42 = vrot.slane %v3516_v46, %v3652_v29 }
 0x28e   : > { %5856 = vmatmul.mubr.msk.bf16.gmra.mrb[60].mxu1 %vm3103_vm7, %v3086_v22  ;;  %vm3409_vm7 = vcmask 523264   ;;  %v7380_v22 = vrot.slane %v3516_v46, %v3752_v31  ;;  %v7389_v43 = vrot.slane %v3516_v46, %v3852_v62  ;;  %v7393_v0 = vrot.slane %v3516_v46, %v3952_v10 }
 0x28f   : > { %5861 = vmatprep.mubr.msk.bf16.mxu1 %vm285_vm1, %v4539_v57  ;;  %3420 = vst.msk [vmem:[#allocation3 + $0x48] sm:$0xff] %vm3409_vm7, %v8250_v14  ;;  %3410 = vst.msk [vmem:[#allocation3] sm:$0xff] %vm3409_vm7, %v8250_v14 }
 0x290   : > { %3411 = vst.msk [vmem:[#allocation3 + $0x8] sm:$0xff] %vm3409_vm7, %v8250_v14  ;;  %3412 = vst.msk [vmem:[#allocation3 + $0x10] sm:$0xff] %vm3409_vm7, %v8250_v14 }
 0x291   : > { %3415 = vst.msk [vmem:[#allocation3 + $0x20] sm:$0xff] %vm3409_vm7, %v8250_v14  ;;  %3416 = vst.msk [vmem:[#allocation3 + $0x28] sm:$0xff] %vm3409_vm7, %v8250_v14 }
 0x292   : > { %3417 = vst.msk [vmem:[#allocation3 + $0x30] sm:$0xff] %vm3409_vm7, %v8250_v14  ;;  %3419 = vst.msk [vmem:[#allocation3 + $0x40] sm:$0xff] %vm3409_vm7, %v8250_v14 }
 0x293   : > { %3421 = vst.msk [vmem:[#allocation3 + $0x50] sm:$0xff] %vm3409_vm7, %v8250_v14  ;;  %3423 = vst.msk [vmem:[#allocation3 + $0x60] sm:$0xff] %vm3409_vm7, %v8250_v14 }
 0x294   : > { %3424 = vst.msk [vmem:[#allocation3 + $0x68] sm:$0xff] %vm3409_vm7, %v8250_v14  ;;  %3425 = vst.msk [vmem:[#allocation3 + $0x70] sm:$0xff] %vm3409_vm7, %v8250_v14 }
 0x295   : > { %3427 = vst.msk [vmem:[#allocation3 + $0x80] sm:$0xff] %vm3409_vm7, %v8250_v14  ;;  %3428 = vst.msk [vmem:[#allocation3 + $0x88] sm:$0xff] %vm3409_vm7, %v8250_v14 }
 0x296   : > { %5862 = vmatmul.mubr.msk.bf16.vlgmr.msra.gmra.mrb[64].mxu1 %vm285_vm1, %v4540_v23  ;;  %3429 = vst.msk [vmem:[#allocation3 + $0x90] sm:$0xff] %vm3409_vm7, %v8250_v14  ;;  %3431 = vst.msk [vmem:[#allocation3 + $0xa0] sm:$0xff] %vm3409_vm7, %v8250_v14 }
 0x297   : > { %5894 = vmatpush3.bf16.msra.mxu1 %v7123_v21  ;;  %5865 = vmatprep.mubr.msk.bf16.mxu1 %vm285_vm1, %v4541_v19  ;;  %v4546_v21 = vpack.c.bf16 %v8249_v13, %v8248_v12  ;;  %3432 = vst.msk [vmem:[#allocation3 + $0xa8] sm:$0xff] %vm3409_vm7, %v8250_v14  ;;  %3433 = vst.msk [vmem:[#allocation3 + $0xb0] sm:$0xff] %vm3409_vm7, %v8250_v14  ;;  %v3518_v1 = vld [vmem:[#allocation3 + $0x7] sm:$0xff]  ;;  %v3519_v25 = vld [vmem:[#allocation3 + $0xf] sm:$0xff] }
 0x298   : > { %5895 = vmatprep.subr.bf16.mxu1 %v6243_v52  ;;  %3435 = vst.msk [vmem:[#allocation3 + $0xc0] sm:$0xff] %vm3409_vm7, %v8250_v14  ;;  %3436 = vst.msk [vmem:[#allocation3 + $0xc8] sm:$0xff] %vm3409_vm7, %v8250_v14  ;;  %v3618_v59 = vld [vmem:[#allocation3 + $0x8] sm:$0xff]  ;;  %v3619_v56 = vld [vmem:[#allocation3 + $0x10] sm:$0xff]  ;;  %v3554_v18 = vmul.f32 %v7373_v54, %v3518_v1  ;;  %v3555_v35 = vmul.f32 %v7373_v54, %v3519_v25 }
 0x299   : > { %3437 = vst.msk [vmem:[#allocation3 + $0xd0] sm:$0xff] %vm3409_vm7, %v8250_v14  ;;  %3439 = vst.msk [vmem:[#allocation3 + $0xe0] sm:$0xff] %vm3409_vm7, %v8250_v14  ;;  %v3654_v58 = vmul.f32 %v7375_v42, %v3618_v59  ;;  %v3655_v23 = vmul.f32 %v7375_v42, %v3619_v56  ;;  %v3718_v19 = vld [vmem:[#allocation3 + $0x9] sm:$0xff] }
 0x29a   : > { %3440 = vst.msk [vmem:[#allocation3 + $0xe8] sm:$0xff] %vm3409_vm7, %v8250_v14  ;;  %3441 = vst.msk [vmem:[#allocation3 + $0xf0] sm:$0xff] %vm3409_vm7, %v8250_v14 }
 0x29b   : > { %5896 = vmatpush3.bf16.msra.mxu1 %v6243_v52  ;;  %3443 = vst.msk [vmem:[#allocation3 + $0x100] sm:$0xff] %vm3409_vm7, %v8250_v14  ;;  %3444 = vst.msk [vmem:[#allocation3 + $0x108] sm:$0xff] %vm3409_vm7, %v8250_v14  ;;  %v3686_v13 = vadd.f32 %v3654_v58, %v3554_v18  ;;  %v3687_v15 = vadd.f32 %v3655_v23, %v3555_v35 }
 0x29c   : > { %3445 = vst.msk [vmem:[#allocation3 + $0x110] sm:$0xff] %vm3409_vm7, %v8250_v14  ;;  %3447 = vst.msk [vmem:[#allocation3 + $0x120] sm:$0xff] %vm3409_vm7, %v8250_v14  ;;  %5897 = vmatprep.subr.bf16.mxu1 %v6244_v51 }
 0x29d   : > { %3448 = vst.msk [vmem:[#allocation3 + $0x128] sm:$0xff] %vm3409_vm7, %v8250_v14  ;;  %3449 = vst.msk [vmem:[#allocation3 + $0x130] sm:$0xff] %vm3409_vm7, %v8250_v14 }
 0x29e   : > { %5866 = vmatmul.mubr.msk.bf16.gmra.mrb[68].mxu1 %vm285_vm1, %v4542_v6  ;;  %3451 = vst.msk [vmem:[#allocation3 + $0x140] sm:$0xff] %vm3409_vm7, %v8250_v14  ;;  %3452 = vst.msk [vmem:[#allocation3 + $0x148] sm:$0xff] %vm3409_vm7, %v8250_v14 }
 0x29f   : > { %5869 = vmatprep.mubr.msk.bf16.mxu1 %vm285_vm1, %v4543_v7  ;;  %3453 = vst.msk [vmem:[#allocation3 + $0x150] sm:$0xff] %vm3409_vm7, %v8250_v14  ;;  %3455 = vst.msk [vmem:[#allocation3 + $0x160] sm:$0xff] %vm3409_vm7, %v8250_v14  ;;  %5898 = vmatpush3.bf16.msra.mxu1 %v6244_v51  ;;  %v3719_v7 = vld [vmem:[#allocation3 + $0x11] sm:$0xff] }
 0x2a0   : > { %3456 = vst.msk [vmem:[#allocation3 + $0x168] sm:$0xff] %vm3409_vm7, %v8250_v14  ;;  %3457 = vst.msk [vmem:[#allocation3 + $0x170] sm:$0xff] %vm3409_vm7, %v8250_v14  ;;  %5899 = vmatprep.subr.bf16.mxu1 %v6245_v45  ;;  %v3755_v16 = vmul.f32 %v7380_v22, %v3719_v7 }
 0x2a1   : > { %3459 = vst.msk [vmem:[#allocation3 + $0x180] sm:$0xff] %vm3409_vm7, %v8250_v14  ;;  %3460 = vst.msk [vmem:[#allocation3 + $0x188] sm:$0xff] %vm3409_vm7, %v8250_v14 }
 0x2a2   : > { %3461 = vst.msk [vmem:[#allocation3 + $0x190] sm:$0xff] %vm3409_vm7, %v8250_v14  ;;  %3463 = vst.msk [vmem:[#allocation3 + $0x1a0] sm:$0xff] %vm3409_vm7, %v8250_v14 }
 0x2a3   : > { %3464 = vst.msk [vmem:[#allocation3 + $0x1a8] sm:$0xff] %vm3409_vm7, %v8250_v14  ;;  %3465 = vst.msk [vmem:[#allocation3 + $0x1b0] sm:$0xff] %vm3409_vm7, %v8250_v14  ;;  %5900 = vmatpush3.bf16.msra.mxu1 %v6245_v45  ;;  %v3787_v45 = vadd.f32 %v3755_v16, %v3687_v15 }
 0x2a4   : > { %3467 = vst.msk [vmem:[#allocation3 + $0x1c0] sm:$0xff] %vm3409_vm7, %v8250_v14  ;;  %3468 = vst.msk [vmem:[#allocation3 + $0x1c8] sm:$0xff] %vm3409_vm7, %v8250_v14 }
 0x2a5   : > { %3469 = vst.msk [vmem:[#allocation3 + $0x1d0] sm:$0xff] %vm3409_vm7, %v8250_v14  ;;  %3471 = vst.msk [vmem:[#allocation3 + $0x1e0] sm:$0xff] %vm3409_vm7, %v8250_v14 }
 0x2a6   : > { %5870 = vmatmul.mubr.msk.bf16.gmra.mrb[72].mxu1 %vm285_vm1, %v4544_v8  ;;  %3472 = vst.msk [vmem:[#allocation3 + $0x1e8] sm:$0xff] %vm3409_vm7, %v8250_v14  ;;  %3473 = vst.msk [vmem:[#allocation3 + $0x1f0] sm:$0xff] %vm3409_vm7, %v8250_v14  ;;  %v4153_v8 = vsub.s32 6, %v3551_v27 }
 0x2a7   : > { %5873 = vmatprep.mubr.msk.bf16.mxu1 %vm285_vm1, %v4545_v11  ;;  %3475 = vst.msk [vmem:[#allocation3 + $0x200] sm:$0xff] %vm3409_vm7, %v8250_v14  ;;  %3476 = vst.msk [vmem:[#allocation3 + $0x208] sm:$0xff] %vm3409_vm7, %v8250_v14  ;;  %v4052_v11 = vsub.s32 5, %v3551_v27 }
 0x2a8   : > { %3477 = vst.msk [vmem:[#allocation3 + $0x210] sm:$0xff] %vm3409_vm7, %v8250_v14  ;;  %3479 = vst.msk [vmem:[#allocation3 + $0x220] sm:$0xff] %vm3409_vm7, %v8250_v14  ;;  %v7391_v34 = vrot.slane %v3516_v46, %v4153_v8 }
 0x2a9   : > { %3480 = vst.msk [vmem:[#allocation3 + $0x228] sm:$0xff] %vm3409_vm7, %v8250_v14  ;;  %3481 = vst.msk [vmem:[#allocation3 + $0x230] sm:$0xff] %vm3409_vm7, %v8250_v14  ;;  %v4253_v14 = vsub.s32 7, %v3551_v27  ;;  %v7413_v27 = vld [vmem:[%s8199_s3 + $0x8] ss:$0 sm:$0xff] }
 0x2ae   : > { %5874 = vmatmul.mubr.msk.bf16.gmra.mrb[76].mxu1 %vm285_vm1, %v4546_v21  ;;  %v3754_v21 = vmul.f32 %v7380_v22, %v3718_v19 }
 0x2af   : > { %5877 = vmatprep.mubr.msk.bf16.mxu1 %vm285_vm1, %v4547_v17 }
 0x2b0   : > { %v3786_v37 = vadd.f32 %v3754_v21, %v3686_v13 }
 0x2b6   : > { %5878 = vmatmul.mubr.msk.bf16.gmra.mrb[80].mxu1 %vm285_vm1, %v4548_v30 }
 0x2b7   : > { %5881 = vmatprep.mubr.msk.bf16.mxu1 %vm285_vm1, %v4549_v28  ;;  %v7395_v28 = vrot.slane %v3516_v46, %v4052_v11 }
 0x2be   : > { %5882 = vmatmul.mubr.msk.bf16.gmra.mrb[84].mxu1 %vm285_vm1, %v4550_v3  ;;  %v7397_v3 = vrot.slane %v3516_v46, %v4253_v14 }
 0x2bf   : > { %5885 = vmatprep.mubr.msk.bf16.mxu1 %vm285_vm1, %v4551_v38 }
 0x2c6   : > { %5886 = vmatmul.mubr.msk.bf16.gmra.mrb[88].mxu1 %vm285_vm1, %v4552_v4 }
 0x2c7   : > { %5889 = vmatprep.mubr.msk.bf16.mxu1 %vm285_vm1, %v4553_v53 }
 0x2ce   : > { %5890 = vmatmul.mubr.msk.bf16.gmra.mrb[92].mxu1 %vm285_vm1, %v4554_v48 }
 0x329   : > { %v5829_v26 = vpop.f32.mrb[32].mxu1 }
 0x32a   : > { %vm3315_vm1 = vcmp.gt.f32.partialorder %v5829_v26, 0.0  ;;  %v3347_v50 = vmul.f32 0.01, %v5829_v26  ;;  %v3186_v24 = vpop.f32.mrb[33].mxu1 }
 0x32b   : > { %vm3313_vm9 = vcmp.gt.f32.partialorder %v3186_v24, 0.0  ;;  %v3345_v60 = vmul.f32 0.01, %v3186_v24  ;;  %v5830_v61 = vpop.f32.mrb[34].mxu1 }
 0x32c   : > { %v3379_v40 = vsel %vm3315_vm1, %v5829_v26, %v3347_v50  ;;  %vm3316_vm10 = vcmp.gt.f32.partialorder %v5830_v61, 0.0  ;;  %v3348_v47 = vmul.f32 0.01, %v5830_v61  ;;  %v3189_v57 = vpop.f32.mrb[35].mxu1 }
 0x32d   : > { %3486 = vst.msk [vmem:[#allocation3 + $0x48] sm:$0xff] %vm3409_vm7, %v3379_v40  ;;  %v3377_v52 = vsel %vm3313_vm9, %v3186_v24, %v3345_v60  ;;  %vm3314_vm11 = vcmp.gt.f32.partialorder %v3189_v57, 0.0  ;;  %v3346_v6 = vmul.f32 0.01, %v3189_v57 }
 0x32e   : > { %3484 = vst.msk [vmem:[#allocation3 + $0x28] sm:$0xff] %vm3409_vm7, %v3377_v52  ;;  %v3380_v9 = vsel %vm3316_vm10, %v5830_v61, %v3348_v47 }
 0x32f   : > { %3487 = vst.msk [vmem:[#allocation3 + $0x50] sm:$0xff] %vm3409_vm7, %v3380_v9  ;;  %v3378_v12 = vsel %vm3314_vm11, %v3189_v57, %v3346_v6 }
 0x330   : > { %3485 = vst.msk [vmem:[#allocation3 + $0x30] sm:$0xff] %vm3409_vm7, %v3378_v12 }
 0x331   : > { %v5833_v17 = vpop.f32.mrb[36].mxu1 }
 0x332   : > { %vm3319_vm12 = vcmp.gt.f32.partialorder %v5833_v17, 0.0  ;;  %v3351_v30 = vmul.f32 0.01, %v5833_v17  ;;  %v3202_v20 = vpop.f32.mrb[37].mxu1 }
 0x333   : > { %vm3317_vm13 = vcmp.gt.f32.partialorder %v3202_v20, 0.0  ;;  %v3349_v51 = vmul.f32 0.01, %v3202_v20  ;;  %v5834_v44 = vpop.f32.mrb[38].mxu1 }
 0x334   : > { %v3383_v2 = vsel %vm3319_vm12, %v5833_v17, %v3351_v30  ;;  %vm3320_vm14 = vcmp.gt.f32.partialorder %v5834_v44, 0.0  ;;  %v3352_v39 = vmul.f32 0.01, %v5834_v44  ;;  %v3205_v38 = vpop.f32.mrb[39].mxu1  ;;  %v7399_v49 = vld [vmem:[#allocation3 + $0x47] sm:$0xff] }
 0x335   : > { %v7401_v33 = vld [vmem:[#allocation3 + $0x48] sm:$0xff]  ;;  %3490 = vst.msk [vmem:[#allocation3 + $0x88] sm:$0xff] %vm3409_vm7, %v3383_v2  ;;  %v3381_v55 = vsel %vm3317_vm13, %v3202_v20, %v3349_v51  ;;  %vm3318_vm15 = vcmp.gt.f32.partialorder %v3205_v38, 0.0  ;;  %v3350_v53 = vmul.f32 0.01, %v3205_v38  ;;  %v4155_v5 = vmul.f32 %v7391_v34, %v7399_v49 }
 0x336   : > { %v3520_v4 = vld [vmem:[#allocation3 + $0x27] sm:$0xff]  ;;  %3488 = vst.msk [vmem:[#allocation3 + $0x68] sm:$0xff] %vm3409_vm7, %v3381_v55  ;;  %v3384_v63 = vsel %vm3320_vm14, %v5834_v44, %v3352_v39  ;;  %v7416_v29 = vld [vmem:[#allocation3 + $0x4f] sm:$0xff]  ;;  %v4255_v62 = vmul.f32 %v7397_v3, %v7401_v33 }
 0x337   : > { %v3620_v41 = vld [vmem:[#allocation3 + $0x28] sm:$0xff]  ;;  %v3556_v32 = vmul.f32 %v7373_v54, %v3520_v4  ;;  %v3854_v36 = vmul.f32 %v7389_v43, %v3520_v4  ;;  %v7418_v46 = vld [vmem:[#allocation3 + $0x50] sm:$0xff]  ;;  %3491 = vst.msk [vmem:[#allocation3 + $0x90] sm:$0xff] %vm3409_vm7, %v3384_v63  ;;  %v3382_v25 = vsel %vm3318_vm15, %v3205_v38, %v3350_v53  ;;  %v4156_v56 = vmul.f32 %v7391_v34, %v7416_v29 }
 0x338   : > { %v3656_v48 = vmul.f32 %v7375_v42, %v3620_v41  ;;  %v3521_v1 = vld [vmem:[#allocation3 + $0x2f] sm:$0xff]  ;;  %v3954_v26 = vmul.f32 %v7393_v0, %v3620_v41  ;;  %3489 = vst.msk [vmem:[#allocation3 + $0x70] sm:$0xff] %vm3409_vm7, %v3382_v25  ;;  %v4256_v19 = vmul.f32 %v7397_v3, %v7418_v46  ;;  %v3856_v41 = vmul.f32 %v7399_v49, %v7389_v43 }
 0x339   : > { %v3621_v59 = vld [vmem:[#allocation3 + $0x30] sm:$0xff]  ;;  %v3557_v50 = vmul.f32 %v7373_v54, %v3521_v1  ;;  %v3855_v58 = vmul.f32 %v7389_v43, %v3521_v1  ;;  %v3886_v60 = vadd.f32 %v3854_v36, %v3786_v37  ;;  %v5837_v40 = vpop.f32.mrb[40].mxu1  ;;  %v3857_v55 = vmul.f32 %v7416_v29, %v7389_v43 }
 0x33a   : > { %v3720_v31 = vld [vmem:[#allocation3 + $0x29] sm:$0xff]  ;;  %v3657_v24 = vmul.f32 %v7375_v42, %v3621_v59  ;;  %v3721_v18 = vld [vmem:[#allocation3 + $0x31] sm:$0xff]  ;;  %v3955_v47 = vmul.f32 %v7393_v0, %v3621_v59  ;;  %vm3323_vm0 = vcmp.gt.f32.partialorder %v5837_v40, 0.0  ;;  %v3355_v52 = vmul.f32 0.01, %v5837_v40  ;;  %v3218_v6 = vpop.f32.mrb[41].mxu1 }
 0x33b   : > { %v7430_v61 = vld [vmem:[#allocation3 + $0x49] sm:$0xff]  ;;  %v7432_v35 = vld [vmem:[#allocation3 + $0x51] sm:$0xff]  ;;  %v4054_v57 = vmul.f32 %v7395_v28, %v3720_v31  ;;  %v4055_v23 = vmul.f32 %v7395_v28, %v3721_v18  ;;  %v3887_v7 = vadd.f32 %v3855_v58, %v3787_v45  ;;  %v3986_v8 = vadd.f32 %v3954_v26, %v3886_v60  ;;  %v5838_v10 = vpop.f32.mrb[42].mxu1 }
 0x33c   : > { %vm3321_vm2 = vcmp.gt.f32.partialorder %v3218_v6, 0.0  ;;  %v3353_v9 = vmul.f32 0.01, %v3218_v6  ;;  %v4355_v11 = vmul.f32 %v7413_v27, %v7430_v61  ;;  %v4356_v12 = vmul.f32 %v7413_v27, %v7432_v35  ;;  %v3221_v14 = vpop.f32.mrb[43].mxu1 }
 0x33d   : > { %v3387_v13 = vsel %vm3323_vm0, %v5837_v40, %v3355_v52  ;;  %vm3324_vm3 = vcmp.gt.f32.partialorder %v5838_v10, 0.0  ;;  %v3356_v21 = vmul.f32 0.01, %v5838_v10  ;;  %v3987_v15 = vadd.f32 %v3955_v47, %v3887_v7  ;;  %v7465_v7 = vld [vmem:[#allocation3 + $0x68] sm:$0xff] }
 0x33e   : > { %3494 = vst.msk [vmem:[#allocation3 + $0xc8] sm:$0xff] %vm3409_vm7, %v3387_v13  ;;  %v3385_v16 = vsel %vm3321_vm2, %v3218_v6, %v3353_v9  ;;  %vm3322_vm4 = vcmp.gt.f32.partialorder %v3221_v14, 0.0  ;;  %v3354_v17 = vmul.f32 0.01, %v3221_v14  ;;  %v4086_v30 = vadd.f32 %v4054_v57, %v3986_v8  ;;  %v7460_v57 = vld [vmem:[#allocation3 + $0x67] sm:$0xff] }
 0x33f   : > { %3492 = vst.msk [vmem:[#allocation3 + $0xa8] sm:$0xff] %vm3409_vm7, %v3385_v16  ;;  %v3388_v20 = vsel %vm3324_vm3, %v5838_v10, %v3356_v21  ;;  %v4087_v51 = vadd.f32 %v4055_v23, %v3987_v15  ;;  %v3688_v44 = vadd.f32 %v3656_v48, %v3556_v32  ;;  %v3689_v37 = vadd.f32 %v3657_v24, %v3557_v50  ;;  %v7462_v23 = vld [vmem:[#allocation3 + $0x6f] sm:$0xff] }
 0x340   : > { %3495 = vst.msk [vmem:[#allocation3 + $0xd0] sm:$0xff] %vm3409_vm7, %v3388_v20  ;;  %v3386_v2 = vsel %vm3322_vm4, %v3221_v14, %v3354_v17  ;;  %v4187_v39 = vadd.f32 %v4155_v5, %v4086_v30  ;;  %v3756_v38 = vmul.f32 %v7380_v22, %v3720_v31  ;;  %v3757_v45 = vmul.f32 %v7380_v22, %v3721_v18  ;;  %v7472_v13 = vld [vmem:[#allocation3 + $0x69] sm:$0xff] }
 0x341   : > { %3493 = vst.msk [vmem:[#allocation3 + $0xb0] sm:$0xff] %vm3409_vm7, %v3386_v2  ;;  %v4188_v4 = vadd.f32 %v4156_v56, %v4087_v51  ;;  %v3956_v53 = vmul.f32 %v7401_v33, %v7393_v0  ;;  %v5841_v32 = vpop.f32.mrb[44].mxu1  ;;  %v3957_v36 = vmul.f32 %v7418_v46, %v7393_v0  ;;  %v4056_v25 = vmul.f32 %v7430_v61, %v7395_v28 }
 0x342   : > { %v4287_v48 = vadd.f32 %v4255_v62, %v4187_v39  ;;  %v3788_v63 = vadd.f32 %v3756_v38, %v3688_v44  ;;  %v3789_v5 = vadd.f32 %v3757_v45, %v3689_v37  ;;  %vm3327_vm5 = vcmp.gt.f32.partialorder %v5841_v32, 0.0  ;;  %v3234_v59 = vpop.f32.mrb[45].mxu1  ;;  %v7482_v37 = vld [vmem:[#allocation3 + $0x71] sm:$0xff] }
 0x343   : > { %v3359_v1 = vmul.f32 0.01, %v5841_v32  ;;  %v4288_v31 = vadd.f32 %v4256_v19, %v4188_v4  ;;  %vm3325_vm6 = vcmp.gt.f32.partialorder %v3234_v59, 0.0  ;;  %v3357_v26 = vmul.f32 0.01, %v3234_v59  ;;  %v5842_v56 = vpop.f32.mrb[46].mxu1 }
 0x344   : > { %v4387_v50 = vadd.f32 %v4355_v11, %v4287_v48  ;;  %v3888_v24 = vadd.f32 %v3856_v41, %v3788_v63  ;;  %vm3328_vm8 = vcmp.gt.f32.partialorder %v5842_v56, 0.0  ;;  %v3360_v62 = vmul.f32 0.01, %v5842_v56  ;;  %v3237_v58 = vpop.f32.mrb[47].mxu1 }
 0x345   : > { %v3391_v18 = vsel %vm3327_vm5, %v5841_v32, %v3359_v1  ;;  %v4388_v60 = vadd.f32 %v4356_v12, %v4288_v31  ;;  %v3389_v40 = vsel %vm3325_vm6, %v3234_v59, %v3357_v26  ;;  %vm3326_vm1 = vcmp.gt.f32.partialorder %v3237_v58, 0.0  ;;  %v7470_v12 = vld [vmem:[#allocation3 + $0x70] sm:$0xff] }
 0x346   : > { %3498 = vst.msk [vmem:[#allocation3 + $0x108] sm:$0xff] %vm3409_vm7, %v3391_v18  ;;  %v3358_v47 = vmul.f32 0.01, %v3237_v58  ;;  %vm4419_vm9 = vcmp.gt.f32.partialorder %v4387_v50, 0.0  ;;  %3496 = vst.msk [vmem:[#allocation3 + $0xe8] sm:$0xff] %vm3409_vm7, %v3389_v40  ;;  %v3392_v19 = vsel %vm3328_vm8, %v5842_v56, %v3360_v62  ;;  %v3889_v9 = vadd.f32 %v3857_v55, %v3789_v5 }
 0x347   : > { %vm4420_vm10 = vcmp.gt.f32.partialorder %v4388_v60, 0.0  ;;  %v4451_v52 = vmul.f32 0.01, %v4387_v50  ;;  %v4452_v6 = vmul.f32 0.01, %v4388_v60  ;;  %3499 = vst.msk [vmem:[#allocation3 + $0x110] sm:$0xff] %vm3409_vm7, %v3392_v19  ;;  %v3988_v10 = vadd.f32 %v3956_v53, %v3888_v24 }
 0x348   : > { %v3390_v8 = vsel %vm3326_vm1, %v3237_v58, %v3358_v47  ;;  %v4057_v11 = vmul.f32 %v7432_v35, %v7395_v28  ;;  %v4157_v15 = vmul.f32 %v7391_v34, %v7460_v57  ;;  %v4158_v16 = vmul.f32 %v7391_v34, %v7462_v23 }
 0x349   : > { %3497 = vst.msk [vmem:[#allocation3 + $0xf0] sm:$0xff] %vm3409_vm7, %v3390_v8  ;;  %v4483_v21 = vsel %vm4419_vm9, %v4387_v50, %v4451_v52  ;;  %v4484_v14 = vsel %vm4420_vm10, %v4388_v60, %v4452_v6  ;;  %v5845_v17 = vpop.f32.mrb[48].mxu1  ;;  %v3989_v20 = vadd.f32 %v3957_v36, %v3889_v9  ;;  %v4088_v51 = vadd.f32 %v4056_v25, %v3988_v10 }
 0x34a   : > { %v4515_v30 = vpack.c.bf16 %v4484_v14, %v4483_v21  ;;  %v4257_v44 = vmul.f32 %v7397_v3, %v7465_v7  ;;  %vm3331_vm11 = vcmp.gt.f32.partialorder %v5845_v17, 0.0  ;;  %v3363_v2 = vmul.f32 0.01, %v5845_v17  ;;  %v3250_v39 = vpop.f32.mrb[49].mxu1 }
 0x34b   : > { %v4258_v38 = vmul.f32 %v7397_v3, %v7470_v12  ;;  %v4357_v45 = vmul.f32 %v7413_v27, %v7472_v13  ;;  %vm3329_vm12 = vcmp.gt.f32.partialorder %v3250_v39, 0.0  ;;  %v3361_v4 = vmul.f32 0.01, %v3250_v39  ;;  %v5846_v41 = vpop.f32.mrb[50].mxu1 }
 0x34c   : > { %5901 = vmatprep.mubr.msk.bf16.mxu1 %vm3409_vm7, %v4515_v30  ;;  %v4089_v55 = vadd.f32 %v4057_v11, %v3989_v20  ;;  %v4189_v53 = vadd.f32 %v4157_v15, %v4088_v51  ;;  %v3395_v32 = vsel %vm3331_vm11, %v5845_v17, %v3363_v2  ;;  %vm3332_vm13 = vcmp.gt.f32.partialorder %v5846_v41, 0.0  ;;  %v3253_v63 = vpop.f32.mrb[51].mxu1  ;;  %v7511_v15 = vld [vmem:[#allocation3 + $0x87] sm:$0xff]  ;;  %v7514_v20 = vld [vmem:[#allocation3 + $0x8f] sm:$0xff] }
 0x34d   : > { %v3364_v48 = vmul.f32 0.01, %v5846_v41  ;;  %v4358_v5 = vmul.f32 %v7413_v27, %v7482_v37  ;;  %3502 = vst.msk [vmem:[#allocation3 + $0x148] sm:$0xff] %vm3409_vm7, %v3395_v32  ;;  %v3393_v36 = vsel %vm3329_vm12, %v3250_v39, %v3361_v4  ;;  %vm3330_vm14 = vcmp.gt.f32.partialorder %v3253_v63, 0.0  ;;  %v7516_v51 = vld [vmem:[#allocation3 + $0x88] sm:$0xff]  ;;  %v7520_v4 = vld [vmem:[#allocation3 + $0x90] sm:$0xff] }
 0x34e   : > { %v3362_v1 = vmul.f32 0.01, %v3253_v63  ;;  %v4190_v59 = vadd.f32 %v4158_v16, %v4089_v55  ;;  %3500 = vst.msk [vmem:[#allocation3 + $0x128] sm:$0xff] %vm3409_vm7, %v3393_v36  ;;  %v4289_v25 = vadd.f32 %v4257_v44, %v4189_v53  ;;  %v3558_v26 = vmul.f32 %v7399_v49, %v7373_v54  ;;  %v7524_v55 = vld [vmem:[#allocation3 + $0x91] sm:$0xff] }
 0x34f   : > { %v3396_v31 = vsel %vm3332_vm13, %v5846_v41, %v3364_v48  ;;  %v3559_v56 = vmul.f32 %v7416_v29, %v7373_v54  ;;  %v3658_v18 = vmul.f32 %v7401_v33, %v7375_v42  ;;  %v3659_v62 = vmul.f32 %v7418_v46, %v7375_v42  ;;  %v7522_v41 = vld [vmem:[#allocation3 + $0x89] sm:$0xff] }
 0x350   : > { %3503 = vst.msk [vmem:[#allocation3 + $0x150] sm:$0xff] %vm3409_vm7, %v3396_v31  ;;  %v3394_v50 = vsel %vm3330_vm14, %v3253_v63, %v3362_v1  ;;  %v4290_v24 = vadd.f32 %v4258_v38, %v4190_v59  ;;  %v4389_v58 = vadd.f32 %v4357_v45, %v4289_v25  ;;  %v3758_v60 = vmul.f32 %v7430_v61, %v7380_v22 }
 0x351   : > { %3501 = vst.msk [vmem:[#allocation3 + $0x130] sm:$0xff] %vm3409_vm7, %v3394_v50  ;;  %v3759_v49 = vmul.f32 %v7432_v35, %v7380_v22  ;;  %v3858_v29 = vmul.f32 %v7460_v57, %v7389_v43  ;;  %v5849_v47 = vpop.f32.mrb[52].mxu1  ;;  %v3690_v19 = vadd.f32 %v3658_v18, %v3558_v26  ;;  %v3691_v52 = vadd.f32 %v3659_v62, %v3559_v56 }
 0x352   : > { %v4390_v40 = vadd.f32 %v4358_v5, %v4290_v24  ;;  %v3859_v33 = vmul.f32 %v7462_v23, %v7389_v43  ;;  %vm4421_vm15 = vcmp.gt.f32.partialorder %v4389_v58, 0.0  ;;  %v4453_v46 = vmul.f32 0.01, %v4389_v58  ;;  %v3266_v61 = vpop.f32.mrb[53].mxu1 }
 0x353   : > { %vm3335_vm0 = vcmp.gt.f32.partialorder %v5849_v47, 0.0  ;;  %v3367_v6 = vmul.f32 0.01, %v5849_v47  ;;  %v3790_v9 = vadd.f32 %v3758_v60, %v3690_v19  ;;  %v3791_v10 = vadd.f32 %v3759_v49, %v3691_v52  ;;  %v5850_v14 = vpop.f32.mrb[54].mxu1 }
 0x354   : > { %vm4422_vm2 = vcmp.gt.f32.partialorder %v4390_v40, 0.0  ;;  %v4454_v8 = vmul.f32 0.01, %v4390_v40  ;;  %v4485_v35 = vsel %vm4421_vm15, %v4389_v58, %v4453_v46  ;;  %vm3333_vm3 = vcmp.gt.f32.partialorder %v3266_v61, 0.0  ;;  %v3269_v44 = vpop.f32.mrb[55].mxu1 }
 0x355   : > { %v3399_v11 = vsel %vm3335_vm0, %v5849_v47, %v3367_v6  ;;  %v3365_v21 = vmul.f32 0.01, %v3266_v61  ;;  %vm3336_vm4 = vcmp.gt.f32.partialorder %v5850_v14, 0.0  ;;  %v3368_v17 = vmul.f32 0.01, %v5850_v14 }
 0x356   : > { %v4486_v16 = vsel %vm4422_vm2, %v4390_v40, %v4454_v8  ;;  %3506 = vst.msk [vmem:[#allocation3 + $0x188] sm:$0xff] %vm3409_vm7, %v3399_v11  ;;  %v3890_v30 = vadd.f32 %v3858_v29, %v3790_v9  ;;  %v3891_v38 = vadd.f32 %v3859_v33, %v3791_v10  ;;  %v3958_v45 = vmul.f32 %v7465_v7, %v7393_v0  ;;  %v7570_v8 = vld [vmem:[#allocation3 + $0xa7] sm:$0xff] }
 0x357   : > { %v4516_v2 = vpack.c.bf16 %v4486_v16, %v4485_v35  ;;  %v3397_v39 = vsel %vm3333_vm3, %v3266_v61, %v3365_v21  ;;  %v3400_v53 = vsel %vm3336_vm4, %v5850_v14, %v3368_v17  ;;  %v3959_v32 = vmul.f32 %v7470_v12, %v7393_v0  ;;  %v7572_v61 = vld [vmem:[#allocation3 + $0xaf] sm:$0xff] }
 0x358   : > { %3504 = vst.msk [vmem:[#allocation3 + $0x168] sm:$0xff] %vm3409_vm7, %v3397_v39  ;;  %v4058_v48 = vmul.f32 %v7472_v13, %v7395_v28  ;;  %v4059_v63 = vmul.f32 %v7482_v37, %v7395_v28  ;;  %3507 = vst.msk [vmem:[#allocation3 + $0x190] sm:$0xff] %vm3409_vm7, %v3400_v53  ;;  %v3990_v5 = vadd.f32 %v3958_v45, %v3890_v30  ;;  %vm3334_vm5 = vcmp.gt.f32.partialorder %v3269_v44, 0.0  ;;  %v7580_v35 = vld [vmem:[#allocation3 + $0xa8] sm:$0xff]  ;;  %v7584_v17 = vld [vmem:[#allocation3 + $0xb0] sm:$0xff] }
 0x359   : > { %5902 = vmatmul.mubr.msk.bf16.vlgmr.msra.gmra.mrb[64].mxu1 %vm3409_vm7, %v4516_v2  ;;  %v4159_v36 = vmul.f32 %v7391_v34, %v7511_v15  ;;  %v4160_v1 = vmul.f32 %v7391_v34, %v7514_v20  ;;  %v4259_v59 = vmul.f32 %v7397_v3, %v7516_v51  ;;  %v3991_v31 = vadd.f32 %v3959_v32, %v3891_v38  ;;  %v7547_v50 = vpop.f32.mrb[56].mxu1  ;;  %v7586_v30 = vld [vmem:[#allocation3 + $0xa9] sm:$0xff] }
 0x35a   : > { %v4260_v25 = vmul.f32 %v7397_v3, %v7520_v4  ;;  %v4359_v26 = vmul.f32 %v7413_v27, %v7522_v41  ;;  %v4360_v56 = vmul.f32 %v7413_v27, %v7524_v55  ;;  %v4090_v24 = vadd.f32 %v4058_v48, %v3990_v5  ;;  %v7551_v58 = vpop.f32.mrb[57].mxu1 }
 0x35b   : > { %v3366_v18 = vmul.f32 0.01, %v3269_v44  ;;  %v3560_v62 = vmul.f32 %v7460_v57, %v7373_v54  ;;  %v4091_v60 = vadd.f32 %v4059_v63, %v3991_v31  ;;  %v3561_v49 = vmul.f32 %v7462_v23, %v7373_v54  ;;  %v7559_v47 = vpop.f32.mrb[58].mxu1  ;;  %v7596_v63 = vld [vmem:[#allocation3 + $0xb1] sm:$0xff] }
 0x35c   : > { %v3660_v29 = vmul.f32 %v7465_v7, %v7375_v42  ;;  %v3661_v40 = vmul.f32 %v7470_v12, %v7375_v42  ;;  %v4191_v19 = vadd.f32 %v4159_v36, %v4090_v24  ;;  %v3760_v33 = vmul.f32 %v7472_v13, %v7380_v22  ;;  %v7565_v46 = vpop.f32.mrb[59].mxu1 }
 0x35d   : > { %v3398_v52 = vsel %vm3334_vm5, %v3269_v44, %v3366_v18  ;;  %v3761_v57 = vmul.f32 %v7482_v37, %v7380_v22  ;;  %v4192_v6 = vadd.f32 %v4160_v1, %v4091_v60  ;;  %v3860_v12 = vmul.f32 %v7511_v15, %v7389_v43 }
 0x35e   : > { %3505 = vst.msk [vmem:[#allocation3 + $0x170] sm:$0xff] %vm3409_vm7, %v3398_v52  ;;  %v3692_v23 = vadd.f32 %v3660_v29, %v3560_v62  ;;  %v3693_v7 = vadd.f32 %v3661_v40, %v3561_v49  ;;  %v4291_v9 = vadd.f32 %v4259_v59, %v4191_v19  ;;  %v3861_v13 = vmul.f32 %v7514_v20, %v7389_v43 }
 0x35f   : > { %v3960_v37 = vmul.f32 %v7516_v51, %v7393_v0  ;;  %v3961_v10 = vmul.f32 %v7520_v4, %v7393_v0  ;;  %v4292_v11 = vadd.f32 %v4260_v25, %v4192_v6  ;;  %v4060_v16 = vmul.f32 %v7522_v41, %v7395_v28 }
 0x360   : > { %v3792_v21 = vadd.f32 %v3760_v33, %v3692_v23  ;;  %v3793_v14 = vadd.f32 %v3761_v57, %v3693_v7  ;;  %v4391_v44 = vadd.f32 %v4359_v26, %v4291_v9  ;;  %v4061_v2 = vmul.f32 %v7524_v55, %v7395_v28 }
 0x361   : > { %v4161_v39 = vmul.f32 %v7391_v34, %v7570_v8  ;;  %v4162_v38 = vmul.f32 %v7391_v34, %v7572_v61  ;;  %v4392_v45 = vadd.f32 %v4360_v56, %v4292_v11  ;;  %v4261_v48 = vmul.f32 %v7397_v3, %v7580_v35  ;;  %v7598_v5 = vpop.f32.mrb[60].mxu1 }
 0x362   : > { %v3892_v53 = vadd.f32 %v3860_v12, %v3792_v21  ;;  %v3893_v32 = vadd.f32 %v3861_v13, %v3793_v14  ;;  %vm4423_vm6 = vcmp.gt.f32.partialorder %v4391_v44, 0.0  ;;  %v4455_v36 = vmul.f32 0.01, %v4391_v44  ;;  %v7604_v31 = vpop.f32.mrb[61].mxu1 }
 0x363   : > { %v4262_v1 = vmul.f32 %v7397_v3, %v7584_v17  ;;  %v4361_v59 = vmul.f32 %v7413_v27, %v7586_v30  ;;  %vm4424_vm8 = vcmp.gt.f32.partialorder %v4392_v45, 0.0  ;;  %v4456_v25 = vmul.f32 0.01, %v4392_v45  ;;  %v7606_v24 = vpop.f32.mrb[62].mxu1 }
 0x364   : > { %v3992_v26 = vadd.f32 %v3960_v37, %v3892_v53  ;;  %v3993_v56 = vadd.f32 %v3961_v10, %v3893_v32  ;;  %v4487_v18 = vsel %vm4423_vm6, %v4391_v44, %v4455_v36  ;;  %v4362_v62 = vmul.f32 %v7413_v27, %v7596_v63  ;;  %v7612_v49 = vpop.f32.mrb[63].mxu1 }
 0x365   : > { %vm3339_vm1 = vcmp.gt.f32.partialorder %v7547_v50, 0.0  ;;  %v3371_v60 = vmul.f32 0.01, %v7547_v50  ;;  %v4488_v29 = vsel %vm4424_vm8, %v4392_v45, %v4456_v25  ;;  %vm3337_vm9 = vcmp.gt.f32.partialorder %v7551_v58, 0.0  ;;  %v7647_v45 = vld [vmem:[#allocation3 + $0xcf] sm:$0xff] }
 0x366   : > { %v4092_v40 = vadd.f32 %v4060_v16, %v3992_v26  ;;  %v4093_v19 = vadd.f32 %v4061_v2, %v3993_v56  ;;  %v4517_v52 = vpack.c.bf16 %v4488_v29, %v4487_v18  ;;  %v3369_v57 = vmul.f32 0.01, %v7551_v58  ;;  %v7655_v25 = vld [vmem:[#allocation3 + $0xd0] sm:$0xff] }
 0x367   : > { %v3403_v33 = vsel %vm3339_vm1, %v7547_v50, %v3371_v60  ;;  %vm3340_vm10 = vcmp.gt.f32.partialorder %v7559_v47, 0.0  ;;  %v3372_v7 = vmul.f32 0.01, %v7559_v47  ;;  %v3562_v12 = vmul.f32 %v7511_v15, %v7373_v54  ;;  %v7657_v26 = vld [vmem:[#allocation3 + $0xc9] sm:$0xff] }
 0x368   : > { %v4193_v6 = vadd.f32 %v4161_v39, %v4092_v40  ;;  %v4194_v23 = vadd.f32 %v4162_v38, %v4093_v19  ;;  %3510 = vst.msk [vmem:[#allocation3 + $0x1c8] sm:$0xff] %vm3409_vm7, %v3403_v33  ;;  %5905 = vmatprep.mubr.msk.bf16.mxu1 %vm3409_vm7, %v4517_v52  ;;  %v3401_v9 = vsel %vm3337_vm9, %v7551_v58, %v3369_v57  ;;  %v7645_v38 = vld [vmem:[#allocation3 + $0xc7] sm:$0xff]  ;;  %v7667_v57 = vld [vmem:[#allocation3 + $0xd1] sm:$0xff]  ;;  %vm3338_vm13 = vcmp.gt.f32.partialorder %v7565_v46, 0.0 }
 0x369   : > { %v3563_v50 = vmul.f32 %v7514_v20, %v7373_v54  ;;  %v3662_v13 = vmul.f32 %v7516_v51, %v7375_v42  ;;  %v3663_v37 = vmul.f32 %v7520_v4, %v7375_v42  ;;  %3508 = vst.msk [vmem:[#allocation3 + $0x1a8] sm:$0xff] %vm3409_vm7, %v3401_v9  ;;  %v3404_v21 = vsel %vm3340_vm10, %v7559_v47, %v3372_v7 }
 0x36a   : > { %v4293_v10 = vadd.f32 %v4261_v48, %v4193_v6  ;;  %v4294_v11 = vadd.f32 %v4262_v1, %v4194_v23  ;;  %v3762_v15 = vmul.f32 %v7522_v41, %v7380_v22  ;;  %3511 = vst.msk [vmem:[#allocation3 + $0x1d0] sm:$0xff] %vm3409_vm7, %v3404_v21  ;;  %v3763_v20 = vmul.f32 %v7524_v55, %v7380_v22  ;;  %v7649_v55 = vld [vmem:[#allocation3 + $0xc8] sm:$0xff] }
 0x36b   : > { %v3694_v58 = vadd.f32 %v3662_v13, %v3562_v12  ;;  %v3695_v14 = vadd.f32 %v3663_v37, %v3563_v50  ;;  %v3862_v51 = vmul.f32 %v7570_v8, %v7389_v43  ;;  %v3863_v44 = vmul.f32 %v7572_v61, %v7389_v43 }
 0x36c   : > { %v4393_v4 = vadd.f32 %v4361_v59, %v4293_v10  ;;  %v4394_v16 = vadd.f32 %v4362_v62, %v4294_v11  ;;  %v3962_v41 = vmul.f32 %v7580_v35, %v7393_v0  ;;  %v3963_v39 = vmul.f32 %v7584_v17, %v7393_v0 }
 0x36d   : > { %v3794_v2 = vadd.f32 %v3762_v15, %v3694_v58  ;;  %v3795_v47 = vadd.f32 %v3763_v20, %v3695_v14  ;;  %v4062_v1 = vmul.f32 %v7586_v30, %v7395_v28  ;;  %v4063_v59 = vmul.f32 %v7596_v63, %v7395_v28  ;;  %v7694_v14 = vld [vmem:[#allocation3 + $0xe7] sm:$0xff] }
 0x36e   : > { %vm4425_vm11 = vcmp.gt.f32.partialorder %v4393_v4, 0.0  ;;  %vm4426_vm12 = vcmp.gt.f32.partialorder %v4394_v16, 0.0  ;;  %v4457_v53 = vmul.f32 0.01, %v4393_v4  ;;  %v4458_v32 = vmul.f32 0.01, %v4394_v16 }
 0x36f   : > { %v3894_v48 = vadd.f32 %v3862_v51, %v3794_v2  ;;  %v3895_v36 = vadd.f32 %v3863_v44, %v3795_v47  ;;  %v4163_v62 = vmul.f32 %v7391_v34, %v7645_v38  ;;  %v4164_v60 = vmul.f32 %v7391_v34, %v7647_v45  ;;  %v7704_v44 = vld [vmem:[#allocation3 + $0xf0] sm:$0xff] }
 0x370   : > { %v4489_v56 = vsel %vm4425_vm11, %v4393_v4, %v4457_v53  ;;  %v4490_v18 = vsel %vm4426_vm12, %v4394_v16, %v4458_v32  ;;  %v4263_v52 = vmul.f32 %v7397_v3, %v7649_v55  ;;  %v4264_v33 = vmul.f32 %v7397_v3, %v7655_v25  ;;  %v7702_v16 = vld [vmem:[#allocation3 + $0xe8] sm:$0xff] }
 0x371   : > { %v4518_v29 = vpack.c.bf16 %v4490_v18, %v4489_v56  ;;  %v3994_v40 = vadd.f32 %v3962_v41, %v3894_v48  ;;  %v3995_v19 = vadd.f32 %v3963_v39, %v3895_v36  ;;  %v4363_v6 = vmul.f32 %v7413_v27, %v7657_v26 }
 0x372   : > { %v3370_v23 = vmul.f32 0.01, %v7565_v46  ;;  %v3564_v9 = vmul.f32 %v7570_v8, %v7373_v54  ;;  %v3565_v50 = vmul.f32 %v7572_v61, %v7373_v54  ;;  %v3664_v37 = vmul.f32 %v7580_v35, %v7375_v42 }
 0x373   : > { %5906 = vmatmul.mubr.msk.bf16.gmra.mrb[68].mxu1 %vm3409_vm7, %v4518_v29  ;;  %v4094_v7 = vadd.f32 %v4062_v1, %v3994_v40  ;;  %v4095_v12 = vadd.f32 %v4063_v59, %v3995_v19  ;;  %v3665_v10 = vmul.f32 %v7584_v17, %v7375_v42  ;;  %v3764_v11 = vmul.f32 %v7586_v30, %v7380_v22  ;;  %v7696_v30 = vld [vmem:[#allocation3 + $0xef] sm:$0xff] }
 0x374   : > { %v3402_v13 = vsel %vm3338_vm13, %v7565_v46, %v3370_v23  ;;  %v4364_v58 = vmul.f32 %v7413_v27, %v7667_v57  ;;  %v3765_v8 = vmul.f32 %v7596_v63, %v7380_v22  ;;  %v3696_v46 = vadd.f32 %v3664_v37, %v3564_v9  ;;  %v7714_v1 = vld [vmem:[#allocation3 + $0xe9] sm:$0xff] }
 0x375   : > { %v4195_v21 = vadd.f32 %v4163_v62, %v4094_v7  ;;  %v4196_v15 = vadd.f32 %v4164_v60, %v4095_v12  ;;  %3509 = vst.msk [vmem:[#allocation3 + $0x1b0] sm:$0xff] %vm3409_vm7, %v3402_v13  ;;  %v3697_v61 = vadd.f32 %v3665_v10, %v3565_v50  ;;  %v3864_v35 = vmul.f32 %v7645_v38, %v7389_v43  ;;  %v7726_v13 = vld [vmem:[#allocation3 + $0xf1] sm:$0xff] }
 0x376   : > { %v3865_v17 = vmul.f32 %v7647_v45, %v7389_v43  ;;  %v3964_v4 = vmul.f32 %v7649_v55, %v7393_v0  ;;  %v3965_v63 = vmul.f32 %v7655_v25, %v7393_v0  ;;  %v3796_v2 = vadd.f32 %v3764_v11, %v3696_v46 }
 0x377   : > { %v4295_v20 = vadd.f32 %v4263_v52, %v4195_v21  ;;  %v4296_v51 = vadd.f32 %v4264_v33, %v4196_v15  ;;  %v3797_v47 = vadd.f32 %v3765_v8, %v3697_v61  ;;  %v4064_v41 = vmul.f32 %v7657_v26, %v7395_v28 }
 0x378   : > { %v4065_v39 = vmul.f32 %v7667_v57, %v7395_v28  ;;  %v4165_v48 = vmul.f32 %v7391_v34, %v7694_v14  ;;  %v4166_v36 = vmul.f32 %v7391_v34, %v7696_v30  ;;  %v3896_v59 = vadd.f32 %v3864_v35, %v3796_v2 }
 0x379   : > { %v4395_v53 = vadd.f32 %v4363_v6, %v4295_v20  ;;  %v4396_v32 = vadd.f32 %v4364_v58, %v4296_v51  ;;  %v3897_v56 = vadd.f32 %v3865_v17, %v3797_v47  ;;  %v4265_v18 = vmul.f32 %v7397_v3, %v7702_v16 }
 0x37a   : > { %v4266_v62 = vmul.f32 %v7397_v3, %v7704_v44  ;;  %v3996_v40 = vadd.f32 %v3964_v4, %v3896_v59  ;;  %v4365_v52 = vmul.f32 %v7413_v27, %v7714_v1  ;;  %vm3343_vm0 = vcmp.gt.f32.partialorder %v7598_v5, 0.0 }
 0x37b   : > { %vm4427_vm14 = vcmp.gt.f32.partialorder %v4395_v53, 0.0  ;;  %vm4428_vm15 = vcmp.gt.f32.partialorder %v4396_v32, 0.0  ;;  %v4459_v60 = vmul.f32 0.01, %v4395_v53  ;;  %v4460_v29 = vmul.f32 0.01, %v4396_v32 }
 0x37c   : > { %v3997_v19 = vadd.f32 %v3965_v63, %v3897_v56  ;;  %v3375_v23 = vmul.f32 0.01, %v7598_v5  ;;  %vm3341_vm2 = vcmp.gt.f32.partialorder %v7604_v31, 0.0  ;;  %v4096_v12 = vadd.f32 %v4064_v41, %v3996_v40  ;;  %v7757_v63 = vld [vmem:[#allocation3 + $0x107] sm:$0xff] }
 0x37d   : > { %v4491_v33 = vsel %vm4427_vm14, %v4395_v53, %v4459_v60  ;;  %v4492_v6 = vsel %vm4428_vm15, %v4396_v32, %v4460_v29  ;;  %v3373_v50 = vmul.f32 0.01, %v7604_v31  ;;  %vm3344_vm3 = vcmp.gt.f32.partialorder %v7606_v24, 0.0  ;;  %v7765_v53 = vld [vmem:[#allocation3 + $0x108] sm:$0xff]  ;;  %v7767_v32 = vld [vmem:[#allocation3 + $0x110] sm:$0xff] }
 0x37e   : > { %v4519_v7 = vpack.c.bf16 %v4492_v6, %v4491_v33  ;;  %v4097_v9 = vadd.f32 %v4065_v39, %v3997_v19  ;;  %v3407_v37 = vsel %vm3343_vm0, %v7598_v5, %v3375_v23  ;;  %v3376_v10 = vmul.f32 0.01, %v7606_v24  ;;  %v7763_v39 = vld [vmem:[#allocation3 + $0x10f] sm:$0xff] }
 0x37f   : > { %v3566_v11 = vmul.f32 %v7645_v38, %v7373_v54  ;;  %v4197_v21 = vadd.f32 %v4165_v48, %v4096_v12  ;;  %3514 = vst.msk [vmem:[#allocation3 + $0x208] sm:$0xff] %vm3409_vm7, %v3407_v37  ;;  %v3405_v58 = vsel %vm3341_vm2, %v7604_v31, %v3373_v50  ;;  %v3567_v8 = vmul.f32 %v7647_v45, %v7373_v54 }
 0x380   : > { %5909 = vmatprep.mubr.msk.bf16.mxu1 %vm3409_vm7, %v4519_v7  ;;  %v4198_v15 = vadd.f32 %v4166_v36, %v4097_v9  ;;  %3512 = vst.msk [vmem:[#allocation3 + $0x1e8] sm:$0xff] %vm3409_vm7, %v3405_v58  ;;  %v3408_v5 = vsel %vm3344_vm3, %v7606_v24, %v3376_v10  ;;  %v3666_v46 = vmul.f32 %v7649_v55, %v7375_v42  ;;  %v4331_v7 = vld [vmem:[#allocation3 + $0x109] sm:$0xff]  ;;  %vm3342_vm6 = vcmp.gt.f32.partialorder %v7612_v49, 0.0 }
 0x381   : > { %v3667_v38 = vmul.f32 %v7655_v25, %v7375_v42  ;;  %v3766_v61 = vmul.f32 %v7657_v26, %v7380_v22  ;;  %v4297_v35 = vadd.f32 %v4265_v18, %v4197_v21  ;;  %v4366_v31 = vmul.f32 %v7413_v27, %v7726_v13  ;;  %3515 = vst.msk [vmem:[#allocation3 + $0x210] sm:$0xff] %vm3409_vm7, %v3408_v5 }
 0x382   : > { %v4298_v17 = vadd.f32 %v4266_v62, %v4198_v15  ;;  %v3767_v45 = vmul.f32 %v7667_v57, %v7380_v22  ;;  %v3698_v24 = vadd.f32 %v3666_v46, %v3566_v11  ;;  %v3866_v55 = vmul.f32 %v7694_v14, %v7389_v43  ;;  %v4332_v11 = vld [vmem:[#allocation3 + $0x111] sm:$0xff] }
 0x383   : > { %v3699_v20 = vadd.f32 %v3667_v38, %v3567_v8  ;;  %v3867_v25 = vmul.f32 %v7696_v30, %v7389_v43  ;;  %v4397_v51 = vadd.f32 %v4365_v52, %v4297_v35  ;;  %v3966_v4 = vmul.f32 %v7702_v16, %v7393_v0 }
 0x384   : > { %v4398_v26 = vadd.f32 %v4366_v31, %v4298_v17  ;;  %v3798_v2 = vadd.f32 %v3766_v61, %v3698_v24  ;;  %v3967_v57 = vmul.f32 %v7704_v44, %v7393_v0  ;;  %v4066_v41 = vmul.f32 %v7714_v1, %v7395_v28  ;;  %v7806_v24 = vld [vmem:[#allocation3 + $0x12f] sm:$0xff] }
 0x385   : > { %v3799_v47 = vadd.f32 %v3767_v45, %v3699_v20  ;;  %vm4429_vm4 = vcmp.gt.f32.partialorder %v4397_v51, 0.0  ;;  %v4461_v48 = vmul.f32 0.01, %v4397_v51  ;;  %v4067_v18 = vmul.f32 %v7726_v13, %v7395_v28  ;;  %v7808_v20 = vld [vmem:[#allocation3 + $0x128] sm:$0xff] }
 0x386   : > { %vm4430_vm5 = vcmp.gt.f32.partialorder %v4398_v26, 0.0  ;;  %v4462_v36 = vmul.f32 0.01, %v4398_v26  ;;  %v3898_v59 = vadd.f32 %v3866_v55, %v3798_v2  ;;  %v4167_v62 = vmul.f32 %v7391_v34, %v7757_v63  ;;  %v7810_v55 = vld [vmem:[#allocation3 + $0x130] sm:$0xff] }
 0x387   : > { %v3899_v56 = vadd.f32 %v3867_v25, %v3799_v47  ;;  %v4493_v60 = vsel %vm4429_vm4, %v4397_v51, %v4461_v48  ;;  %v4168_v40 = vmul.f32 %v7391_v34, %v7763_v39  ;;  %v4267_v19 = vmul.f32 %v7397_v3, %v7765_v53 }
 0x388   : > { %v4494_v29 = vsel %vm4430_vm5, %v4398_v26, %v4462_v36  ;;  %v3998_v33 = vadd.f32 %v3966_v4, %v3898_v59  ;;  %v4268_v23 = vmul.f32 %v7397_v3, %v7767_v32  ;;  %v3374_v12 = vmul.f32 0.01, %v7612_v49 }
 0x389   : > { %v4520_v52 = vpack.c.bf16 %v4494_v29, %v4493_v60  ;;  %v3999_v6 = vadd.f32 %v3967_v57, %v3899_v56  ;;  %v3568_v9 = vmul.f32 %v7694_v14, %v7373_v54  ;;  %v3569_v50 = vmul.f32 %v7696_v30, %v7373_v54 }
 0x38a   : > { %v4098_v37 = vadd.f32 %v4066_v41, %v3998_v33  ;;  %v3668_v21 = vmul.f32 %v7702_v16, %v7375_v42  ;;  %v3669_v15 = vmul.f32 %v7704_v44, %v7375_v42  ;;  %v4367_v58 = vmul.f32 %v7413_v27, %v4331_v7  ;;  %v7797_v16 = vld [vmem:[#allocation3 + $0x127] sm:$0xff] }
 0x38b   : > { %5910 = vmatmul.mubr.msk.bf16.gmra.mrb[72].mxu1 %vm3409_vm7, %v4520_v52  ;;  %v4099_v10 = vadd.f32 %v4067_v18, %v3999_v6  ;;  %v3406_v8 = vsel %vm3342_vm6, %v7612_v49, %v3374_v12  ;;  %v3768_v14 = vmul.f32 %v7714_v1, %v7380_v22  ;;  %v3769_v30 = vmul.f32 %v7726_v13, %v7380_v22  ;;  %v4333_v6 = vld [vmem:[#allocation3 + $0x129] sm:$0xff] }
 0x38c   : > { %v4199_v5 = vadd.f32 %v4167_v62, %v4098_v37  ;;  %3513 = vst.msk [vmem:[#allocation3 + $0x1f0] sm:$0xff] %vm3409_vm7, %v3406_v8  ;;  %v3700_v38 = vadd.f32 %v3668_v21, %v3568_v9  ;;  %v3701_v61 = vadd.f32 %v3669_v15, %v3569_v50  ;;  %v4368_v44 = vmul.f32 %v7413_v27, %v4332_v11  ;;  %v4334_v37 = vld [vmem:[#allocation3 + $0x131] sm:$0xff] }
 0x38d   : > { %v4200_v46 = vadd.f32 %v4168_v40, %v4099_v10  ;;  %v3868_v35 = vmul.f32 %v7757_v63, %v7389_v43  ;;  %v3869_v49 = vmul.f32 %v7763_v39, %v7389_v43  ;;  %v3968_v1 = vmul.f32 %v7765_v53, %v7393_v0 }
 0x38e   : > { %v4299_v13 = vadd.f32 %v4267_v19, %v4199_v5  ;;  %v3800_v31 = vadd.f32 %v3768_v14, %v3700_v38  ;;  %v3801_v45 = vadd.f32 %v3769_v30, %v3701_v61  ;;  %v3969_v25 = vmul.f32 %v7767_v32, %v7393_v0  ;;  %v7840_v14 = vld [vmem:[#allocation3 + $0x147] sm:$0xff]  ;;  %v7842_v30 = vld [vmem:[#allocation3 + $0x14f] sm:$0xff] }
 0x38f   : > { %v4300_v17 = vadd.f32 %v4268_v23, %v4200_v46  ;;  %v4068_v51 = vmul.f32 %v4331_v7, %v7395_v28  ;;  %v4069_v26 = vmul.f32 %v4332_v11, %v7395_v28  ;;  %v4169_v4 = vmul.f32 %v7391_v34, %v7797_v16  ;;  %v7849_v61 = vld [vmem:[#allocation3 + $0x148] sm:$0xff] }
 0x390   : > { %v4399_v2 = vadd.f32 %v4367_v58, %v4299_v13  ;;  %v3900_v57 = vadd.f32 %v3868_v35, %v3800_v31  ;;  %v3901_v41 = vadd.f32 %v3869_v49, %v3801_v45  ;;  %v4170_v48 = vmul.f32 %v7391_v34, %v7806_v24  ;;  %v7852_v13 = vld [vmem:[#allocation3 + $0x150] sm:$0xff] }
 0x391   : > { %v4400_v47 = vadd.f32 %v4368_v44, %v4300_v17  ;;  %v4269_v36 = vmul.f32 %v7397_v3, %v7808_v20  ;;  %v4270_v59 = vmul.f32 %v7397_v3, %v7810_v55  ;;  %v3570_v56 = vmul.f32 %v7757_v63, %v7373_v54 }
 0x392   : > { %vm4431_vm8 = vcmp.gt.f32.partialorder %v4399_v2, 0.0  ;;  %v4463_v18 = vmul.f32 0.01, %v4399_v2  ;;  %v4000_v60 = vadd.f32 %v3968_v1, %v3900_v57  ;;  %v4001_v29 = vadd.f32 %v3969_v25, %v3901_v41  ;;  %v7863_v57 = vld [vmem:[#allocation3 + $0x149] sm:$0xff] }
 0x393   : > { %vm4432_vm1 = vcmp.gt.f32.partialorder %v4400_v47, 0.0  ;;  %v4464_v62 = vmul.f32 0.01, %v4400_v47  ;;  %v3571_v40 = vmul.f32 %v7763_v39, %v7373_v54  ;;  %v3670_v19 = vmul.f32 %v7765_v53, %v7375_v42 }
 0x394   : > { %v4495_v52 = vsel %vm4431_vm8, %v4399_v2, %v4463_v18  ;;  %v3671_v23 = vmul.f32 %v7767_v32, %v7375_v42  ;;  %v3770_v63 = vmul.f32 %v4331_v7, %v7380_v22  ;;  %v4100_v9 = vadd.f32 %v4068_v51, %v4000_v60 }
 0x395   : > { %v4496_v33 = vsel %vm4432_vm1, %v4400_v47, %v4464_v62  ;;  %v4101_v50 = vadd.f32 %v4069_v26, %v4001_v29  ;;  %v3702_v10 = vadd.f32 %v3670_v19, %v3570_v56  ;;  %v3771_v15 = vmul.f32 %v4332_v11, %v7380_v22  ;;  %v4336_v62 = vld [vmem:[#allocation3 + $0x151] sm:$0xff] }
 0x396   : > { %v4521_v12 = vpack.c.bf16 %v4496_v33, %v4495_v52  ;;  %v3703_v21 = vadd.f32 %v3671_v23, %v3571_v40  ;;  %v3870_v39 = vmul.f32 %v7797_v16, %v7389_v43  ;;  %v3871_v53 = vmul.f32 %v7806_v24, %v7389_v43 }
 0x397   : > { %v4201_v58 = vadd.f32 %v4169_v4, %v4100_v9  ;;  %v4202_v32 = vadd.f32 %v4170_v48, %v4101_v50  ;;  %v4369_v7 = vmul.f32 %v7413_v27, %v4333_v6  ;;  %v3802_v8 = vadd.f32 %v3770_v63, %v3702_v10 }
 0x398   : > { %5913 = vmatprep.mubr.msk.bf16.mxu1 %vm3409_vm7, %v4521_v12  ;;  %v4370_v5 = vmul.f32 %v7413_v27, %v4334_v37  ;;  %v3803_v11 = vadd.f32 %v3771_v15, %v3703_v21  ;;  %v3970_v46 = vmul.f32 %v7808_v20, %v7393_v0  ;;  %v3971_v38 = vmul.f32 %v7810_v55, %v7393_v0 }
 0x399   : > { %v4301_v44 = vadd.f32 %v4269_v36, %v4201_v58  ;;  %v4302_v35 = vadd.f32 %v4270_v59, %v4202_v32  ;;  %v3902_v49 = vadd.f32 %v3870_v39, %v3802_v8  ;;  %v4070_v1 = vmul.f32 %v4333_v6, %v7395_v28  ;;  %v7888_v39 = vld [vmem:[#allocation3 + $0x167] sm:$0xff] }
 0x39a   : > { %v3903_v17 = vadd.f32 %v3871_v53, %v3803_v11  ;;  %v4071_v31 = vmul.f32 %v4334_v37, %v7395_v28  ;;  %v4171_v27 = vmul.f32 %v7391_v34, %v7840_v14  ;;  %v4172_v45 = vmul.f32 %v7391_v34, %v7842_v30  ;;  %v7890_v53 = vld [vmem:[#allocation3 + $0x16f] sm:$0xff] }
 0x39b   : > { %v4401_v25 = vadd.f32 %v4369_v7, %v4301_v44  ;;  %v4402_v51 = vadd.f32 %v4370_v5, %v4302_v35  ;;  %v4002_v26 = vadd.f32 %v3970_v46, %v3902_v49  ;;  %v4271_v4 = vmul.f32 %v7397_v3, %v7849_v61  ;;  %v7892_v58 = vld [vmem:[#allocation3 + $0x168] sm:$0xff]  ;;  %v7901_v44 = vld [vmem:[#allocation3 + $0x170] sm:$0xff] }
 0x39c   : > { %v4003_v2 = vadd.f32 %v3971_v38, %v3903_v17  ;;  %v4272_v47 = vmul.f32 %v7397_v3, %v7852_v13  ;;  %v3572_v41 = vmul.f32 %v7797_v16, %v7373_v54  ;;  %v3573_v48 = vmul.f32 %v7806_v24, %v7373_v54  ;;  %v7876_v16 = vld [vmem:[%s8199_s3 + $0x8] ss:$0 sm:$0xff] }
 0x39d   : > { %vm4433_vm9 = vcmp.gt.f32.partialorder %v4401_v25, 0.0  ;;  %vm4434_vm10 = vcmp.gt.f32.partialorder %v4402_v51, 0.0  ;;  %v4465_v36 = vmul.f32 0.01, %v4401_v25  ;;  %v4466_v59 = vmul.f32 0.01, %v4402_v51 }
 0x39e   : > { %v4102_v56 = vadd.f32 %v4070_v1, %v4002_v26  ;;  %v4103_v18 = vadd.f32 %v4071_v31, %v4003_v2  ;;  %v3672_v60 = vmul.f32 %v7808_v20, %v7375_v42  ;;  %v3673_v29 = vmul.f32 %v7810_v55, %v7375_v42 }
 0x39f   : > { %v4497_v40 = vsel %vm4433_vm9, %v4401_v25, %v4465_v36  ;;  %v4498_v19 = vsel %vm4434_vm10, %v4402_v51, %v4466_v59  ;;  %v4371_v24 = vmul.f32 %v7876_v16, %v7863_v57  ;;  %v3772_v52 = vmul.f32 %v4333_v6, %v7380_v22 }
 0x3a0   : > { %v4522_v33 = vpack.c.bf16 %v4498_v19, %v4497_v40  ;;  %v4203_v23 = vadd.f32 %v4171_v27, %v4102_v56  ;;  %v4204_v63 = vadd.f32 %v4172_v45, %v4103_v18  ;;  %v3704_v12 = vadd.f32 %v3672_v60, %v3572_v41  ;;  %v4337_v56 = vld [vmem:[#allocation3 + $0x169] sm:$0xff]  ;;  %v4338_v18 = vld [vmem:[#allocation3 + $0x171] sm:$0xff] }
 0x3a1   : > { %v4372_v20 = vmul.f32 %v7876_v16, %v4336_v62  ;;  %v3705_v9 = vadd.f32 %v3673_v29, %v3573_v48  ;;  %v3773_v55 = vmul.f32 %v4334_v37, %v7380_v22  ;;  %v3872_v50 = vmul.f32 %v7840_v14, %v7389_v43 }
 0x3a2   : > { %5914 = vmatmul.mubr.msk.bf16.gmra.mrb[76].mxu1 %vm3409_vm7, %v4522_v33  ;;  %v4303_v10 = vadd.f32 %v4271_v4, %v4203_v23  ;;  %v4304_v21 = vadd.f32 %v4272_v47, %v4204_v63  ;;  %v3804_v15 = vadd.f32 %v3772_v52, %v3704_v12  ;;  %v3873_v6 = vmul.f32 %v7842_v30, %v7389_v43  ;;  %v7927_v33 = vld [vmem:[#allocation3 + $0x187] sm:$0xff]  ;;  %v7933_v63 = vld [vmem:[#allocation3 + $0x18f] sm:$0xff] }
 0x3a3   : > { %v3805_v32 = vadd.f32 %v3773_v55, %v3705_v9  ;;  %v3972_v37 = vmul.f32 %v7849_v61, %v7393_v0  ;;  %v3973_v7 = vmul.f32 %v7852_v13, %v7393_v0  ;;  %v4072_v8 = vmul.f32 %v7863_v57, %v7395_v28 }
 0x3a4   : > { %v4403_v5 = vadd.f32 %v4371_v24, %v4303_v10  ;;  %v4404_v11 = vadd.f32 %v4372_v20, %v4304_v21  ;;  %v3904_v46 = vadd.f32 %v3872_v50, %v3804_v15  ;;  %v4073_v38 = vmul.f32 %v4336_v62, %v7395_v28  ;;  %v7937_v50 = vld [vmem:[#allocation3 + $0x188] sm:$0xff]  ;;  %v7939_v10 = vld [vmem:[#allocation3 + $0x190] sm:$0xff] }
 0x3a5   : > { %v3905_v35 = vadd.f32 %v3873_v6, %v3805_v32  ;;  %v4173_v49 = vmul.f32 %v7391_v34, %v7888_v39  ;;  %v4174_v1 = vmul.f32 %v7391_v34, %v7890_v53  ;;  %v4273_v17 = vmul.f32 %v7397_v3, %v7892_v58 }
 0x3a6   : > { %vm4435_vm11 = vcmp.gt.f32.partialorder %v4403_v5, 0.0  ;;  %vm4436_vm12 = vcmp.gt.f32.partialorder %v4404_v11, 0.0  ;;  %v4467_v31 = vmul.f32 0.01, %v4403_v5  ;;  %v4468_v27 = vmul.f32 0.01, %v4404_v11 }
 0x3a7   : > { %v4004_v45 = vadd.f32 %v3972_v37, %v3904_v46  ;;  %v4005_v25 = vadd.f32 %v3973_v7, %v3905_v35  ;;  %v4274_v51 = vmul.f32 %v7397_v3, %v7901_v44  ;;  %v3574_v26 = vmul.f32 %v7840_v14, %v7373_v54 }
 0x3a8   : > { %v4499_v4 = vsel %vm4435_vm11, %v4403_v5, %v4467_v31  ;;  %v4500_v2 = vsel %vm4436_vm12, %v4404_v11, %v4468_v27  ;;  %v3575_v47 = vmul.f32 %v7842_v30, %v7373_v54  ;;  %v3674_v41 = vmul.f32 %v7849_v61, %v7375_v42  ;;  %v4339_v27 = vld [vmem:[#allocation3 + $0x189] sm:$0xff] }
 0x3a9   : > { %v4523_v48 = vpack.c.bf16 %v4500_v2, %v4499_v4  ;;  %v4104_v36 = vadd.f32 %v4072_v8, %v4004_v45  ;;  %v4105_v59 = vadd.f32 %v4073_v38, %v4005_v25  ;;  %v3675_v60 = vmul.f32 %v7852_v13, %v7375_v42  ;;  %v4340_v45 = vld [vmem:[#allocation3 + $0x191] sm:$0xff] }
 0x3aa   : > { %v3706_v29 = vadd.f32 %v3674_v41, %v3574_v26  ;;  %v3774_v14 = vmul.f32 %v7863_v57, %v7380_v22  ;;  %v3775_v40 = vmul.f32 %v4336_v62, %v7380_v22  ;;  %v3874_v30 = vmul.f32 %v7888_v39, %v7389_v43 }
 0x3ab   : > { %5917 = vmatprep.mubr.msk.bf16.mxu1 %vm3409_vm7, %v4523_v48  ;;  %v4205_v61 = vadd.f32 %v4173_v49, %v4104_v36  ;;  %v4206_v19 = vadd.f32 %v4174_v1, %v4105_v59  ;;  %v3707_v24 = vadd.f32 %v3675_v60, %v3575_v47  ;;  %v3875_v52 = vmul.f32 %v7890_v53, %v7389_v43 }
 0x3ac   : > { %v4373_v13 = vmul.f32 %v7876_v16, %v4337_v56  ;;  %v4374_v23 = vmul.f32 %v7876_v16, %v4338_v18  ;;  %v3806_v57 = vadd.f32 %v3774_v14, %v3706_v29  ;;  %v3974_v62 = vmul.f32 %v7892_v58, %v7393_v0 }
 0x3ad   : > { %v4305_v12 = vadd.f32 %v4273_v17, %v4205_v61  ;;  %v4306_v20 = vadd.f32 %v4274_v51, %v4206_v19  ;;  %v3807_v9 = vadd.f32 %v3775_v40, %v3707_v24  ;;  %v3975_v55 = vmul.f32 %v7901_v44, %v7393_v0 }
 0x3ae   : > { %v3906_v21 = vadd.f32 %v3874_v30, %v3806_v57  ;;  %v4074_v15 = vmul.f32 %v4337_v56, %v7395_v28  ;;  %v4075_v6 = vmul.f32 %v4338_v18, %v7395_v28  ;;  %v4175_v32 = vmul.f32 %v7391_v34, %v7927_v33  ;;  %v7968_v30 = vld [vmem:[#allocation3 + $0x1af] sm:$0xff] }
 0x3af   : > { %v4405_v37 = vadd.f32 %v4373_v13, %v4305_v12  ;;  %v4406_v7 = vadd.f32 %v4374_v23, %v4306_v20  ;;  %v3907_v8 = vadd.f32 %v3875_v52, %v3807_v9  ;;  %v4176_v5 = vmul.f32 %v7391_v34, %v7933_v63  ;;  %v7979_v12 = vld [vmem:[#allocation3 + $0x1b0] sm:$0xff] }
 0x3b0   : > { %v4006_v11 = vadd.f32 %v3974_v62, %v3906_v21  ;;  %v4275_v46 = vmul.f32 %v7397_v3, %v7937_v50  ;;  %v4276_v38 = vmul.f32 %v7397_v3, %v7939_v10  ;;  %v3576_v35 = vmul.f32 %v7888_v39, %v7373_v54  ;;  %v7977_v62 = vld [vmem:[#allocation3 + $0x1a8] sm:$0xff] }
 0x3b1   : > { %vm4437_vm13 = vcmp.gt.f32.partialorder %v4405_v37, 0.0  ;;  %vm4438_vm14 = vcmp.gt.f32.partialorder %v4406_v7, 0.0  ;;  %v4469_v49 = vmul.f32 0.01, %v4405_v37  ;;  %v4470_v1 = vmul.f32 0.01, %v4406_v7 }
 0x3b2   : > { %v4007_v17 = vadd.f32 %v3975_v55, %v3907_v8  ;;  %v4106_v31 = vadd.f32 %v4074_v15, %v4006_v11  ;;  %v3577_v25 = vmul.f32 %v7890_v53, %v7373_v54  ;;  %v3676_v51 = vmul.f32 %v7892_v58, %v7375_v42 }
 0x3b3   : > { %v4501_v26 = vsel %vm4437_vm13, %v4405_v37, %v4469_v49  ;;  %v4502_v4 = vsel %vm4438_vm14, %v4406_v7, %v4470_v1  ;;  %v3677_v2 = vmul.f32 %v7901_v44, %v7375_v42  ;;  %v3776_v39 = vmul.f32 %v4337_v56, %v7380_v22  ;;  %v7966_v56 = vld [vmem:[#allocation3 + $0x1a7] sm:$0xff] }
 0x3b4   : > { %v4524_v47 = vpack.c.bf16 %v4502_v4, %v4501_v26  ;;  %v4107_v41 = vadd.f32 %v4075_v6, %v4007_v17  ;;  %v4207_v48 = vadd.f32 %v4175_v32, %v4106_v31  ;;  %v3708_v36 = vadd.f32 %v3676_v51, %v3576_v35  ;;  %v4341_v49 = vld [vmem:[#allocation3 + $0x1a9] sm:$0xff]  ;;  %v4342_v26 = vld [vmem:[#allocation3 + $0x1b1] sm:$0xff] }
 0x3b5   : > { %v4375_v59 = vmul.f32 %v7876_v16, %v4339_v27  ;;  %v4376_v60 = vmul.f32 %v7876_v16, %v4340_v45  ;;  %v3709_v29 = vadd.f32 %v3677_v2, %v3577_v25  ;;  %v3777_v53 = vmul.f32 %v4338_v18, %v7380_v22 }
 0x3b6   : > { %5918 = vmatmul.mubr.msk.bf16.gmra.mrb[80].mxu1 %vm3409_vm7, %v4524_v47  ;;  %v4208_v58 = vadd.f32 %v4176_v5, %v4107_v41  ;;  %v4307_v14 = vadd.f32 %v4275_v46, %v4207_v48  ;;  %v3808_v40 = vadd.f32 %v3776_v39, %v3708_v36  ;;  %v3876_v44 = vmul.f32 %v7927_v33, %v7389_v43 }
 0x3b7   : > { %v3809_v61 = vadd.f32 %v3777_v53, %v3709_v29  ;;  %v3877_v19 = vmul.f32 %v7933_v63, %v7389_v43  ;;  %v3976_v24 = vmul.f32 %v7937_v50, %v7393_v0  ;;  %v3977_v18 = vmul.f32 %v7939_v10, %v7393_v0  ;;  %v8009_v29 = vld [vmem:[#allocation3 + $0x1cf] sm:$0xff] }
 0x3b8   : > { %v4308_v52 = vadd.f32 %v4276_v38, %v4208_v58  ;;  %v4407_v13 = vadd.f32 %v4375_v59, %v4307_v14  ;;  %v3908_v23 = vadd.f32 %v3876_v44, %v3808_v40  ;;  %v4076_v57 = vmul.f32 %v4339_v27, %v7395_v28 }
 0x3b9   : > { %v3909_v20 = vadd.f32 %v3877_v19, %v3809_v61  ;;  %v4077_v9 = vmul.f32 %v4340_v45, %v7395_v28  ;;  %v4177_v55 = vmul.f32 %v7391_v34, %v7966_v56  ;;  %v4178_v21 = vmul.f32 %v7391_v34, %v7968_v30 }
 0x3ba   : > { %v4408_v15 = vadd.f32 %v4376_v60, %v4308_v52  ;;  %vm4439_vm15 = vcmp.gt.f32.partialorder %v4407_v13, 0.0  ;;  %v4471_v6 = vmul.f32 0.01, %v4407_v13  ;;  %v4008_v32 = vadd.f32 %v3976_v24, %v3908_v23  ;;  %v8007_v60 = vld [vmem:[#allocation3 + $0x1c7] sm:$0xff]  ;;  %v8019_v52 = vld [vmem:[#allocation3 + $0x1d0] sm:$0xff] }
 0x3bb   : > { %v4009_v37 = vadd.f32 %v3977_v18, %v3909_v20  ;;  %v4277_v7 = vmul.f32 %v7397_v3, %v7977_v62  ;;  %v4278_v8 = vmul.f32 %v7397_v3, %v7979_v12  ;;  %v3578_v5 = vmul.f32 %v7927_v33, %v7373_v54  ;;  %v8017_v18 = vld [vmem:[#allocation3 + $0x1c8] sm:$0xff] }
 0x3bc   : > { %vm4440_vm0 = vcmp.gt.f32.partialorder %v4408_v15, 0.0  ;;  %v4472_v11 = vmul.f32 0.01, %v4408_v15  ;;  %v4503_v46 = vsel %vm4439_vm15, %v4407_v13, %v4471_v6  ;;  %v4108_v38 = vadd.f32 %v4076_v57, %v4008_v32  ;;  %v4343_v32 = vld [vmem:[#allocation3 + $0x1c9] sm:$0xff] }
 0x3bd   : > { %v4109_v35 = vadd.f32 %v4077_v9, %v4009_v37  ;;  %v3579_v1 = vmul.f32 %v7933_v63, %v7373_v54  ;;  %v3678_v17 = vmul.f32 %v7937_v50, %v7375_v42  ;;  %v3679_v31 = vmul.f32 %v7939_v10, %v7375_v42  ;;  %v4344_v37 = vld [vmem:[#allocation3 + $0x1d1] sm:$0xff] }
 0x3be   : > { %v4504_v25 = vsel %vm4440_vm0, %v4408_v15, %v4472_v11  ;;  %v4209_v51 = vadd.f32 %v4177_v55, %v4108_v38  ;;  %v3778_v33 = vmul.f32 %v4339_v27, %v7380_v22  ;;  %v3779_v4 = vmul.f32 %v4340_v45, %v7380_v22 }
 0x3bf   : > { %v4525_v2 = vpack.c.bf16 %v4504_v25, %v4503_v46  ;;  %v4210_v39 = vadd.f32 %v4178_v21, %v4109_v35  ;;  %v3710_v47 = vadd.f32 %v3678_v17, %v3578_v5  ;;  %v3711_v41 = vadd.f32 %v3679_v31, %v3579_v1 }
 0x3c0   : > { %v4309_v48 = vadd.f32 %v4277_v7, %v4209_v51  ;;  %v4377_v63 = vmul.f32 %v7876_v16, %v4341_v49  ;;  %v3878_v50 = vmul.f32 %v7966_v56, %v7389_v43  ;;  %v3879_v10 = vmul.f32 %v7968_v30, %v7389_v43 }
 0x3c1   : > { %5921 = vmatprep.mubr.msk.bf16.mxu1 %vm3409_vm7, %v4525_v2  ;;  %v4310_v36 = vadd.f32 %v4278_v8, %v4210_v39  ;;  %v4378_v27 = vmul.f32 %v7876_v16, %v4342_v26  ;;  %v3810_v59 = vadd.f32 %v3778_v33, %v3710_v47  ;;  %v3811_v45 = vadd.f32 %v3779_v4, %v3711_v41  ;;  %v8044_v2 = vld [vmem:[#allocation3 + $0x1e7] sm:$0xff]  ;;  %v8050_v41 = vld [vmem:[#allocation3 + $0x1ef] sm:$0xff] }
 0x3c2   : > { %v4409_v53 = vadd.f32 %v4377_v63, %v4309_v48  ;;  %v3978_v58 = vmul.f32 %v7977_v62, %v7393_v0  ;;  %v3979_v14 = vmul.f32 %v7979_v12, %v7393_v0  ;;  %v4078_v40 = vmul.f32 %v4341_v49, %v7395_v28  ;;  %v8052_v48 = vld [vmem:[#allocation3 + $0x1e8] sm:$0xff] }
 0x3c3   : > { %v4410_v44 = vadd.f32 %v4378_v27, %v4310_v36  ;;  %v3910_v61 = vadd.f32 %v3878_v50, %v3810_v59  ;;  %v3911_v19 = vadd.f32 %v3879_v10, %v3811_v45  ;;  %v4079_v24 = vmul.f32 %v4342_v26, %v7395_v28 }
 0x3c4   : > { %vm4441_vm2 = vcmp.gt.f32.partialorder %v4409_v53, 0.0  ;;  %v4473_v13 = vmul.f32 0.01, %v4409_v53  ;;  %v4179_v23 = vmul.f32 %v7391_v34, %v8007_v60  ;;  %v4180_v57 = vmul.f32 %v7391_v34, %v8009_v29 }
 0x3c5   : > { %vm4442_vm3 = vcmp.gt.f32.partialorder %v4410_v44, 0.0  ;;  %v4474_v20 = vmul.f32 0.01, %v4410_v44  ;;  %v4010_v9 = vadd.f32 %v3978_v58, %v3910_v61  ;;  %v4011_v55 = vadd.f32 %v3979_v14, %v3911_v19 }
 0x3c6   : > { %v4505_v21 = vsel %vm4441_vm2, %v4409_v53, %v4473_v13  ;;  %v4279_v15 = vmul.f32 %v7397_v3, %v8017_v18  ;;  %v4280_v6 = vmul.f32 %v7397_v3, %v8019_v52  ;;  %v3580_v7 = vmul.f32 %v7966_v56, %v7373_v54  ;;  %v8060_v53 = vld [vmem:[#allocation3 + $0x1f0] sm:$0xff] }
 0x3c7   : > { %v4506_v8 = vsel %vm4442_vm3, %v4410_v44, %v4474_v20  ;;  %v4110_v5 = vadd.f32 %v4078_v40, %v4010_v9  ;;  %v4111_v11 = vadd.f32 %v4079_v24, %v4011_v55  ;;  %v3581_v46 = vmul.f32 %v7968_v30, %v7373_v54 }
 0x3c8   : > { %v4526_v38 = vpack.c.bf16 %v4506_v8, %v4505_v21  ;;  %v3680_v35 = vmul.f32 %v7977_v62, %v7375_v42  ;;  %v3681_v1 = vmul.f32 %v7979_v12, %v7375_v42  ;;  %v3780_v17 = vmul.f32 %v4341_v49, %v7380_v22  ;;  %v4345_v8 = vld [vmem:[#allocation3 + $0x1e9] sm:$0xff] }
 0x3c9   : > { %v4211_v31 = vadd.f32 %v4179_v23, %v4110_v5  ;;  %v4212_v25 = vadd.f32 %v4180_v57, %v4111_v11  ;;  %v4379_v51 = vmul.f32 %v7876_v16, %v4343_v32  ;;  %v4380_v56 = vmul.f32 %v7876_v16, %v4344_v37  ;;  %v4346_v5 = vld [vmem:[#allocation3 + $0x1f1] sm:$0xff] }
 0x3ca   : > { %5922 = vmatmul.mubr.msk.bf16.gmra.mrb[84].mxu1 %vm3409_vm7, %v4526_v38  ;;  %v3712_v33 = vadd.f32 %v3680_v35, %v3580_v7  ;;  %v3713_v4 = vadd.f32 %v3681_v1, %v3581_v46  ;;  %v3781_v30 = vmul.f32 %v4342_v26, %v7380_v22  ;;  %v3880_v62 = vmul.f32 %v8007_v60, %v7389_v43 }
 0x3cb   : > { %v4311_v12 = vadd.f32 %v4279_v15, %v4211_v31  ;;  %v4312_v39 = vadd.f32 %v4280_v6, %v4212_v25  ;;  %v3881_v49 = vmul.f32 %v8009_v29, %v7389_v43  ;;  %v3980_v47 = vmul.f32 %v8017_v18, %v7393_v0 }
 0x3cc   : > { %v3812_v63 = vadd.f32 %v3780_v17, %v3712_v33  ;;  %v3813_v50 = vadd.f32 %v3781_v30, %v3713_v4  ;;  %v3981_v26 = vmul.f32 %v8019_v52, %v7393_v0  ;;  %v4080_v10 = vmul.f32 %v4343_v32, %v7395_v28  ;;  %v4148_v4 = vld [vmem:[#allocation3 + $0x20f] sm:$0xff] }
 0x3cd   : > { %v4411_v36 = vadd.f32 %v4379_v51, %v4311_v12  ;;  %v4412_v27 = vadd.f32 %v4380_v56, %v4312_v39  ;;  %v4081_v59 = vmul.f32 %v4344_v37, %v7395_v28  ;;  %v4181_v45 = vmul.f32 %v7391_v34, %v8044_v2  ;;  %v4147_v51 = vld [vmem:[#allocation3 + $0x207] sm:$0xff] }
 0x3ce   : > { %v3912_v58 = vadd.f32 %v3880_v62, %v3812_v63  ;;  %v3913_v14 = vadd.f32 %v3881_v49, %v3813_v50  ;;  %v4182_v40 = vmul.f32 %v7391_v34, %v8050_v41  ;;  %v4281_v44 = vmul.f32 %v7397_v3, %v8052_v48  ;;  %v4247_v30 = vld [vmem:[#allocation3 + $0x208] sm:$0xff] }
 0x3cf   : > { %vm4443_vm4 = vcmp.gt.f32.partialorder %v4411_v36, 0.0  ;;  %vm4444_vm5 = vcmp.gt.f32.partialorder %v4412_v27, 0.0  ;;  %v4475_v61 = vmul.f32 0.01, %v4411_v36  ;;  %v4476_v19 = vmul.f32 0.01, %v4412_v27 }
 0x3d0   : > { %v4012_v24 = vadd.f32 %v3980_v47, %v3912_v58  ;;  %v4013_v13 = vadd.f32 %v3981_v26, %v3913_v14  ;;  %v4282_v23 = vmul.f32 %v7397_v3, %v8060_v53  ;;  %v3582_v57 = vmul.f32 %v8007_v60, %v7373_v54 }
 0x3d1   : > { %v4507_v20 = vsel %vm4443_vm4, %v4411_v36, %v4475_v61  ;;  %v4508_v9 = vsel %vm4444_vm5, %v4412_v27, %v4476_v19  ;;  %v3583_v55 = vmul.f32 %v8009_v29, %v7373_v54  ;;  %v3682_v21 = vmul.f32 %v8017_v18, %v7375_v42  ;;  %v4347_v61 = vld [vmem:[#allocation3 + $0x209] sm:$0xff] }
 0x3d2   : > { %v4527_v15 = vpack.c.bf16 %v4508_v9, %v4507_v20  ;;  %v4112_v6 = vadd.f32 %v4080_v10, %v4012_v24  ;;  %v4113_v7 = vadd.f32 %v4081_v59, %v4013_v13  ;;  %v3683_v11 = vmul.f32 %v8019_v52, %v7375_v42 }
 0x3d3   : > { %v3714_v46 = vadd.f32 %v3682_v21, %v3582_v57  ;;  %v3782_v38 = vmul.f32 %v4343_v32, %v7380_v22  ;;  %v3783_v60 = vmul.f32 %v4344_v37, %v7380_v22  ;;  %v3882_v35 = vmul.f32 %v8044_v2, %v7389_v43  ;;  %v4348_v21 = vld [vmem:[#allocation3 + $0x211] sm:$0xff] }
 0x3d4   : > { %5925 = vmatprep.mubr.msk.bf16.mxu1 %vm3409_vm7, %v4527_v15  ;;  %v4213_v29 = vadd.f32 %v4181_v45, %v4112_v6  ;;  %v4214_v18 = vadd.f32 %v4182_v40, %v4113_v7  ;;  %v3715_v1 = vadd.f32 %v3683_v11, %v3583_v55  ;;  %v3883_v17 = vmul.f32 %v8050_v41, %v7389_v43 }
 0x3d5   : > { %v4381_v31 = vmul.f32 %v7876_v16, %v4345_v8  ;;  %v4382_v52 = vmul.f32 %v7876_v16, %v4346_v5  ;;  %v3814_v25 = vadd.f32 %v3782_v38, %v3714_v46  ;;  %v3982_v33 = vmul.f32 %v8052_v48, %v7393_v0 }
 0x3d6   : > { %v4313_v32 = vadd.f32 %v4281_v44, %v4213_v29  ;;  %v4314_v56 = vadd.f32 %v4282_v23, %v4214_v18  ;;  %v3815_v37 = vadd.f32 %v3783_v60, %v3715_v1  ;;  %v3983_v12 = vmul.f32 %v8060_v53, %v7393_v0  ;;  %v4248_v44 = vld [vmem:[#allocation3 + $0x210] sm:$0xff]  ;;  %v4149_v60 = vld [vmem:[#allocation3 + $0x227] sm:$0xff] }
 0x3d7   : > { %v3914_v62 = vadd.f32 %v3882_v35, %v3814_v25  ;;  %v4082_v39 = vmul.f32 %v4345_v8, %v7395_v28  ;;  %v4083_v49 = vmul.f32 %v4346_v5, %v7395_v28  ;;  %v4183_v26 = vmul.f32 %v7391_v34, %v4147_v51 }
 0x3d8   : > { %v4413_v47 = vadd.f32 %v4381_v31, %v4313_v32  ;;  %v4414_v63 = vadd.f32 %v4382_v52, %v4314_v56  ;;  %v3915_v50 = vadd.f32 %v3883_v17, %v3815_v37  ;;  %v4184_v36 = vmul.f32 %v7391_v34, %v4148_v4  ;;  %v4150_v17 = vld [vmem:[#allocation3 + $0x22f] sm:$0xff] }
 0x3d9   : > { %v4014_v10 = vadd.f32 %v3982_v33, %v3914_v62  ;;  %v4283_v27 = vmul.f32 %v7397_v3, %v4247_v30  ;;  %v3584_v59 = vmul.f32 %v8044_v2, %v7373_v54  ;;  %v3585_v19 = vmul.f32 %v8050_v41, %v7373_v54  ;;  %v4249_v52 = vld [vmem:[#allocation3 + $0x228] sm:$0xff]  ;;  %v4250_v37 = vld [vmem:[#allocation3 + $0x230] sm:$0xff] }
 0x3da   : > { %vm4445_vm6 = vcmp.gt.f32.partialorder %v4413_v47, 0.0  ;;  %vm4446_vm8 = vcmp.gt.f32.partialorder %v4414_v63, 0.0  ;;  %v4477_v45 = vmul.f32 0.01, %v4413_v47  ;;  %v4478_v58 = vmul.f32 0.01, %v4414_v63 }
 0x3db   : > { %v4015_v14 = vadd.f32 %v3983_v12, %v3915_v50  ;;  %v4114_v40 = vadd.f32 %v4082_v39, %v4014_v10  ;;  %v3684_v24 = vmul.f32 %v8052_v48, %v7375_v42  ;;  %v3685_v57 = vmul.f32 %v8060_v53, %v7375_v42  ;;  %v4350_v39 = vld [vmem:[#allocation3 + $0x231] sm:$0xff] }
 0x3dc   : > { %v4509_v13 = vsel %vm4445_vm6, %v4413_v47, %v4477_v45  ;;  %v4510_v23 = vsel %vm4446_vm8, %v4414_v63, %v4478_v58  ;;  %v3784_v2 = vmul.f32 %v4345_v8, %v7380_v22  ;;  %v4284_v6 = vmul.f32 %v7397_v3, %v4248_v44 }
 0x3dd   : > { %v4528_v20 = vpack.c.bf16 %v4510_v23, %v4509_v13  ;;  %v4115_v9 = vadd.f32 %v4083_v49, %v4015_v14  ;;  %v4215_v55 = vadd.f32 %v4183_v26, %v4114_v40  ;;  %v3716_v15 = vadd.f32 %v3684_v24, %v3584_v59 }
 0x3de   : > { %v4383_v7 = vmul.f32 %v7876_v16, %v4347_v61  ;;  %v3717_v54 = vadd.f32 %v3685_v57, %v3585_v19  ;;  %v3785_v41 = vmul.f32 %v4346_v5, %v7380_v22  ;;  %v3884_v42 = vmul.f32 %v4147_v51, %v7389_v43 }
 0x3df   : > { %5926 = vmatmul.mubr.msk.bf16.gmra.mrb[88].mxu1 %vm3409_vm7, %v4528_v20  ;;  %v4216_v48 = vadd.f32 %v4184_v36, %v4115_v9  ;;  %v4315_v11 = vadd.f32 %v4283_v27, %v4215_v55  ;;  %v3816_v46 = vadd.f32 %v3784_v2, %v3716_v15  ;;  %v4384_v53 = vmul.f32 %v7876_v16, %v4348_v21 }
 0x3e0   : > { %v3817_v8 = vadd.f32 %v3785_v41, %v3717_v54  ;;  %v3885_v38 = vmul.f32 %v4148_v4, %v7389_v43  ;;  %v3984_v1 = vmul.f32 %v4247_v30, %v7393_v0  ;;  %v3985_v5 = vmul.f32 %v4248_v44, %v7393_v0  ;;  %v4349_v30 = vld [vmem:[#allocation3 + $0x229] sm:$0xff] }
 0x3e1   : > { %v4316_v35 = vadd.f32 %v4284_v6, %v4216_v48  ;;  %v4415_v29 = vadd.f32 %v4383_v7, %v4315_v11  ;;  %v3916_v18 = vadd.f32 %v3884_v42, %v3816_v46  ;;  %v4084_v31 = vmul.f32 %v4347_v61, %v7395_v28 }
 0x3e2   : > { %v3917_v22 = vadd.f32 %v3885_v38, %v3817_v8  ;;  %v4185_v56 = vmul.f32 %v7391_v34, %v4149_v60  ;;  %v4085_v33 = vmul.f32 %v4348_v21, %v7395_v28  ;;  %v4186_v4 = vmul.f32 %v7391_v34, %v4150_v17 }
 0x3e3   : > { %v4416_v25 = vadd.f32 %v4384_v53, %v4316_v35  ;;  %v4479_v51 = vmul.f32 0.01, %v4415_v29  ;;  %v4016_v32 = vadd.f32 %v3984_v1, %v3916_v18  ;;  %vm4447_vm1 = vcmp.gt.f32.partialorder %v4415_v29, 0.0 }
 0x3e4   : > { %v4017_v43 = vadd.f32 %v3985_v5, %v3917_v22  ;;  %v4285_v0 = vmul.f32 %v7397_v3, %v4249_v52  ;;  %v4286_v47 = vmul.f32 %v7397_v3, %v4250_v37  ;;  %v4385_v10 = vmul.f32 %v7876_v16, %v4349_v30 }
 0x3e5   : > { %vm4448_vm9 = vcmp.gt.f32.partialorder %v4416_v25, 0.0  ;;  %v4480_v62 = vmul.f32 0.01, %v4416_v25  ;;  %v4116_v12 = vadd.f32 %v4084_v31, %v4016_v32  ;;  %v4511_v63 = vsel %vm4447_vm1, %v4415_v29, %v4479_v51 }
 0x3e6   : > { %v4117_v49 = vadd.f32 %v4085_v33, %v4017_v43  ;;  %v4386_v34 = vmul.f32 %v7876_v16, %v4350_v39  ;;  %vm5001_vm12 = vcmask 64512  }
 0x3e7   : > { %v4512_v50 = vsel %vm4448_vm9, %v4416_v25, %v4480_v62  ;;  %v4217_v26 = vadd.f32 %v4185_v56, %v4116_v12 }
 0x3e8   : > { %v4529_v36 = vpack.c.bf16 %v4512_v50, %v4511_v63  ;;  %v4218_v28 = vadd.f32 %v4186_v4, %v4117_v49 }
 0x3e9   : > { %v4317_v27 = vadd.f32 %v4285_v0, %v4217_v26 }
 0x3ea   : > { %5929 = vmatprep.mubr.msk.bf16.mxu1 %vm3409_vm7, %v4529_v36  ;;  %v4318_v59 = vadd.f32 %v4286_v47, %v4218_v28 }
 0x3eb   : > { %v4417_v45 = vadd.f32 %v4385_v10, %v4317_v27 }
 0x3ec   : > { %v4418_v58 = vadd.f32 %v4386_v34, %v4318_v59 }
 0x3ed   : > { %vm4449_vm10 = vcmp.gt.f32.partialorder %v4417_v45, 0.0  ;;  %v4481_v14 = vmul.f32 0.01, %v4417_v45 }
 0x3ee   : > { %vm4450_vm11 = vcmp.gt.f32.partialorder %v4418_v58, 0.0  ;;  %v4482_v3 = vmul.f32 0.01, %v4418_v58 }
 0x3ef   : > { %v4513_v40 = vsel %vm4449_vm10, %v4417_v45, %v4481_v14 }
 0x3f0   : > { %v4514_v44 = vsel %vm4450_vm11, %v4418_v58, %v4482_v3 }
 0x3f1   : > { %v4530_v61 = vpack.c.bf16 %v4514_v44, %v4513_v40 }
 0x3f3   : > { %5930 = vmatmul.mubr.msk.bf16.gmra.mrb[92].mxu1 %vm3409_vm7, %v4530_v61 }
 0x42c   : > { %v5903_v16 = vpop.f32.mrb[64].mxu1 }
 0x42d   : > { %5004 = vst.msk [vmem:[%s8127_s25 + $0x10] sm:$0xff] %vm5001_vm12, %v5903_v16  ;;  %v4874_v19 = vpop.f32.mrb[65].mxu1 }
 0x42e   : > { %5002 = vst.msk [vmem:[%s8127_s25] sm:$0xff] %vm5001_vm12, %v4874_v19  ;;  %v5904_v24 = vpop.f32.mrb[66].mxu1 }
 0x42f   : > { %5005 = vst.msk [vmem:[%s8127_s25 + $0x18] sm:$0xff] %vm5001_vm12, %v5904_v24  ;;  %v4877_v13 = vpop.f32.mrb[67].mxu1 }
 0x430   : > { %5003 = vst.msk [vmem:[%s8127_s25 + $0x8] sm:$0xff] %vm5001_vm12, %v4877_v13 }
 0x446   : > { %v5907_v23 = vpop.f32.mrb[68].mxu1 }
 0x447   : > { %5008 = vst.msk [vmem:[%s8127_s25 + $0x30] sm:$0xff] %vm5001_vm12, %v5907_v23  ;;  %v4890_v57 = vpop.f32.mrb[69].mxu1 }
 0x448   : > { %5006 = vst.msk [vmem:[%s8127_s25 + $0x20] sm:$0xff] %vm5001_vm12, %v4890_v57  ;;  %v5908_v2 = vpop.f32.mrb[70].mxu1 }
 0x449   : > { %5009 = vst.msk [vmem:[%s8127_s25 + $0x38] sm:$0xff] %vm5001_vm12, %v5908_v2  ;;  %v4893_v20 = vpop.f32.mrb[71].mxu1 }
 0x44a   : > { %5007 = vst.msk [vmem:[%s8127_s25 + $0x28] sm:$0xff] %vm5001_vm12, %v4893_v20 }
 0x45e   : > { %v5911_v9 = vpop.f32.mrb[72].mxu1 }
 0x45f   : > { %5012 = vst.msk [vmem:[%s8127_s25 + $0x50] sm:$0xff] %vm5001_vm12, %v5911_v9  ;;  %v4906_v55 = vpop.f32.mrb[73].mxu1 }
 0x460   : > { %5010 = vst.msk [vmem:[%s8127_s25 + $0x40] sm:$0xff] %vm5001_vm12, %v4906_v55  ;;  %v5912_v21 = vpop.f32.mrb[74].mxu1 }
 0x461   : > { %5013 = vst.msk [vmem:[%s8127_s25 + $0x58] sm:$0xff] %vm5001_vm12, %v5912_v21  ;;  %v4909_v15 = vpop.f32.mrb[75].mxu1 }
 0x462   : > { %5011 = vst.msk [vmem:[%s8127_s25 + $0x48] sm:$0xff] %vm5001_vm12, %v4909_v15 }
 0x475   : > { %v5915_v6 = vpop.f32.mrb[76].mxu1 }
 0x476   : > { %5016 = vst.msk [vmem:[%s8127_s25 + $0x70] sm:$0xff] %vm5001_vm12, %v5915_v6  ;;  %v4922_v7 = vpop.f32.mrb[77].mxu1 }
 0x477   : > { %5014 = vst.msk [vmem:[%s8127_s25 + $0x60] sm:$0xff] %vm5001_vm12, %v4922_v7  ;;  %v5916_v54 = vpop.f32.mrb[78].mxu1 }
 0x478   : > { %5017 = vst.msk [vmem:[%s8127_s25 + $0x78] sm:$0xff] %vm5001_vm12, %v5916_v54  ;;  %v4925_v41 = vpop.f32.mrb[79].mxu1 }
 0x479   : > { %5015 = vst.msk [vmem:[%s8127_s25 + $0x68] sm:$0xff] %vm5001_vm12, %v4925_v41 }
 0x489   : > { %v5919_v48 = vpop.f32.mrb[80].mxu1 }
 0x48a   : > { %5020 = vst.msk [vmem:[%s8127_s25 + $0x90] sm:$0xff] %vm5001_vm12, %v5919_v48  ;;  %v4938_v11 = vpop.f32.mrb[81].mxu1 }
 0x48b   : > { %5018 = vst.msk [vmem:[%s8127_s25 + $0x80] sm:$0xff] %vm5001_vm12, %v4938_v11  ;;  %v5920_v46 = vpop.f32.mrb[82].mxu1 }
 0x48c   : > { %5021 = vst.msk [vmem:[%s8127_s25 + $0x98] sm:$0xff] %vm5001_vm12, %v5920_v46  ;;  %v4941_v42 = vpop.f32.mrb[83].mxu1 }
 0x48d   : > { %5019 = vst.msk [vmem:[%s8127_s25 + $0x88] sm:$0xff] %vm5001_vm12, %v4941_v42 }
 0x49d   : > { %v5923_v53 = vpop.f32.mrb[84].mxu1 }
 0x49e   : > { %5024 = vst.msk [vmem:[%s8127_s25 + $0xb0] sm:$0xff] %vm5001_vm12, %v5923_v53  ;;  %v4954_v8 = vpop.f32.mrb[85].mxu1 }
 0x49f   : > { %5022 = vst.msk [vmem:[%s8127_s25 + $0xa0] sm:$0xff] %vm5001_vm12, %v4954_v8  ;;  %v5924_v38 = vpop.f32.mrb[86].mxu1 }
 0x4a0   : > { %5025 = vst.msk [vmem:[%s8127_s25 + $0xb8] sm:$0xff] %vm5001_vm12, %v5924_v38  ;;  %v4957_v60 = vpop.f32.mrb[87].mxu1 }
 0x4a1   : > { %5023 = vst.msk [vmem:[%s8127_s25 + $0xa8] sm:$0xff] %vm5001_vm12, %v4957_v60 }
 0x4b2   : > { %v5927_v35 = vpop.f32.mrb[88].mxu1 }
 0x4b3   : > { %5028 = vst.msk [vmem:[%s8127_s25 + $0xd0] sm:$0xff] %vm5001_vm12, %v5927_v35  ;;  %v4970_v29 = vpop.f32.mrb[89].mxu1 }
 0x4b4   : > { %5026 = vst.msk [vmem:[%s8127_s25 + $0xc0] sm:$0xff] %vm5001_vm12, %v4970_v29  ;;  %v5928_v18 = vpop.f32.mrb[90].mxu1 }
 0x4b5   : > { %5029 = vst.msk [vmem:[%s8127_s25 + $0xd8] sm:$0xff] %vm5001_vm12, %v5928_v18  ;;  %v4973_v1 = vpop.f32.mrb[91].mxu1 }
 0x4b6   : > { %5027 = vst.msk [vmem:[%s8127_s25 + $0xc8] sm:$0xff] %vm5001_vm12, %v4973_v1 }
 0x4c6   : > { %v5931_v17 = vpop.f32.mrb[92].mxu1 }
 0x4c7   : > { %5032 = vst.msk [vmem:[%s8127_s25 + $0xf0] sm:$0xff] %vm5001_vm12, %v5931_v17  ;;  %v4986_v22 = vpop.f32.mrb[93].mxu1 }
 0x4c8   : > { %5030 = vst.msk [vmem:[%s8127_s25 + $0xe0] sm:$0xff] %vm5001_vm12, %v4986_v22  ;;  %v5932_v5 = vpop.f32.mrb[94].mxu1 }
 0x4c9   : > { %5033 = vst.msk [vmem:[%s8127_s25 + $0xf8] sm:$0xff] %vm5001_vm12, %v5932_v5  ;;  %v4989_v31 = vpop.f32.mrb[95].mxu1 }
 0x4ca   : > { %5031 = vst.msk [vmem:[%s8127_s25 + $0xe8] sm:$0xff] %vm5001_vm12, %v4989_v31 }
 0x4cb PF: > { %s16_s21 = sadd.s32 1, %s6253_s21  }
 0x4cc   : > { %p13_p4 = scmp.ge.s32.totalorder %s16_s21, 4  }
 0x4ce   :  { %15 = sbr.rel (!%p13_p4) target bundleno = 1 (0x1), region = 86 }

</bundles_post_ra>
